<compile_context>
chip_gen: v5e
topology: v5e:2x2
jax: 0.10.0
libtpu: 0.0.40
codegen_flags: <defaults>
</compile_context>

<pallas_src>
import functools

import jax
import jax.numpy as jnp
from jax.experimental import pallas as pl
from jax.experimental.pallas import tpu as pltpu


def _round_up(a, b):
    return (a + b - 1) // b * b


def _i32(v):
    """Python int -> int32 constant with two's-complement wrapping."""
    v &= 0xFFFFFFFF
    if v >= 1 << 31:
        v -= 1 << 32
    return jnp.int32(v)


def _srl(h, k):
    """Logical right shift of an int32 array (arithmetic shift + mask)."""
    mask = (1 << (32 - k)) - 1
    return (h >> k) & jnp.int32(mask)


def _apply_dropout(y, seed, row0, dropout_p):
    """Inverted dropout with a counter-based integer hash (lowbias32-style).

    Plain jnp ops only (no TPU PRNG primitives, no pl.program_id here), so it
    lowers both on Mosaic and in interpret mode.  Mask is deterministic per
    (seed, global row, column); the seed enters multiplicatively, so
    consecutive seeds do not produce shifted/correlated masks across calls.
    """
    rows = jax.lax.broadcasted_iota(jnp.int32, y.shape, 0) + row0
    cols = jax.lax.broadcasted_iota(jnp.int32, y.shape, 1)
    h = (rows * _i32(0x9E3779B1)
         + cols * _i32(0x85EBCA77)
         + seed * _i32(0xC2B2AE3D))
    h = h ^ _srl(h, 16)
    h = h * _i32(0x7FEB352D)
    h = h ^ _srl(h, 15)
    h = h * _i32(0x846CA68B)
    h = h ^ _srl(h, 16)
    # h is ~uniform over [-2^31, 2^31); keep with probability (1 - p).
    thr = int(round(dropout_p * (2.0 ** 32))) - (1 << 31)
    thr = max(-(1 << 31), min(thr, (1 << 31) - 1))
    inv_keep = 1.0 / (1.0 - dropout_p)
    return jnp.where(h >= jnp.int32(thr), y * inv_keep, 0.0)


def _ffn_resident_kernel(seed_ref, x_ref, w1_ref, b1_ref, w2_ref, b2_ref,
                         o_ref, *, dropout_p, training, tm):
    """Weight-resident path: full hidden dim per step, weights DMA'd once."""
    row0 = pl.program_id(0) * tm          # global row offset of this tile
    seed = seed_ref[0]

    hid = jnp.dot(x_ref[...], w1_ref[...], preferred_element_type=jnp.float32)
    hid = jnp.maximum(hid + b1_ref[...], 0.0)
    y = jnp.dot(hid.astype(w2_ref.dtype), w2_ref[...],
                preferred_element_type=jnp.float32)
    y = y + b2_ref[...]
    if training and dropout_p > 0.0:
        y = _apply_dropout(y, seed, row0, dropout_p)
    o_ref[...] = y.astype(o_ref.dtype)


def _ffn_streamed_kernel(seed_ref, x_ref, w1_ref, b1_ref, w2_ref, b2_ref,
                         o_ref, acc_ref, *, dropout_p, training, tm):
    """Hidden-tiled path for weights too large to keep VMEM-resident."""
    h = pl.program_id(1)
    last_h = pl.num_programs(1) - 1
    # Hoisted OUT of the pl.when bodies (program_id inside a cond body does
    # not lower on the interpret/CPU path).
    row0 = pl.program_id(0) * tm
    seed = seed_ref[0]

    @pl.when(h == 0)
    def _init():
        acc_ref[...] = jnp.zeros_like(acc_ref)

    # Linear 1 (this hidden block) + ReLU; native-dtype operands on the MXU,
    # f32 accumulation via preferred_element_type.
    hid = jnp.dot(x_ref[...], w1_ref[...], preferred_element_type=jnp.float32)
    hid = jnp.maximum(hid + b1_ref[...], 0.0)
    # Linear 2: partial contraction over this hidden block, f32 accumulator.
    acc_ref[...] += jnp.dot(hid.astype(w2_ref.dtype), w2_ref[...],
                            preferred_element_type=jnp.float32)

    @pl.when(h == last_h)
    def _finalize():
        y = acc_ref[...] + b2_ref[...]
        if training and dropout_p > 0.0:
            y = _apply_dropout(y, seed, row0, dropout_p)
        o_ref[...] = y.astype(o_ref.dtype)


def _vmem_budget_bytes():
    """~75% of physical VMEM: ~48 MiB on v7x, ~96 MiB on v5e/v6e."""
    try:
        cap = int(pltpu.get_tpu_info().vmem_capacity_bytes)
    except Exception:
        cap = 64 << 20            # conservative fallback fits every generation
    return max(32 << 20, min(cap * 3 // 4, 100 << 20))


def _choose_row_tile(M, tm_max, row_align):
    """Row tile: MXU-friendly, bounded padding, >=2 tiles when M allows."""
    tm_max = max(row_align, _round_up(tm_max, row_align))
    if M <= tm_max:
        if M >= 512:
            # Split so both v7x TensorCores get a row tile ('parallel' axis).
            return max(128, _round_up(pl.cdiv(M, 2), 128))
        return _round_up(M, row_align)
    tm = tm_max
    # Shrink while padding on the last tile wastes more than ~12.5% of M.
    while tm > 256 and (_round_up(M, tm) - M) * 8 > M:
        tm //= 2
    return max(row_align, _round_up(tm, row_align))


def feed_forward(x, w1, b1, w2, b2, *, dropout_p=0.2, training=False, seed=0,
                 tm=512, th=512, use_bf16_matmul=False,
                 allow_weight_resident=True):
    """relu(x @ W1 + b1) @ W2 + b2 with inverted dropout in train mode.

    x: (B, T, E); w1: (E, 4E); b1: (4E,); w2: (4E, E); b2: (E,).
    """
    B, T, E = x.shape
    H = w1.shape[1]
    M = B * T
    out_dtype = x.dtype

    if use_bf16_matmul:
        # bf16 MXU operands (f32 accumulate): ~3-4x MXU throughput on v6e/v7x
        # and half the weight DMA bytes. Gated behind a flag (numerics change).
        x = x.astype(jnp.bfloat16)
        w1 = w1.astype(jnp.bfloat16)
        w2 = w2.astype(jnp.bfloat16)

    a_sz = jnp.dtype(x.dtype).itemsize
    w_sz = jnp.dtype(w1.dtype).itemsize
    o_sz = jnp.dtype(out_dtype).itemsize

    row_align = 16 if a_sz < 4 else 8
    tm_eff = _choose_row_tile(M, tm, row_align)
    M_pad = _round_up(M, tm_eff)
    n_rows = M_pad // tm_eff

    budget = _vmem_budget_bytes()
    # Weight-resident footprint: 2 pipeline buffers per operand + hid temp.
    resident_need = (2 * tm_eff * E * (a_sz + o_sz)        # x / out tiles
                     + 2 * (2 * E * H + H + E) * w_sz      # W1, W2, b1, b2
                     + tm_eff * H * 4)                     # relu'd hidden (f32)
    use_resident = (allow_weight_resident
                    and resident_need + (6 << 20) <= budget)

    x2d = x.reshape(M, E)
    if M_pad != M:
        x2d = jnp.pad(x2d, ((0, M_pad - M), (0, 0)))
    b1_2d = b1.reshape(1, H).astype(jnp.float32)
    b2_2d = b2.reshape(1, E).astype(jnp.float32)
    seed_arr = jnp.array([seed], dtype=jnp.int32)

    if use_resident:
        kernel = functools.partial(_ffn_resident_kernel, dropout_p=dropout_p,
                                   training=training, tm=tm_eff)
        grid_spec = pltpu.PrefetchScalarGridSpec(
            num_scalar_prefetch=1,                          # seed -> SMEM
            grid=(n_rows,),
            in_specs=[
                pl.BlockSpec((tm_eff, E), lambda i, s: (i, 0)),   # x
                pl.BlockSpec((E, H), lambda i, s: (0, 0)),        # W1 resident
                pl.BlockSpec((1, H), lambda i, s: (0, 0)),        # b1 resident
                pl.BlockSpec((H, E), lambda i, s: (0, 0)),        # W2 resident
                pl.BlockSpec((1, E), lambda i, s: (0, 0)),        # b2 resident
            ],
            out_specs=pl.BlockSpec((tm_eff, E), lambda i, s: (i, 0)),
        )
        dim_sem = ("parallel",)
        vmem_need = resident_need
        weight_bytes = (2 * E * H + H + E) * w_sz           # read once total
    else:
        th_eff = th if (th <= H and H % th == 0 and th % 128 == 0) else H
        kernel = functools.partial(_ffn_streamed_kernel, dropout_p=dropout_p,
                                   training=training, tm=tm_eff)
        grid_spec = pltpu.PrefetchScalarGridSpec(
            num_scalar_prefetch=1,
            grid=(n_rows, H // th_eff),        # reduction (hidden) axis last
            in_specs=[
                pl.BlockSpec((tm_eff, E), lambda i, h, s: (i, 0)),   # x
                pl.BlockSpec((E, th_eff), lambda i, h, s: (0, h)),   # W1
                pl.BlockSpec((1, th_eff), lambda i, h, s: (0, h)),   # b1
                pl.BlockSpec((th_eff, E), lambda i, h, s: (h, 0)),   # W2
                pl.BlockSpec((1, E), lambda i, h, s: (0, 0)),        # b2
            ],
            out_specs=pl.BlockSpec((tm_eff, E), lambda i, h, s: (i, 0)),
            scratch_shapes=[pltpu.VMEM((tm_eff, E), jnp.float32)],
        )
        dim_sem = ("parallel", "arbitrary")
        vmem_need = (2 * (tm_eff * E * a_sz + E * th_eff * w_sz + th_eff * w_sz
                          + th_eff * E * w_sz + E * w_sz + tm_eff * E * o_sz)
                     + tm_eff * E * 4             # f32 accumulator scratch
                     + tm_eff * th_eff * 4)       # relu'd hidden block (f32)
        weight_bytes = n_rows * 2 * E * H * w_sz + (H + E) * 4   # re-streamed

    vmem_limit = int(min(max(vmem_need + (8 << 20), 16 << 20), budget))
    cost = pl.CostEstimate(
        flops=4 * M_pad * E * H,                  # two matmuls
        transcendentals=0,
        bytes_accessed=M_pad * E * (a_sz + o_sz) + weight_bytes)

    out = pl.pallas_call(
        kernel,
        out_shape=jax.ShapeDtypeStruct((M_pad, E), out_dtype),
        grid_spec=grid_spec,
        compiler_params=pltpu.CompilerParams(
            dimension_semantics=dim_sem,
            vmem_limit_bytes=vmem_limit),
        cost_estimate=cost,
    )(seed_arr, x2d, w1, b1_2d, w2, b2_2d)

    return out[:M].reshape(B, T, E)


if __name__ == "__main__":
    # Small shapes consistent with the module: num_embeddings=384, dropout=0.2.
    B, T = 2, 8
    E = 384
    H = 4 * E
    dropout_p = 0.2

    key = jax.random.PRNGKey(0)
    kx, k1, kb1, k2, kb2 = jax.random.split(key, 5)

    x = jax.random.normal(kx, (B, T, E), dtype=jnp.float32)

    # nn.Linear-style init (uniform +/- 1/sqrt(fan_in)), stored as (in, out).
    bound1 = 1.0 / (E ** 0.5)
    w1 = jax.random.uniform(k1, (E, H), jnp.float32, -bound1, bound1)
    b1 = jax.random.uniform(kb1, (H,), jnp.float32, -bound1, bound1)
    bound2 = 1.0 / (H ** 0.5)
    w2 = jax.random.uniform(k2, (H, E), jnp.float32, -bound2, bound2)
    b2 = jax.random.uniform(kb2, (E,), jnp.float32, -bound2, bound2)

    # Full-precision reference (Dropout == identity in eval mode).
    x2 = x.reshape(-1, E)
    hp = jax.lax.Precision.HIGHEST
    ref = jnp.dot(jnp.maximum(jnp.dot(x2, w1, precision=hp) + b1, 0.0), w2,
                  precision=hp) + b2

    # 1) Eval mode, weight-resident fast path.
    y = feed_forward(x, w1, b1, w2, b2, dropout_p=dropout_p, training=False)
    jax.block_until_ready(y)
    assert jnp.allclose(y.reshape(-1, E), ref, atol=2e-3, rtol=2e-3), \
        "resident path mismatch"

    # 2) Eval mode, forced hidden-streamed path (exercises the accumulator).
    y_s = feed_forward(x, w1, b1, w2, b2, dropout_p=dropout_p, training=False,
                       allow_weight_resident=False, th=512)
    jax.block_until_ready(y_s)
    assert jnp.allclose(y_s.reshape(-1, E), ref, atol=2e-3, rtol=2e-3), \
        "streamed path mismatch"

    # 3) Train mode: inverted dropout (drop fraction + 1/(1-p) scale checks).
    # TODO(synk): bit-exact parity with torch.nn.Dropout's RNG stream is not
    # possible; the mask is statistically equivalent (keep prob 1-p, x1/(1-p)).
    y_tr = feed_forward(x, w1, b1, w2, b2, dropout_p=dropout_p, training=True,
                        seed=1234)
    jax.block_until_ready(y_tr)
    y_tr2 = y_tr.reshape(-1, E)
    drop_frac = float(jnp.mean(y_tr2 == 0.0))
    assert 0.05 < drop_frac < 0.4, f"unexpected dropout fraction {drop_frac}"
    kept_ok = jnp.where(y_tr2 == 0.0, True,
                        jnp.isclose(y_tr2, ref / (1.0 - dropout_p),
                                    atol=2e-3, rtol=2e-3))
    assert bool(jnp.all(kept_ok)), "kept elements not scaled by 1/(1-p)"

    print("KERNEL_OK")
</pallas_src>

<mosaic_0001>
module attributes {stable_mosaic.version = 11 : i64} {
  func.func @_ffn_resident_kernel(%arg0: i32, %arg1: memref<1xi32, #tpu.memory_space<smem>>, %arg2: memref<16x384xf32, #tpu.memory_space<vmem>>, %arg3: memref<384x1536xf32, #tpu.memory_space<vmem>>, %arg4: memref<1x1536xf32, #tpu.memory_space<vmem>>, %arg5: memref<1536x384xf32, #tpu.memory_space<vmem>>, %arg6: memref<1x384xf32, #tpu.memory_space<vmem>>, %arg7: memref<16x384xf32, #tpu.memory_space<vmem>>) attributes {dimension_semantics = [#tpu.dimension_semantics<parallel>], iteration_bounds = array<i64: 1>, scalar_prefetch = 1 : i64, scratch_operands = 0 : i64, tpu.core_type = #tpu.core_type<tc>, window_params = [{transform_indices = @transform_0, window_bounds = array<i64: 16, 384>}, {pipeline_mode = #tpu.pipeline_mode<synchronous>, transform_indices = @transform_1, window_bounds = array<i64: 384, 1536>}, {pipeline_mode = #tpu.pipeline_mode<synchronous>, transform_indices = @transform_2, window_bounds = array<i64: 1, 1536>}, {pipeline_mode = #tpu.pipeline_mode<synchronous>, transform_indices = @transform_3, window_bounds = array<i64: 1536, 384>}, {pipeline_mode = #tpu.pipeline_mode<synchronous>, transform_indices = @transform_4, window_bounds = array<i64: 1, 384>}, {transform_indices = @transform_5, window_bounds = array<i64: 16, 384>}]} {
    %c0 = arith.constant 0 : index
    %c0_0 = arith.constant 0 : index
    %0 = vector.load %arg2[%c0, %c0_0] : memref<16x384xf32, #tpu.memory_space<vmem>>, vector<16x384xf32>
    %c0_1 = arith.constant 0 : index
    %c0_2 = arith.constant 0 : index
    %1 = vector.load %arg3[%c0_1, %c0_2] : memref<384x1536xf32, #tpu.memory_space<vmem>>, vector<384x1536xf32>
    %cst = arith.constant dense<0.000000e+00> : vector<16x1536xf32>
    %2 = tpu.matmul %0, %1, %cst {dimension_numbers = #tpu.dot_dimension_numbers<[1], [0], [0], [1], [0, 0, 1, 1], [], []>} : vector<16x384xf32>, vector<384x1536xf32>, vector<16x1536xf32> -> vector<16x1536xf32>
    %c0_3 = arith.constant 0 : index
    %c0_4 = arith.constant 0 : index
    %3 = vector.load %arg4[%c0_3, %c0_4] : memref<1x1536xf32, #tpu.memory_space<vmem>>, vector<1x1536xf32>
    %4 = vector.broadcast %3 : vector<1x1536xf32> to vector<16x1536xf32>
    %5 = arith.addf %2, %4 : vector<16x1536xf32>
    %cst_5 = arith.constant 0.000000e+00 : f32
    %6 = vector.broadcast %cst_5 : f32 to vector<16x1536xf32>
    %7 = arith.maximumf %5, %6 : vector<16x1536xf32>
    %c0_6 = arith.constant 0 : index
    %c0_7 = arith.constant 0 : index
    %8 = vector.load %arg5[%c0_6, %c0_7] : memref<1536x384xf32, #tpu.memory_space<vmem>>, vector<1536x384xf32>
    %cst_8 = arith.constant dense<0.000000e+00> : vector<16x384xf32>
    %9 = tpu.matmul %7, %8, %cst_8 {dimension_numbers = #tpu.dot_dimension_numbers<[1], [0], [0], [1], [0, 0, 1, 1], [], []>} : vector<16x1536xf32>, vector<1536x384xf32>, vector<16x384xf32> -> vector<16x384xf32>
    %c0_9 = arith.constant 0 : index
    %c0_10 = arith.constant 0 : index
    %10 = vector.load %arg6[%c0_9, %c0_10] : memref<1x384xf32, #tpu.memory_space<vmem>>, vector<1x384xf32>
    %11 = vector.broadcast %10 : vector<1x384xf32> to vector<16x384xf32>
    %12 = arith.addf %9, %11 : vector<16x384xf32>
    %c0_11 = arith.constant 0 : index
    %c0_12 = arith.constant 0 : index
    %13 = vector.load %arg7[%c0_11, %c0_12] : memref<16x384xf32, #tpu.memory_space<vmem>>, vector<16x384xf32>
    tpu.vector_store %arg7[%c0_11, %c0_12], %12 {strides = array<i32>} : memref<16x384xf32, #tpu.memory_space<vmem>>, vector<16x384xf32>,
    return
  }
  func.func @transform_0(%arg0: i32, %arg1: memref<1xi32, #tpu.memory_space<smem>>) -> (i32, i32) {
    %c0_i32 = arith.constant 0 : i32
    %c0_i32_0 = arith.constant 0 : i32
    return %arg0, %c0_i32 : i32, i32
  }
  func.func @transform_1(%arg0: i32, %arg1: memref<1xi32, #tpu.memory_space<smem>>) -> (i32, i32) {
    %c0_i32 = arith.constant 0 : i32
    %c0_i32_0 = arith.constant 0 : i32
    %c0_i32_1 = arith.constant 0 : i32
    return %c0_i32, %c0_i32_0 : i32, i32
  }
  func.func @transform_2(%arg0: i32, %arg1: memref<1xi32, #tpu.memory_space<smem>>) -> (i32, i32) {
    %c0_i32 = arith.constant 0 : i32
    %c0_i32_0 = arith.constant 0 : i32
    %c0_i32_1 = arith.constant 0 : i32
    return %c0_i32, %c0_i32_0 : i32, i32
  }
  func.func @transform_3(%arg0: i32, %arg1: memref<1xi32, #tpu.memory_space<smem>>) -> (i32, i32) {
    %c0_i32 = arith.constant 0 : i32
    %c0_i32_0 = arith.constant 0 : i32
    %c0_i32_1 = arith.constant 0 : i32
    return %c0_i32, %c0_i32_0 : i32, i32
  }
  func.func @transform_4(%arg0: i32, %arg1: memref<1xi32, #tpu.memory_space<smem>>) -> (i32, i32) {
    %c0_i32 = arith.constant 0 : i32
    %c0_i32_0 = arith.constant 0 : i32
    %c0_i32_1 = arith.constant 0 : i32
    return %c0_i32, %c0_i32_0 : i32, i32
  }
  func.func @transform_5(%arg0: i32, %arg1: memref<1xi32, #tpu.memory_space<smem>>) -> (i32, i32) {
    %c0_i32 = arith.constant 0 : i32
    %c0_i32_0 = arith.constant 0 : i32
    return %arg0, %c0_i32 : i32, i32
  }
}

</mosaic_0001>

<bundles_post_ra>
// kernel: tpu_custom_call.1
= control target key start
LH: loop header
LB: loop body
LE: loop exit
PB: predicated region body
PF: predicated region fallthrough
CT: control target
= control target key end

     0   :  { %12 = vsyncpa [#allocation5], 0  ;;  %s3655_s0 = inlined_call_operand.<no memory space> [shape: s32[1], index: 0, kind: input, shape index: {}]   ;;  %s3656_s1 = inlined_call_operand.hbm [shape: f32[16,384], index: 1, kind: input, shape index: {}]   ;;  %s3657_s2 = inlined_call_operand.hbm [shape: f32[384,1536], index: 2, kind: input, shape index: {}]   ;;  %s3658_s3 = inlined_call_operand.hbm [shape: f32[1,1536], index: 3, kind: input, shape index: {}]   ;;  %s3659_s4 = inlined_call_operand.hbm [shape: f32[1536,384], index: 4, kind: input, shape index: {}]   ;;  %s3660_s5 = inlined_call_operand.hbm [shape: f32[1,384], index: 5, kind: input, shape index: {}]   ;;  %s3661_s6 = inlined_call_operand.hbm [shape: f32[16,384], index: 6, kind: output, shape index: {}]  }
   0x1   :  { %13 = vsyncpa [#allocation8], 0 }
   0x2   :  { %14 = vsyncpa [#allocation11], 0  ;;  %s33_s22 = sshll.u32 %s3657_s2, 4  ;;  %s34_s22 = int_to_ptr.hbm [resolvable:$true] %s33_s22 }
   0x3   :  { %15 = vsyncpa [#allocation6], 0  ;;  %s3167_s23 = smov [#allocation7]   ;;  %s3168_s25 = smov 1536  }
   0x4   :  { %s35_s24 = sshll.u32 %s3167_s23, 4  ;;  %s3169_s26 = smov 96   ;;  %s36_s24 = int_to_ptr.vmem [resolvable:$true] %s35_s24 }
   0x5   :  { %41 = dma.hbm_to_vmem [thread:$0]  %s34_s22, 73728, %s36_s24, [#allocation8], %s3168_s25, %s3168_s25, %s3169_s26  }
   0x6   :  { %s57_s29 = sshll.u32 %s3659_s4, 4  ;;  %s3170_s30 = smov [#allocation10]   ;;  %s58_s29 = int_to_ptr.hbm [resolvable:$true] %s57_s29 }
   0x7   :  { %s59_s7 = sshll.u32 %s3170_s30, 4  ;;  %s20_s10 = sshll.u32 %s3656_s1, 4  ;;  %s60_s7 = int_to_ptr.vmem [resolvable:$true] %s59_s7  ;;  %s21_s10 = int_to_ptr.hbm [resolvable:$true] %s20_s10 }
   0x8   :  { %s3171_s2 = smov 384   ;;  %s3172_s11 = smov 24  }
   0x9   :  { %65 = dma.hbm_to_vmem [thread:$0]  %s58_s29, 73728, %s60_s7, [#allocation11], %s3171_s2, %s3171_s2, %s3172_s11  }
   0xa   :  { %s47_s14 = sshll.u32 %s3658_s3, 4  ;;  %s3173_s4 = smov [#allocation4]   ;;  %s48_s14 = int_to_ptr.hbm [resolvable:$true] %s47_s14 }
   0xb   :  { %s22_s15 = sshll.u32 %s3173_s4, 4  ;;  %s3174_s1 = smov [#allocation9]   ;;  %s23_s15 = int_to_ptr.vmem [resolvable:$true] %s22_s15 }
   0xc   :  { %28 = dma.hbm_to_vmem [thread:$0]  %s21_s10, 768, %s23_s15, [#allocation5], %s3171_s2, %s3171_s2, %s3172_s11  }
   0xd   :  { %s49_s16 = sshll.u32 %s3174_s1, 4  ;;  %s71_s19 = sshll.u32 %s3660_s5, 4  ;;  %s50_s16 = int_to_ptr.vmem [resolvable:$true] %s49_s16  ;;  %s72_s19 = int_to_ptr.hbm [resolvable:$true] %s71_s19 }
   0xe   :  { %52 = dma.hbm_to_vmem [thread:$0]  %s48_s14, 192, %s50_s16, [#allocation8]  }
   0xf   :  { %s3175_s20 = smov [#allocation12]  }
  0x10   :  { %s73_s0 = sshll.u32 %s3175_s20, 4  ;;  %s74_s0 = int_to_ptr.vmem [resolvable:$true] %s73_s0 }
  0x11   :  { %76 = dma.hbm_to_vmem [thread:$0]  %s72_s19, 48, %s74_s0, [#allocation11]  }
  0x12   :  { %3159 = dma.done.wait [#allocation5], 768  }
  0x13   :  { %3160 = vsyncadd [#allocation5], 4294966528 }
  0x14   :  { %3161 = dma.done.wait [#allocation8], 73920  }
  0x15   :  { %3162 = vsyncadd [#allocation8], 4294893376 }
  0x16   :  { %3163 = dma.done.wait [#allocation11], 73776  }
  0x17   :  { %3164 = vsyncadd [#allocation11], 4294893520  ;;  %v283_v0 = vld [vmem:[#allocation7 + $0x5a0] sm:$0xff]  ;;  %v284_v3 = vld [vmem:[#allocation7 + $0x5a8] sm:$0xff]  ;;  %s3176_s3 = smov [#allocation13]   ;;  %s2983_s23 = sshll.u32 %s3661_s6, 4  ;;  %s2984_s23 = int_to_ptr.hbm [resolvable:$true] %s2983_s23 }
  0x18   :  { %v475_v1 = vld [vmem:[#allocation7 + $0xba0] sm:$0xff]  ;;  %707 = vmatpush.msra.mxu0 %v283_v0  ;;  %776 = vmatpush.msra.mxu3 %v284_v3  ;;  %v272_v7 = vld [vmem:[#allocation7 + $0x548] sm:$0xff]  ;;  %v477_v3 = vld [vmem:[#allocation7 + $0xbb0] sm:$0xff]  ;;  %s2981_s5 = sshll.u32 %s3176_s3, 4  ;;  %s2982_s5 = int_to_ptr.vmem [resolvable:$true] %s2981_s5 }
  0x19   :  { %v667_v2 = vld [vmem:[#allocation7 + $0x11a0] sm:$0xff]  ;;  %730 = vmatpush.msra.mxu1 %v475_v1  ;;  %v260_v11 = vld [vmem:[#allocation7 + $0x4e8] sm:$0xff] }
  0x1a   :  { %v271_v4 = vld [vmem:[#allocation7 + $0x540] sm:$0xff]  ;;  %753 = vmatpush.msra.mxu2 %v667_v2  ;;  %777 = vmatpush.msra.mxu3 %v272_v7  ;;  %v248_v15 = vld [vmem:[#allocation7 + $0x488] sm:$0xff]  ;;  %v285_v2 = vld [vmem:[#allocation7 + $0x5b0] sm:$0xff] }
  0x1b   :  { %v463_v5 = vld [vmem:[#allocation7 + $0xb40] sm:$0xff]  ;;  %708 = vmatpush.msra.mxu0 %v271_v4  ;;  %v236_v19 = vld [vmem:[#allocation7 + $0x428] sm:$0xff]  ;;  %v465_v7 = vld [vmem:[#allocation7 + $0xb50] sm:$0xff] }
  0x1c   :  { %v655_v6 = vld [vmem:[#allocation7 + $0x1140] sm:$0xff]  ;;  %731 = vmatpush.msra.mxu1 %v463_v5  ;;  %778 = vmatpush.msra.mxu3 %v260_v11  ;;  %v224_v23 = vld [vmem:[#allocation7 + $0x3c8] sm:$0xff]  ;;  %v453_v11 = vld [vmem:[#allocation7 + $0xaf0] sm:$0xff] }
  0x1d   :  { %v259_v8 = vld [vmem:[#allocation7 + $0x4e0] sm:$0xff]  ;;  %754 = vmatpush.msra.mxu2 %v655_v6  ;;  %v212_v27 = vld [vmem:[#allocation7 + $0x368] sm:$0xff]  ;;  %v273_v6 = vld [vmem:[#allocation7 + $0x550] sm:$0xff] }
  0x1e   :  { %v451_v9 = vld [vmem:[#allocation7 + $0xae0] sm:$0xff]  ;;  %709 = vmatpush.msra.mxu0 %v259_v8  ;;  %779 = vmatpush.msra.mxu3 %v248_v15  ;;  %v200_v31 = vld [vmem:[#allocation7 + $0x308] sm:$0xff]  ;;  %v441_v15 = vld [vmem:[#allocation7 + $0xa90] sm:$0xff] }
  0x1f   :  { %v643_v10 = vld [vmem:[#allocation7 + $0x10e0] sm:$0xff]  ;;  %732 = vmatpush.msra.mxu1 %v451_v9  ;;  %v188_v35 = vld [vmem:[#allocation7 + $0x2a8] sm:$0xff] }
  0x20   :  { %v247_v12 = vld [vmem:[#allocation7 + $0x480] sm:$0xff]  ;;  %755 = vmatpush.msra.mxu2 %v643_v10  ;;  %780 = vmatpush.msra.mxu3 %v236_v19  ;;  %v176_v39 = vld [vmem:[#allocation7 + $0x248] sm:$0xff]  ;;  %v261_v10 = vld [vmem:[#allocation7 + $0x4f0] sm:$0xff] }
  0x21   :  { %v439_v13 = vld [vmem:[#allocation7 + $0xa80] sm:$0xff]  ;;  %710 = vmatpush.msra.mxu0 %v247_v12  ;;  %v164_v43 = vld [vmem:[#allocation7 + $0x1e8] sm:$0xff]  ;;  %v429_v19 = vld [vmem:[#allocation7 + $0xa30] sm:$0xff] }
  0x22   :  { %v631_v14 = vld [vmem:[#allocation7 + $0x1080] sm:$0xff]  ;;  %733 = vmatpush.msra.mxu1 %v439_v13  ;;  %781 = vmatpush.msra.mxu3 %v224_v23  ;;  %v152_v47 = vld [vmem:[#allocation7 + $0x188] sm:$0xff]  ;;  %v417_v23 = vld [vmem:[#allocation7 + $0x9d0] sm:$0xff] }
  0x23   :  { %v235_v16 = vld [vmem:[#allocation7 + $0x420] sm:$0xff]  ;;  %756 = vmatpush.msra.mxu2 %v631_v14  ;;  %v140_v51 = vld [vmem:[#allocation7 + $0x128] sm:$0xff]  ;;  %v249_v14 = vld [vmem:[#allocation7 + $0x490] sm:$0xff] }
  0x24   :  { %v427_v17 = vld [vmem:[#allocation7 + $0xa20] sm:$0xff]  ;;  %711 = vmatpush.msra.mxu0 %v235_v16  ;;  %782 = vmatpush.msra.mxu3 %v212_v27  ;;  %v128_v55 = vld [vmem:[#allocation7 + $0xc8] sm:$0xff]  ;;  %v405_v27 = vld [vmem:[#allocation7 + $0x970] sm:$0xff] }
  0x25   :  { %v619_v18 = vld [vmem:[#allocation7 + $0x1020] sm:$0xff]  ;;  %734 = vmatpush.msra.mxu1 %v427_v17  ;;  %v116_v59 = vld [vmem:[#allocation7 + $0x68] sm:$0xff] }
  0x26   :  { %v223_v20 = vld [vmem:[#allocation7 + $0x3c0] sm:$0xff]  ;;  %757 = vmatpush.msra.mxu2 %v619_v18  ;;  %783 = vmatpush.msra.mxu3 %v200_v31  ;;  %v104_v63 = vld [vmem:[#allocation7 + $0x8] sm:$0xff]  ;;  %v237_v18 = vld [vmem:[#allocation7 + $0x430] sm:$0xff] }
  0x27   :  { %v415_v21 = vld [vmem:[#allocation7 + $0x9c0] sm:$0xff]  ;;  %712 = vmatpush.msra.mxu0 %v223_v20  ;;  %v476_v0 = vld [vmem:[#allocation7 + $0xba8] sm:$0xff]  ;;  %v393_v31 = vld [vmem:[#allocation7 + $0x910] sm:$0xff] }
  0x28   :  { %v607_v22 = vld [vmem:[#allocation7 + $0xfc0] sm:$0xff]  ;;  %735 = vmatpush.msra.mxu1 %v415_v21  ;;  %784 = vmatpush.msra.mxu3 %v188_v35  ;;  %v668_v1 = vld [vmem:[#allocation7 + $0x11a8] sm:$0xff]  ;;  %v381_v35 = vld [vmem:[#allocation7 + $0x8b0] sm:$0xff] }
  0x29   :  { %v211_v24 = vld [vmem:[#allocation7 + $0x360] sm:$0xff]  ;;  %758 = vmatpush.msra.mxu2 %v607_v22  ;;  %v464_v4 = vld [vmem:[#allocation7 + $0xb48] sm:$0xff]  ;;  %v225_v22 = vld [vmem:[#allocation7 + $0x3d0] sm:$0xff] }
  0x2a   :  { %v403_v25 = vld [vmem:[#allocation7 + $0x960] sm:$0xff]  ;;  %713 = vmatpush.msra.mxu0 %v211_v24  ;;  %785 = vmatpush.msra.mxu3 %v176_v39  ;;  %v656_v5 = vld [vmem:[#allocation7 + $0x1148] sm:$0xff]  ;;  %v369_v39 = vld [vmem:[#allocation7 + $0x850] sm:$0xff] }
  0x2b   :  { %v595_v26 = vld [vmem:[#allocation7 + $0xf60] sm:$0xff]  ;;  %736 = vmatpush.msra.mxu1 %v403_v25  ;;  %v452_v8 = vld [vmem:[#allocation7 + $0xae8] sm:$0xff] }
  0x2c   :  { %v199_v28 = vld [vmem:[#allocation7 + $0x300] sm:$0xff]  ;;  %759 = vmatpush.msra.mxu2 %v595_v26  ;;  %786 = vmatpush.msra.mxu3 %v164_v43  ;;  %v644_v9 = vld [vmem:[#allocation7 + $0x10e8] sm:$0xff]  ;;  %v213_v26 = vld [vmem:[#allocation7 + $0x370] sm:$0xff] }
  0x2d   :  { %v391_v29 = vld [vmem:[#allocation7 + $0x900] sm:$0xff]  ;;  %714 = vmatpush.msra.mxu0 %v199_v28  ;;  %v440_v12 = vld [vmem:[#allocation7 + $0xa88] sm:$0xff]  ;;  %v357_v43 = vld [vmem:[#allocation7 + $0x7f0] sm:$0xff] }
  0x2e   :  { %v583_v30 = vld [vmem:[#allocation7 + $0xf00] sm:$0xff]  ;;  %737 = vmatpush.msra.mxu1 %v391_v29  ;;  %787 = vmatpush.msra.mxu3 %v152_v47  ;;  %v632_v13 = vld [vmem:[#allocation7 + $0x1088] sm:$0xff]  ;;  %v345_v47 = vld [vmem:[#allocation7 + $0x790] sm:$0xff] }
  0x2f   :  { %v187_v32 = vld [vmem:[#allocation7 + $0x2a0] sm:$0xff]  ;;  %760 = vmatpush.msra.mxu2 %v583_v30  ;;  %v428_v16 = vld [vmem:[#allocation7 + $0xa28] sm:$0xff]  ;;  %v201_v30 = vld [vmem:[#allocation7 + $0x310] sm:$0xff] }
  0x30   :  { %v379_v33 = vld [vmem:[#allocation7 + $0x8a0] sm:$0xff]  ;;  %715 = vmatpush.msra.mxu0 %v187_v32  ;;  %788 = vmatpush.msra.mxu3 %v140_v51  ;;  %v620_v17 = vld [vmem:[#allocation7 + $0x1028] sm:$0xff]  ;;  %v333_v51 = vld [vmem:[#allocation7 + $0x730] sm:$0xff] }
  0x31   :  { %v571_v34 = vld [vmem:[#allocation7 + $0xea0] sm:$0xff]  ;;  %738 = vmatpush.msra.mxu1 %v379_v33  ;;  %v416_v20 = vld [vmem:[#allocation7 + $0x9c8] sm:$0xff] }
  0x32   :  { %v175_v36 = vld [vmem:[#allocation7 + $0x240] sm:$0xff]  ;;  %761 = vmatpush.msra.mxu2 %v571_v34  ;;  %789 = vmatpush.msra.mxu3 %v128_v55  ;;  %v608_v21 = vld [vmem:[#allocation7 + $0xfc8] sm:$0xff]  ;;  %v189_v34 = vld [vmem:[#allocation7 + $0x2b0] sm:$0xff] }
  0x33   :  { %v367_v37 = vld [vmem:[#allocation7 + $0x840] sm:$0xff]  ;;  %716 = vmatpush.msra.mxu0 %v175_v36  ;;  %v404_v24 = vld [vmem:[#allocation7 + $0x968] sm:$0xff]  ;;  %v129_v55 = vld [vmem:[#allocation7 + $0xd0] sm:$0xff] }
  0x34   :  { %v559_v38 = vld [vmem:[#allocation7 + $0xe40] sm:$0xff]  ;;  %739 = vmatpush.msra.mxu1 %v367_v37  ;;  %790 = vmatpush.msra.mxu3 %v116_v59  ;;  %v596_v25 = vld [vmem:[#allocation7 + $0xf68] sm:$0xff] }
  0x35   :  { %v163_v40 = vld [vmem:[#allocation7 + $0x1e0] sm:$0xff]  ;;  %762 = vmatpush.msra.mxu2 %v559_v38  ;;  %v392_v28 = vld [vmem:[#allocation7 + $0x908] sm:$0xff]  ;;  %v177_v38 = vld [vmem:[#allocation7 + $0x250] sm:$0xff] }
  0x36   :  { %v355_v41 = vld [vmem:[#allocation7 + $0x7e0] sm:$0xff]  ;;  %717 = vmatpush.msra.mxu0 %v163_v40  ;;  %791 = vmatpush.msra.mxu3 %v104_v63  ;;  %v584_v29 = vld [vmem:[#allocation7 + $0xf08] sm:$0xff] }
  0x37   :  { %v547_v42 = vld [vmem:[#allocation7 + $0xde0] sm:$0xff]  ;;  %740 = vmatpush.msra.mxu1 %v355_v41  ;;  %v380_v32 = vld [vmem:[#allocation7 + $0x8a8] sm:$0xff] }
  0x38   :  { %v151_v44 = vld [vmem:[#allocation7 + $0x180] sm:$0xff]  ;;  %763 = vmatpush.msra.mxu2 %v547_v42  ;;  %868 = vmatpush.msrb.mxu3 %v477_v3  ;;  %v572_v33 = vld [vmem:[#allocation7 + $0xea8] sm:$0xff]  ;;  %v165_v42 = vld [vmem:[#allocation7 + $0x1f0] sm:$0xff] }
  0x39   :  { %v343_v45 = vld [vmem:[#allocation7 + $0x780] sm:$0xff]  ;;  %718 = vmatpush.msra.mxu0 %v151_v44  ;;  %v368_v36 = vld [vmem:[#allocation7 + $0x848] sm:$0xff]  ;;  %v669_v3 = vld [vmem:[#allocation7 + $0x11b0] sm:$0xff] }
  0x3a   :  { %v535_v46 = vld [vmem:[#allocation7 + $0xd80] sm:$0xff]  ;;  %741 = vmatpush.msra.mxu1 %v343_v45  ;;  %869 = vmatpush.msrb.mxu3 %v465_v7  ;;  %v560_v37 = vld [vmem:[#allocation7 + $0xe48] sm:$0xff] }
  0x3b   :  { %v139_v48 = vld [vmem:[#allocation7 + $0x120] sm:$0xff]  ;;  %764 = vmatpush.msra.mxu2 %v535_v46  ;;  %v356_v40 = vld [vmem:[#allocation7 + $0x7e8] sm:$0xff]  ;;  %v153_v46 = vld [vmem:[#allocation7 + $0x190] sm:$0xff] }
  0x3c   :  { %v331_v49 = vld [vmem:[#allocation7 + $0x720] sm:$0xff]  ;;  %719 = vmatpush.msra.mxu0 %v139_v48  ;;  %870 = vmatpush.msrb.mxu3 %v453_v11  ;;  %v548_v41 = vld [vmem:[#allocation7 + $0xde8] sm:$0xff]  ;;  %v658_v11 = vld [vmem:[#allocation7 + $0x1158] sm:$0xff] }
  0x3d   :  { %v523_v50 = vld [vmem:[#allocation7 + $0xd20] sm:$0xff]  ;;  %742 = vmatpush.msra.mxu1 %v331_v49  ;;  %v344_v44 = vld [vmem:[#allocation7 + $0x788] sm:$0xff] }
  0x3e   :  { %v127_v52 = vld [vmem:[#allocation7 + $0xc0] sm:$0xff]  ;;  %765 = vmatpush.msra.mxu2 %v523_v50  ;;  %871 = vmatpush.msrb.mxu3 %v441_v15  ;;  %v536_v45 = vld [vmem:[#allocation7 + $0xd88] sm:$0xff]  ;;  %v141_v50 = vld [vmem:[#allocation7 + $0x130] sm:$0xff] }
  0x3f   :  { %v319_v53 = vld [vmem:[#allocation7 + $0x6c0] sm:$0xff]  ;;  %720 = vmatpush.msra.mxu0 %v127_v52  ;;  %v332_v48 = vld [vmem:[#allocation7 + $0x728] sm:$0xff]  ;;  %v3233_v52 = vld [vmem:[#allocation4] sm:$0xff] }
  0x40   :  { %v511_v54 = vld [vmem:[#allocation7 + $0xcc0] sm:$0xff]  ;;  %743 = vmatpush.msra.mxu1 %v319_v53  ;;  %872 = vmatpush.msrb.mxu3 %v429_v19  ;;  %v524_v49 = vld [vmem:[#allocation7 + $0xd28] sm:$0xff]  ;;  %v454_v15 = vld [vmem:[#allocation7 + $0xaf8] sm:$0xff] }
  0x41   :  { %v115_v56 = vld [vmem:[#allocation7 + $0x60] sm:$0xff]  ;;  %766 = vmatpush.msra.mxu2 %v511_v54  ;;  %v512_v53 = vld [vmem:[#allocation7 + $0xcc8] sm:$0xff]  ;;  %792 = vmatmul.f32.vlgmr.msra.gmra.mxu3 %v3233_v52  ;;  %v442_v19 = vld [vmem:[#allocation7 + $0xa98] sm:$0xff] }
  0x42   :  { %v307_v57 = vld [vmem:[#allocation7 + $0x660] sm:$0xff]  ;;  %721 = vmatpush.msra.mxu0 %v115_v56  ;;  %873 = vmatpush.msrb.mxu3 %v417_v23  ;;  %v320_v54 = vld [vmem:[#allocation7 + $0x6c8] sm:$0xff]  ;;  %v321_v56 = vld [vmem:[#allocation7 + $0x6d0] sm:$0xff] }
  0x43   :  { %v499_v58 = vld [vmem:[#allocation7 + $0xc60] sm:$0xff]  ;;  %744 = vmatpush.msra.mxu1 %v307_v57  ;;  %v3235_v57 = vld [vmem:[#allocation4 + $0x8] sm:$0xff]  ;;  %v500_v59 = vld [vmem:[#allocation7 + $0xc68] sm:$0xff] }
  0x44   :  { %v103_v60 = vld [vmem:[#allocation7] sm:$0xff]  ;;  %767 = vmatpush.msra.mxu2 %v499_v58  ;;  %874 = vmatpush.msrb.mxu3 %v405_v27  ;;  %v308_v58 = vld [vmem:[#allocation7 + $0x668] sm:$0xff]  ;;  %v430_v23 = vld [vmem:[#allocation7 + $0xa38] sm:$0xff] }
  0x45   :  { %v295_v61 = vld [vmem:[#allocation7 + $0x600] sm:$0xff]  ;;  %722 = vmatpush.msra.mxu0 %v103_v60  ;;  %v117_v60 = vld [vmem:[#allocation7 + $0x70] sm:$0xff]  ;;  %v488_v63 = vld [vmem:[#allocation7 + $0xc08] sm:$0xff] }
  0x46   :  { %v487_v62 = vld [vmem:[#allocation7 + $0xc00] sm:$0xff]  ;;  %745 = vmatpush.msra.mxu1 %v295_v61  ;;  %875 = vmatpush.msrb.mxu3 %v393_v31  ;;  %v309_v61 = vld [vmem:[#allocation7 + $0x670] sm:$0xff]  ;;  %v3243_v7 = vld [vmem:[#allocation4 + $0x18] sm:$0xff] }
  0x47   :  { %768 = vmatpush.msra.mxu2 %v487_v62  ;;  %799 = vmatpush.msrb.mxu0 %v476_v0  ;;  %v296_v62 = vld [vmem:[#allocation7 + $0x608] sm:$0xff]  ;;  %v105_v0 = vld [vmem:[#allocation7 + $0x10] sm:$0xff]  ;;  %v418_v27 = vld [vmem:[#allocation7 + $0x9d8] sm:$0xff] }
  0x48   :  { %822 = vmatpush.msrb.mxu1 %v668_v1  ;;  %876 = vmatpush.msrb.mxu3 %v381_v35  ;;  %v297_v1 = vld [vmem:[#allocation7 + $0x610] sm:$0xff]  ;;  %v406_v31 = vld [vmem:[#allocation7 + $0x978] sm:$0xff] }
  0x49   :  { %845 = vmatpush.msrb.mxu2 %v285_v2  ;;  %800 = vmatpush.msrb.mxu0 %v464_v4  ;;  %v3239_v2 = vld [vmem:[#allocation4 + $0x10] sm:$0xff]  ;;  %v286_v4 = vld [vmem:[#allocation7 + $0x5b8] sm:$0xff] }
  0x4a   :  { %823 = vmatpush.msrb.mxu1 %v656_v5  ;;  %877 = vmatpush.msrb.mxu3 %v369_v39  ;;  %v478_v5 = vld [vmem:[#allocation7 + $0xbb8] sm:$0xff] }
  0x4b   :  { %846 = vmatpush.msrb.mxu2 %v273_v6  ;;  %801 = vmatpush.msrb.mxu0 %v452_v8  ;;  %v670_v6 = vld [vmem:[#allocation7 + $0x11b8] sm:$0xff] }
  0x4c   :  { %824 = vmatpush.msrb.mxu1 %v644_v9  ;;  %878 = vmatpush.msrb.mxu3 %v357_v43  ;;  %v274_v8 = vld [vmem:[#allocation7 + $0x558] sm:$0xff]  ;;  %v657_v9 = vld [vmem:[#allocation7 + $0x1150] sm:$0xff] }
  0x4d   :  { %847 = vmatpush.msrb.mxu2 %v261_v10  ;;  %802 = vmatpush.msrb.mxu0 %v440_v12  ;;  %v466_v10 = vld [vmem:[#allocation7 + $0xb58] sm:$0xff]  ;;  %v3245_v12 = vld [vmem:[#allocation4 + $0x20] sm:$0xff] }
  0x4e   :  { %825 = vmatpush.msrb.mxu1 %v632_v13  ;;  %879 = vmatpush.msrb.mxu3 %v345_v47  ;;  %v645_v13 = vld [vmem:[#allocation7 + $0x10f0] sm:$0xff]  ;;  %v394_v35 = vld [vmem:[#allocation7 + $0x918] sm:$0xff] }
  0x4f   :  { %848 = vmatpush.msrb.mxu2 %v249_v14  ;;  %803 = vmatpush.msrb.mxu0 %v428_v16  ;;  %v262_v14 = vld [vmem:[#allocation7 + $0x4f8] sm:$0xff] }
  0x50   :  { %826 = vmatpush.msrb.mxu1 %v620_v17  ;;  %880 = vmatpush.msrb.mxu3 %v333_v51  ;;  %v646_v16 = vld [vmem:[#allocation7 + $0x10f8] sm:$0xff]  ;;  %v633_v17 = vld [vmem:[#allocation7 + $0x1090] sm:$0xff] }
  0x51   :  { %849 = vmatpush.msrb.mxu2 %v237_v18  ;;  %804 = vmatpush.msrb.mxu0 %v416_v20  ;;  %v250_v18 = vld [vmem:[#allocation7 + $0x498] sm:$0xff] }
  0x52   :  { %827 = vmatpush.msrb.mxu1 %v608_v21  ;;  %723 = vmatmul.f32.vlgmr.msra.gmra.mxu0 %v3233_v52  ;;  %v634_v20 = vld [vmem:[#allocation7 + $0x1098] sm:$0xff]  ;;  %v621_v21 = vld [vmem:[#allocation7 + $0x1030] sm:$0xff] }
  0x53   :  { %850 = vmatpush.msrb.mxu2 %v225_v22  ;;  %805 = vmatpush.msrb.mxu0 %v404_v24  ;;  %v238_v22 = vld [vmem:[#allocation7 + $0x438] sm:$0xff] }
  0x54   :  { %828 = vmatpush.msrb.mxu1 %v596_v25  ;;  %881 = vmatpush.msrb.mxu3 %v321_v56  ;;  %v622_v24 = vld [vmem:[#allocation7 + $0x1038] sm:$0xff] }
  0x55   :  { %851 = vmatpush.msrb.mxu2 %v213_v26  ;;  %806 = vmatpush.msrb.mxu0 %v392_v28  ;;  %v226_v25 = vld [vmem:[#allocation7 + $0x3d8] sm:$0xff]  ;;  %v609_v26 = vld [vmem:[#allocation7 + $0xfd0] sm:$0xff] }
  0x56   :  { %829 = vmatpush.msrb.mxu1 %v584_v29  ;;  %882 = vmatpush.msrb.mxu3 %v309_v61  ;;  %v610_v28 = vld [vmem:[#allocation7 + $0xfd8] sm:$0xff]  ;;  %v597_v29 = vld [vmem:[#allocation7 + $0xf70] sm:$0xff] }
  0x57   :  { %852 = vmatpush.msrb.mxu2 %v201_v30  ;;  %807 = vmatpush.msrb.mxu0 %v380_v32  ;;  %v214_v30 = vld [vmem:[#allocation7 + $0x378] sm:$0xff] }
  0x58   :  { %830 = vmatpush.msrb.mxu1 %v572_v33  ;;  %883 = vmatpush.msrb.mxu3 %v297_v1  ;;  %v598_v32 = vld [vmem:[#allocation7 + $0xf78] sm:$0xff]  ;;  %v585_v33 = vld [vmem:[#allocation7 + $0xf10] sm:$0xff] }
  0x59   :  { %853 = vmatpush.msrb.mxu2 %v189_v34  ;;  %808 = vmatpush.msrb.mxu0 %v368_v36  ;;  %v202_v34 = vld [vmem:[#allocation7 + $0x318] sm:$0xff] }
  0x5a   :  { %831 = vmatpush.msrb.mxu1 %v560_v37  ;;  %769 = vmatmul.f32.vlgmr.msra.gmra.mxu2 %v3239_v2  ;;  %v586_v36 = vld [vmem:[#allocation7 + $0xf18] sm:$0xff]  ;;  %v573_v37 = vld [vmem:[#allocation7 + $0xeb0] sm:$0xff] }
  0x5b   :  { %854 = vmatpush.msrb.mxu2 %v177_v38  ;;  %809 = vmatpush.msrb.mxu0 %v356_v40  ;;  %v190_v38 = vld [vmem:[#allocation7 + $0x2b8] sm:$0xff] }
  0x5c   :  { %832 = vmatpush.msrb.mxu1 %v548_v41  ;;  %960 = vmatpush.msra.mxu3 %v670_v6  ;;  %v382_v39 = vld [vmem:[#allocation7 + $0x8b8] sm:$0xff]  ;;  %v561_v41 = vld [vmem:[#allocation7 + $0xe50] sm:$0xff] }
  0x5d   :  { %855 = vmatpush.msrb.mxu2 %v165_v42  ;;  %810 = vmatpush.msrb.mxu0 %v344_v44  ;;  %v574_v40 = vld [vmem:[#allocation7 + $0xeb8] sm:$0xff] }
  0x5e   :  { %833 = vmatpush.msrb.mxu1 %v536_v45  ;;  %726 = vmatmul.f32.gmra.mxu0 %v3243_v7  ;;  %v178_v42 = vld [vmem:[#allocation7 + $0x258] sm:$0xff]  ;;  %v549_v45 = vld [vmem:[#allocation7 + $0xdf0] sm:$0xff] }
  0x5f   :  { %856 = vmatpush.msrb.mxu2 %v153_v46  ;;  %811 = vmatpush.msrb.mxu0 %v332_v48  ;;  %v370_v43 = vld [vmem:[#allocation7 + $0x858] sm:$0xff] }
  0x60   :  { %834 = vmatpush.msrb.mxu1 %v524_v49  ;;  %961 = vmatpush.msra.mxu3 %v658_v11  ;;  %v562_v44 = vld [vmem:[#allocation7 + $0xe58] sm:$0xff]  ;;  %v537_v49 = vld [vmem:[#allocation7 + $0xd90] sm:$0xff]  ;;  %v479_v11 = vld [vmem:[#allocation7 + $0xbc0] sm:$0xff] }
  0x61   :  { %857 = vmatpush.msrb.mxu2 %v141_v50  ;;  %812 = vmatpush.msrb.mxu0 %v320_v54  ;;  %v166_v46 = vld [vmem:[#allocation7 + $0x1f8] sm:$0xff] }
  0x62   :  { %835 = vmatpush.msrb.mxu1 %v512_v53  ;;  %962 = vmatpush.msra.mxu3 %v646_v16  ;;  %v358_v47 = vld [vmem:[#allocation7 + $0x7f8] sm:$0xff]  ;;  %v275_v16 = vld [vmem:[#allocation7 + $0x560] sm:$0xff] }
  0x63   :  { %858 = vmatpush.msrb.mxu2 %v129_v55  ;;  %746 = vmatmul.f32.vlgmr.msra.gmra.mxu1 %v3235_v57  ;;  %v550_v48 = vld [vmem:[#allocation7 + $0xdf8] sm:$0xff]  ;;  %v525_v55 = vld [vmem:[#allocation7 + $0xd30] sm:$0xff] }
  0x64   :  { %813 = vmatpush.msrb.mxu0 %v308_v58  ;;  %836 = vmatpush.msrb.mxu1 %v500_v59  ;;  %v154_v50 = vld [vmem:[#allocation7 + $0x198] sm:$0xff] }
  0x65   :  { %859 = vmatpush.msrb.mxu2 %v117_v60  ;;  %963 = vmatpush.msra.mxu3 %v634_v20  ;;  %v346_v51 = vld [vmem:[#allocation7 + $0x798] sm:$0xff]  ;;  %v513_v60 = vld [vmem:[#allocation7 + $0xcd0] sm:$0xff]  ;;  %v455_v20 = vld [vmem:[#allocation7 + $0xb00] sm:$0xff] }
  0x66   :  { %814 = vmatpush.msrb.mxu0 %v296_v62  ;;  %837 = vmatpush.msrb.mxu1 %v488_v63  ;;  %v538_v53 = vld [vmem:[#allocation7 + $0xd98] sm:$0xff] }
  0x67   :  { %860 = vmatpush.msrb.mxu2 %v105_v0  ;;  %964 = vmatpush.msra.mxu3 %v622_v24  ;;  %v3251_v54 = vld [vmem:[#allocation4 + $0x28] sm:$0xff]  ;;  %v501_v0 = vld [vmem:[#allocation7 + $0xc70] sm:$0xff]  ;;  %v443_v24 = vld [vmem:[#allocation7 + $0xaa0] sm:$0xff] }
  0x68   :  { %891 = vmatpush.msra.mxu0 %v669_v3  ;;  %914 = vmatpush.msra.mxu1 %v286_v4  ;;  %v142_v56 = vld [vmem:[#allocation7 + $0x138] sm:$0xff] }
  0x69   :  { %937 = vmatpush.msra.mxu2 %v478_v5  ;;  %815 = vmatmul.f32.vlgmr.msrb.gmra.mxu0 %v3235_v57  ;;  %v334_v58 = vld [vmem:[#allocation7 + $0x738] sm:$0xff]  ;;  %v489_v5 = vld [vmem:[#allocation7 + $0xc10] sm:$0xff] }
  0x6a   :  { %915 = vmatpush.msra.mxu1 %v274_v8  ;;  %892 = vmatpush.msra.mxu0 %v657_v9  ;;  %v526_v59 = vld [vmem:[#allocation7 + $0xd38] sm:$0xff] }
  0x6b   :  { %938 = vmatpush.msra.mxu2 %v466_v10  ;;  %749 = vmatmul.f32.gmra.mxu1 %v3245_v12  ;;  %v130_v61 = vld [vmem:[#allocation7 + $0xd8] sm:$0xff]  ;;  %v287_v10 = vld [vmem:[#allocation7 + $0x5c0] sm:$0xff] }
  0x6c   :  { %893 = vmatpush.msra.mxu0 %v645_v13  ;;  %916 = vmatpush.msra.mxu1 %v262_v14  ;;  %v322_v62 = vld [vmem:[#allocation7 + $0x6d8] sm:$0xff]  ;;  %v671_v13 = vld [vmem:[#allocation7 + $0x11c0] sm:$0xff]  ;;  %v288_v14 = vld [vmem:[#allocation7 + $0x5c8] sm:$0xff] }
  0x6d   :  { %939 = vmatpush.msra.mxu2 %v454_v15  ;;  %965 = vmatpush.msra.mxu3 %v610_v28  ;;  %v514_v63 = vld [vmem:[#allocation7 + $0xcd8] sm:$0xff]  ;;  %v467_v15 = vld [vmem:[#allocation7 + $0xb60] sm:$0xff] }
  0x6e   :  { %894 = vmatpush.msra.mxu0 %v633_v17  ;;  %917 = vmatpush.msra.mxu1 %v250_v18  ;;  %v118_v1 = vld [vmem:[#allocation7 + $0x78] sm:$0xff]  ;;  %v659_v17 = vld [vmem:[#allocation7 + $0x1160] sm:$0xff]  ;;  %v276_v18 = vld [vmem:[#allocation7 + $0x568] sm:$0xff] }
  0x6f   :  { %940 = vmatpush.msra.mxu2 %v442_v19  ;;  %966 = vmatpush.msra.mxu3 %v598_v32  ;;  %v310_v3 = vld [vmem:[#allocation7 + $0x678] sm:$0xff]  ;;  %v263_v19 = vld [vmem:[#allocation7 + $0x500] sm:$0xff] }
  0x70   :  { %895 = vmatpush.msra.mxu0 %v621_v21  ;;  %918 = vmatpush.msra.mxu1 %v238_v22  ;;  %v502_v4 = vld [vmem:[#allocation7 + $0xc78] sm:$0xff]  ;;  %v647_v21 = vld [vmem:[#allocation7 + $0x1100] sm:$0xff]  ;;  %v264_v22 = vld [vmem:[#allocation7 + $0x508] sm:$0xff] }
  0x71   :  { %941 = vmatpush.msra.mxu2 %v430_v23  ;;  %967 = vmatpush.msra.mxu3 %v586_v36  ;;  %v106_v6 = vld [vmem:[#allocation7 + $0x18] sm:$0xff]  ;;  %v251_v23 = vld [vmem:[#allocation7 + $0x4a0] sm:$0xff] }
  0x72   :  { %919 = vmatpush.msra.mxu1 %v226_v25  ;;  %896 = vmatpush.msra.mxu0 %v609_v26  ;;  %v298_v8 = vld [vmem:[#allocation7 + $0x618] sm:$0xff]  ;;  %v635_v25 = vld [vmem:[#allocation7 + $0x10a0] sm:$0xff]  ;;  %v252_v26 = vld [vmem:[#allocation7 + $0x4a8] sm:$0xff] }
  0x73   :  { %942 = vmatpush.msra.mxu2 %v418_v27  ;;  %838 = vmatmul.f32.vlgmr.msrb.gmra.mxu1 %v3239_v2  ;;  %v490_v9 = vld [vmem:[#allocation7 + $0xc18] sm:$0xff]  ;;  %v239_v27 = vld [vmem:[#allocation7 + $0x440] sm:$0xff] }
  0x74   :  { %897 = vmatpush.msra.mxu0 %v597_v29  ;;  %920 = vmatpush.msra.mxu1 %v214_v30  ;;  %v431_v28 = vld [vmem:[#allocation7 + $0xa40] sm:$0xff]  ;;  %v240_v30 = vld [vmem:[#allocation7 + $0x448] sm:$0xff] }
  0x75   :  { %943 = vmatpush.msra.mxu2 %v406_v31  ;;  %968 = vmatpush.msra.mxu3 %v574_v40  ;;  %v623_v29 = vld [vmem:[#allocation7 + $0x1040] sm:$0xff] }
  0x76   :  { %898 = vmatpush.msra.mxu0 %v585_v33  ;;  %921 = vmatpush.msra.mxu1 %v202_v34  ;;  %v419_v31 = vld [vmem:[#allocation7 + $0x9e0] sm:$0xff]  ;;  %v228_v34 = vld [vmem:[#allocation7 + $0x3e8] sm:$0xff] }
  0x77   :  { %944 = vmatpush.msra.mxu2 %v394_v35  ;;  %969 = vmatpush.msra.mxu3 %v562_v44  ;;  %v227_v32 = vld [vmem:[#allocation7 + $0x3e0] sm:$0xff] }
  0x78   :  { %899 = vmatpush.msra.mxu0 %v573_v37  ;;  %922 = vmatpush.msra.mxu1 %v190_v38  ;;  %v611_v33 = vld [vmem:[#allocation7 + $0xfe0] sm:$0xff]  ;;  %v216_v38 = vld [vmem:[#allocation7 + $0x388] sm:$0xff] }
  0x79   :  { %945 = vmatpush.msra.mxu2 %v382_v39  ;;  %970 = vmatpush.msra.mxu3 %v550_v48  ;;  %v407_v35 = vld [vmem:[#allocation7 + $0x980] sm:$0xff] }
  0x7a   :  { %900 = vmatpush.msra.mxu0 %v561_v41  ;;  %923 = vmatpush.msra.mxu1 %v178_v42  ;;  %v215_v36 = vld [vmem:[#allocation7 + $0x380] sm:$0xff]  ;;  %v204_v42 = vld [vmem:[#allocation7 + $0x328] sm:$0xff] }
  0x7b   :  { %946 = vmatpush.msra.mxu2 %v370_v43  ;;  %971 = vmatpush.msra.mxu3 %v538_v53  ;;  %v599_v37 = vld [vmem:[#allocation7 + $0xf80] sm:$0xff] }
  0x7c   :  { %901 = vmatpush.msra.mxu0 %v549_v45  ;;  %924 = vmatpush.msra.mxu1 %v166_v46  ;;  %v395_v39 = vld [vmem:[#allocation7 + $0x920] sm:$0xff]  ;;  %v192_v46 = vld [vmem:[#allocation7 + $0x2c8] sm:$0xff] }
  0x7d   :  { %947 = vmatpush.msra.mxu2 %v358_v47  ;;  %795 = vmatmul.f32.gmra.mxu3 %v3243_v7  ;;  %v203_v40 = vld [vmem:[#allocation7 + $0x320] sm:$0xff] }
  0x7e   :  { %902 = vmatpush.msra.mxu0 %v537_v49  ;;  %925 = vmatpush.msra.mxu1 %v154_v50  ;;  %v587_v41 = vld [vmem:[#allocation7 + $0xf20] sm:$0xff]  ;;  %v180_v50 = vld [vmem:[#allocation7 + $0x268] sm:$0xff] }
  0x7f   :  { %948 = vmatpush.msra.mxu2 %v346_v51  ;;  %972 = vmatpush.msra.mxu3 %v526_v59  ;;  %v383_v43 = vld [vmem:[#allocation7 + $0x8c0] sm:$0xff] }
  0x80   :  { %772 = vmatmul.f32.gmra.mxu2 %v3251_v54  ;;  %903 = vmatpush.msra.mxu0 %v525_v55  ;;  %v191_v44 = vld [vmem:[#allocation7 + $0x2c0] sm:$0xff] }
  0x81   :  { %926 = vmatpush.msra.mxu1 %v142_v56  ;;  %949 = vmatpush.msra.mxu2 %v334_v58  ;;  %v575_v45 = vld [vmem:[#allocation7 + $0xec0] sm:$0xff]  ;;  %v168_v56 = vld [vmem:[#allocation7 + $0x208] sm:$0xff] }
  0x82   :  { %904 = vmatpush.msra.mxu0 %v513_v60  ;;  %973 = vmatpush.msra.mxu3 %v514_v63  ;;  %v371_v47 = vld [vmem:[#allocation7 + $0x860] sm:$0xff] }
  0x83   :  { %927 = vmatpush.msra.mxu1 %v130_v61  ;;  %950 = vmatpush.msra.mxu2 %v322_v62  ;;  %v179_v48 = vld [vmem:[#allocation7 + $0x260] sm:$0xff]  ;;  %v156_v61 = vld [vmem:[#allocation7 + $0x1a8] sm:$0xff] }
  0x84   :  { %905 = vmatpush.msra.mxu0 %v501_v0  ;;  %974 = vmatpush.msra.mxu3 %v502_v4  ;;  %v563_v49 = vld [vmem:[#allocation7 + $0xe60] sm:$0xff] }
  0x85   :  { %928 = vmatpush.msra.mxu1 %v118_v1  ;;  %951 = vmatpush.msra.mxu2 %v310_v3  ;;  %v359_v51 = vld [vmem:[#allocation7 + $0x800] sm:$0xff]  ;;  %v144_v1 = vld [vmem:[#allocation7 + $0x148] sm:$0xff] }
  0x86   :  { %906 = vmatpush.msra.mxu0 %v489_v5  ;;  %975 = vmatpush.msra.mxu3 %v490_v9  ;;  %v167_v53 = vld [vmem:[#allocation7 + $0x200] sm:$0xff] }
  0x87   :  { %929 = vmatpush.msra.mxu1 %v106_v6  ;;  %952 = vmatpush.msra.mxu2 %v298_v8  ;;  %v551_v55 = vld [vmem:[#allocation7 + $0xe00] sm:$0xff]  ;;  %v132_v6 = vld [vmem:[#allocation7 + $0xe8] sm:$0xff] }
  0x88   :  { %861 = vmatmul.f32.vlgmr.msrb.gmra.mxu2 %v3233_v52  ;;  %884 = vmatmul.f32.vlgmr.msrb.gmra.mxu3 %v3235_v57  ;;  %v347_v58 = vld [vmem:[#allocation7 + $0x7a0] sm:$0xff] }
  0x89   :  { %983 = vmatpush.msrb.mxu0 %v287_v10  ;;  %1006 = vmatpush.msrb.mxu1 %v479_v11  ;;  %v155_v59 = vld [vmem:[#allocation7 + $0x1a0] sm:$0xff]  ;;  %v120_v11 = vld [vmem:[#allocation7 + $0x88] sm:$0xff] }
  0x8a   :  { %1029 = vmatpush.msrb.mxu2 %v671_v13  ;;  %1052 = vmatpush.msrb.mxu3 %v288_v14  ;;  %v539_v60 = vld [vmem:[#allocation7 + $0xda0] sm:$0xff] }
  0x8b   :  { %818 = vmatmul.f32.gmra.mxu0 %v3245_v12  ;;  %1007 = vmatpush.msrb.mxu1 %v467_v15  ;;  %v143_v62 = vld [vmem:[#allocation7 + $0x140] sm:$0xff] }
  0x8c   :  { %984 = vmatpush.msrb.mxu0 %v275_v16  ;;  %1030 = vmatpush.msrb.mxu2 %v659_v17  ;;  %v335_v63 = vld [vmem:[#allocation7 + $0x740] sm:$0xff]  ;;  %v108_v16 = vld [vmem:[#allocation7 + $0x28] sm:$0xff] }
  0x8d   :  { %1053 = vmatpush.msrb.mxu3 %v276_v18  ;;  %841 = vmatmul.f32.gmra.mxu1 %v3251_v54  ;;  %v527_v0 = vld [vmem:[#allocation7 + $0xd40] sm:$0xff]  ;;  %v480_v17 = vld [vmem:[#allocation7 + $0xbc8] sm:$0xff] }
  0x8e   :  { %985 = vmatpush.msrb.mxu0 %v263_v19  ;;  %1008 = vmatpush.msrb.mxu1 %v455_v20  ;;  %v131_v3 = vld [vmem:[#allocation7 + $0xe0] sm:$0xff]  ;;  %v672_v18 = vld [vmem:[#allocation7 + $0x11c8] sm:$0xff]  ;;  %v289_v19 = vld [vmem:[#allocation7 + $0x5d0] sm:$0xff] }
  0x8f   :  { %1031 = vmatpush.msrb.mxu2 %v647_v21  ;;  %1054 = vmatpush.msrb.mxu3 %v264_v22  ;;  %v323_v4 = vld [vmem:[#allocation7 + $0x6e0] sm:$0xff]  ;;  %v481_v20 = vld [vmem:[#allocation7 + $0xbd0] sm:$0xff]  ;;  %v660_v21 = vld [vmem:[#allocation7 + $0x1168] sm:$0xff] }
  0x90   :  { %986 = vmatpush.msrb.mxu0 %v251_v23  ;;  %1009 = vmatpush.msrb.mxu1 %v443_v24  ;;  %v515_v5 = vld [vmem:[#allocation7 + $0xce0] sm:$0xff]  ;;  %v468_v22 = vld [vmem:[#allocation7 + $0xb68] sm:$0xff]  ;;  %v277_v23 = vld [vmem:[#allocation7 + $0x570] sm:$0xff] }
  0x91   :  { %1032 = vmatpush.msrb.mxu2 %v635_v25  ;;  %1055 = vmatpush.msrb.mxu3 %v252_v26  ;;  %v119_v8 = vld [vmem:[#allocation7 + $0x80] sm:$0xff]  ;;  %v469_v24 = vld [vmem:[#allocation7 + $0xb70] sm:$0xff]  ;;  %v648_v25 = vld [vmem:[#allocation7 + $0x1108] sm:$0xff] }
  0x92   :  { %987 = vmatpush.msrb.mxu0 %v239_v27  ;;  %1010 = vmatpush.msrb.mxu1 %v431_v28  ;;  %v311_v9 = vld [vmem:[#allocation7 + $0x680] sm:$0xff]  ;;  %v456_v26 = vld [vmem:[#allocation7 + $0xb08] sm:$0xff]  ;;  %v265_v27 = vld [vmem:[#allocation7 + $0x510] sm:$0xff] }
  0x93   :  { %1033 = vmatpush.msrb.mxu2 %v623_v29  ;;  %1056 = vmatpush.msrb.mxu3 %v240_v30  ;;  %v503_v10 = vld [vmem:[#allocation7 + $0xc80] sm:$0xff]  ;;  %v457_v28 = vld [vmem:[#allocation7 + $0xb10] sm:$0xff]  ;;  %v636_v29 = vld [vmem:[#allocation7 + $0x10a8] sm:$0xff] }
  0x94   :  { %907 = vmatmul.f32.vlgmr.msra.gmra.mxu0 %v3239_v2  ;;  %1011 = vmatpush.msrb.mxu1 %v419_v31  ;;  %v107_v13 = vld [vmem:[#allocation7 + $0x20] sm:$0xff]  ;;  %v444_v30 = vld [vmem:[#allocation7 + $0xaa8] sm:$0xff]  ;;  %v253_v31 = vld [vmem:[#allocation7 + $0x4b0] sm:$0xff] }
  0x95   :  { %988 = vmatpush.msrb.mxu0 %v227_v32  ;;  %1034 = vmatpush.msrb.mxu2 %v611_v33  ;;  %v299_v14 = vld [vmem:[#allocation7 + $0x620] sm:$0xff]  ;;  %v445_v32 = vld [vmem:[#allocation7 + $0xab0] sm:$0xff]  ;;  %v624_v33 = vld [vmem:[#allocation7 + $0x1048] sm:$0xff] }
  0x96   :  { %1057 = vmatpush.msrb.mxu3 %v228_v34  ;;  %1012 = vmatpush.msrb.mxu1 %v407_v35  ;;  %v491_v15 = vld [vmem:[#allocation7 + $0xc20] sm:$0xff]  ;;  %v432_v34 = vld [vmem:[#allocation7 + $0xa48] sm:$0xff]  ;;  %v241_v35 = vld [vmem:[#allocation7 + $0x450] sm:$0xff] }
  0x97   :  { %989 = vmatpush.msrb.mxu0 %v215_v36  ;;  %1035 = vmatpush.msrb.mxu2 %v599_v37  ;;  %v433_v36 = vld [vmem:[#allocation7 + $0xa50] sm:$0xff]  ;;  %v612_v37 = vld [vmem:[#allocation7 + $0xfe8] sm:$0xff] }
  0x98   :  { %1058 = vmatpush.msrb.mxu3 %v216_v38  ;;  %1013 = vmatpush.msrb.mxu1 %v395_v39  ;;  %v420_v38 = vld [vmem:[#allocation7 + $0x9e8] sm:$0xff]  ;;  %v229_v39 = vld [vmem:[#allocation7 + $0x3f0] sm:$0xff] }
  0x99   :  { %990 = vmatpush.msrb.mxu0 %v203_v40  ;;  %1036 = vmatpush.msrb.mxu2 %v587_v41  ;;  %v421_v40 = vld [vmem:[#allocation7 + $0x9f0] sm:$0xff]  ;;  %v600_v41 = vld [vmem:[#allocation7 + $0xf88] sm:$0xff] }
  0x9a   :  { %1059 = vmatpush.msrb.mxu3 %v204_v42  ;;  %1014 = vmatpush.msrb.mxu1 %v383_v43  ;;  %v408_v42 = vld [vmem:[#allocation7 + $0x988] sm:$0xff]  ;;  %v217_v43 = vld [vmem:[#allocation7 + $0x390] sm:$0xff] }
  0x9b   :  { %991 = vmatpush.msrb.mxu0 %v191_v44  ;;  %1037 = vmatpush.msrb.mxu2 %v575_v45  ;;  %v409_v44 = vld [vmem:[#allocation7 + $0x990] sm:$0xff]  ;;  %v588_v45 = vld [vmem:[#allocation7 + $0xf28] sm:$0xff] }
  0x9c   :  { %1060 = vmatpush.msrb.mxu3 %v192_v46  ;;  %1015 = vmatpush.msrb.mxu1 %v371_v47  ;;  %v396_v46 = vld [vmem:[#allocation7 + $0x928] sm:$0xff]  ;;  %v205_v47 = vld [vmem:[#allocation7 + $0x330] sm:$0xff] }
  0x9d   :  { %992 = vmatpush.msrb.mxu0 %v179_v48  ;;  %1038 = vmatpush.msrb.mxu2 %v563_v49  ;;  %v397_v48 = vld [vmem:[#allocation7 + $0x930] sm:$0xff]  ;;  %v576_v49 = vld [vmem:[#allocation7 + $0xec8] sm:$0xff] }
  0x9e   :  { %1061 = vmatpush.msrb.mxu3 %v180_v50  ;;  %1016 = vmatpush.msrb.mxu1 %v359_v51  ;;  %v384_v50 = vld [vmem:[#allocation7 + $0x8c8] sm:$0xff]  ;;  %v193_v51 = vld [vmem:[#allocation7 + $0x2d0] sm:$0xff] }
  0x9f   :  { %993 = vmatpush.msrb.mxu0 %v167_v53  ;;  %1039 = vmatpush.msrb.mxu2 %v551_v55  ;;  %v385_v53 = vld [vmem:[#allocation7 + $0x8d0] sm:$0xff]  ;;  %v564_v55 = vld [vmem:[#allocation7 + $0xe68] sm:$0xff] }
  0xa0   :  { %1062 = vmatpush.msrb.mxu3 %v168_v56  ;;  %1017 = vmatpush.msrb.mxu1 %v347_v58  ;;  %v372_v56 = vld [vmem:[#allocation7 + $0x868] sm:$0xff]  ;;  %v181_v58 = vld [vmem:[#allocation7 + $0x270] sm:$0xff] }
  0xa1   :  { %994 = vmatpush.msrb.mxu0 %v155_v59  ;;  %1040 = vmatpush.msrb.mxu2 %v539_v60  ;;  %v373_v59 = vld [vmem:[#allocation7 + $0x870] sm:$0xff]  ;;  %v360_v60 = vld [vmem:[#allocation7 + $0x808] sm:$0xff] }
  0xa2   :  { %1063 = vmatpush.msrb.mxu3 %v156_v61  ;;  %864 = vmatmul.f32.gmra.mxu2 %v3243_v7  ;;  %v552_v61 = vld [vmem:[#allocation7 + $0xe08] sm:$0xff] }
  0xa3   :  { %887 = vmatmul.f32.gmra.mxu3 %v3245_v12  ;;  %995 = vmatpush.msrb.mxu0 %v143_v62  ;;  %v169_v62 = vld [vmem:[#allocation7 + $0x210] sm:$0xff] }
  0xa4   :  { %1018 = vmatpush.msrb.mxu1 %v335_v63  ;;  %1041 = vmatpush.msrb.mxu2 %v527_v0  ;;  %v361_v63 = vld [vmem:[#allocation7 + $0x810] sm:$0xff]  ;;  %v348_v0 = vld [vmem:[#allocation7 + $0x7a8] sm:$0xff] }
  0xa5   :  { %1064 = vmatpush.msrb.mxu3 %v144_v1  ;;  %996 = vmatpush.msrb.mxu0 %v131_v3  ;;  %v540_v1 = vld [vmem:[#allocation7 + $0xda8] sm:$0xff]  ;;  %v157_v3 = vld [vmem:[#allocation7 + $0x1b0] sm:$0xff] }
  0xa6   :  { %1019 = vmatpush.msrb.mxu1 %v323_v4  ;;  %1042 = vmatpush.msrb.mxu2 %v515_v5  ;;  %v349_v4 = vld [vmem:[#allocation7 + $0x7b0] sm:$0xff]  ;;  %v336_v5 = vld [vmem:[#allocation7 + $0x748] sm:$0xff] }
  0xa7   :  { %1065 = vmatpush.msrb.mxu3 %v132_v6  ;;  %997 = vmatpush.msrb.mxu0 %v119_v8  ;;  %v528_v6 = vld [vmem:[#allocation7 + $0xd48] sm:$0xff]  ;;  %v145_v8 = vld [vmem:[#allocation7 + $0x150] sm:$0xff] }
  0xa8   :  { %1020 = vmatpush.msrb.mxu1 %v311_v9  ;;  %1043 = vmatpush.msrb.mxu2 %v503_v10  ;;  %v337_v9 = vld [vmem:[#allocation7 + $0x750] sm:$0xff]  ;;  %v516_v10 = vld [vmem:[#allocation7 + $0xce8] sm:$0xff] }
  0xa9   :  { %1066 = vmatpush.msrb.mxu3 %v120_v11  ;;  %998 = vmatpush.msrb.mxu0 %v107_v13  ;;  %v324_v11 = vld [vmem:[#allocation7 + $0x6e8] sm:$0xff]  ;;  %v133_v13 = vld [vmem:[#allocation7 + $0xf0] sm:$0xff] }
  0xaa   :  { %1021 = vmatpush.msrb.mxu1 %v299_v14  ;;  %1044 = vmatpush.msrb.mxu2 %v491_v15  ;;  %v325_v14 = vld [vmem:[#allocation7 + $0x6f0] sm:$0xff]  ;;  %v312_v15 = vld [vmem:[#allocation7 + $0x688] sm:$0xff] }
  0xab   :  { %1067 = vmatpush.msrb.mxu3 %v108_v16  ;;  %930 = vmatmul.f32.vlgmr.msra.gmra.mxu1 %v3233_v52  ;;  %v504_v16 = vld [vmem:[#allocation7 + $0xc88] sm:$0xff] }
  0xac   :  { %953 = vmatmul.f32.vlgmr.msra.gmra.mxu2 %v3235_v57  ;;  %976 = vmatmul.f32.vlgmr.msra.gmra.mxu3 %v3239_v2 }
  0xad   :  { %1075 = vmatpush.msra.mxu0 %v480_v17  ;;  %1098 = vmatpush.msra.mxu1 %v672_v18  ;;  %v121_v17 = vld [vmem:[#allocation7 + $0x90] sm:$0xff] }
  0xae   :  { %1121 = vmatpush.msra.mxu2 %v289_v19  ;;  %1144 = vmatpush.msra.mxu3 %v481_v20  ;;  %v313_v18 = vld [vmem:[#allocation7 + $0x690] sm:$0xff]  ;;  %v300_v19 = vld [vmem:[#allocation7 + $0x628] sm:$0xff] }
  0xaf   :  { %910 = vmatmul.f32.gmra.mxu0 %v3251_v54  ;;  %1099 = vmatpush.msra.mxu1 %v660_v21  ;;  %v492_v20 = vld [vmem:[#allocation7 + $0xc28] sm:$0xff]  ;;  %v109_v21 = vld [vmem:[#allocation7 + $0x30] sm:$0xff] }
  0xb0   :  { %1076 = vmatpush.msra.mxu0 %v468_v22  ;;  %1122 = vmatpush.msra.mxu2 %v277_v23  ;;  %v301_v22 = vld [vmem:[#allocation7 + $0x630] sm:$0xff] }
  0xb1   :  { %1145 = vmatpush.msra.mxu3 %v469_v24  ;;  %1100 = vmatpush.msra.mxu1 %v648_v25  ;;  %v673_v23 = vld [vmem:[#allocation7 + $0x11d0] sm:$0xff]  ;;  %v290_v24 = vld [vmem:[#allocation7 + $0x5d8] sm:$0xff] }
  0xb2   :  { %1077 = vmatpush.msra.mxu0 %v456_v26  ;;  %1123 = vmatpush.msra.mxu2 %v265_v27  ;;  %v482_v25 = vld [vmem:[#allocation7 + $0xbd8] sm:$0xff] }
  0xb3   :  { %1146 = vmatpush.msra.mxu3 %v457_v28  ;;  %1101 = vmatpush.msra.mxu1 %v636_v29  ;;  %v674_v26 = vld [vmem:[#allocation7 + $0x11d8] sm:$0xff]  ;;  %v661_v28 = vld [vmem:[#allocation7 + $0x1170] sm:$0xff] }
  0xb4   :  { %1078 = vmatpush.msra.mxu0 %v444_v30  ;;  %1124 = vmatpush.msra.mxu2 %v253_v31  ;;  %v278_v27 = vld [vmem:[#allocation7 + $0x578] sm:$0xff]  ;;  %v649_v31 = vld [vmem:[#allocation7 + $0x1110] sm:$0xff] }
  0xb5   :  { %1147 = vmatpush.msra.mxu3 %v445_v32  ;;  %1102 = vmatpush.msra.mxu1 %v624_v33  ;;  %v470_v29 = vld [vmem:[#allocation7 + $0xb78] sm:$0xff] }
  0xb6   :  { %1079 = vmatpush.msra.mxu0 %v432_v34  ;;  %1125 = vmatpush.msra.mxu2 %v241_v35  ;;  %v662_v30 = vld [vmem:[#allocation7 + $0x1178] sm:$0xff] }
  0xb7   :  { %1148 = vmatpush.msra.mxu3 %v433_v36  ;;  %1103 = vmatpush.msra.mxu1 %v612_v37  ;;  %v266_v32 = vld [vmem:[#allocation7 + $0x518] sm:$0xff] }
  0xb8   :  { %1080 = vmatpush.msra.mxu0 %v420_v38  ;;  %1126 = vmatpush.msra.mxu2 %v229_v39  ;;  %v458_v33 = vld [vmem:[#allocation7 + $0xb18] sm:$0xff]  ;;  %v625_v38 = vld [vmem:[#allocation7 + $0x1050] sm:$0xff] }
  0xb9   :  { %1149 = vmatpush.msra.mxu3 %v421_v40  ;;  %1104 = vmatpush.msra.mxu1 %v600_v41  ;;  %v650_v34 = vld [vmem:[#allocation7 + $0x1118] sm:$0xff] }
  0xba   :  { %1081 = vmatpush.msra.mxu0 %v408_v42  ;;  %1127 = vmatpush.msra.mxu2 %v217_v43  ;;  %v254_v35 = vld [vmem:[#allocation7 + $0x4b8] sm:$0xff] }
  0xbb   :  { %1150 = vmatpush.msra.mxu3 %v409_v44  ;;  %1105 = vmatpush.msra.mxu1 %v588_v45  ;;  %v446_v36 = vld [vmem:[#allocation7 + $0xab8] sm:$0xff]  ;;  %v601_v44 = vld [vmem:[#allocation7 + $0xf90] sm:$0xff] }
  0xbc   :  { %1082 = vmatpush.msra.mxu0 %v396_v46  ;;  %1128 = vmatpush.msra.mxu2 %v205_v47  ;;  %v638_v37 = vld [vmem:[#allocation7 + $0x10b8] sm:$0xff] }
  0xbd   :  { %1151 = vmatpush.msra.mxu3 %v397_v48  ;;  %1106 = vmatpush.msra.mxu1 %v576_v49  ;;  %v434_v39 = vld [vmem:[#allocation7 + $0xa58] sm:$0xff]  ;;  %v589_v48 = vld [vmem:[#allocation7 + $0xf30] sm:$0xff] }
  0xbe   :  { %1083 = vmatpush.msra.mxu0 %v384_v50  ;;  %1129 = vmatpush.msra.mxu2 %v193_v51  ;;  %v626_v40 = vld [vmem:[#allocation7 + $0x1058] sm:$0xff] }
  0xbf   :  { %1152 = vmatpush.msra.mxu3 %v385_v53  ;;  %1107 = vmatpush.msra.mxu1 %v564_v55  ;;  %v230_v41 = vld [vmem:[#allocation7 + $0x3f8] sm:$0xff]  ;;  %v577_v53 = vld [vmem:[#allocation7 + $0xed0] sm:$0xff] }
  0xc0   :  { %1084 = vmatpush.msra.mxu0 %v372_v56  ;;  %1130 = vmatpush.msra.mxu2 %v181_v58  ;;  %v422_v42 = vld [vmem:[#allocation7 + $0x9f8] sm:$0xff]  ;;  %v565_v58 = vld [vmem:[#allocation7 + $0xe70] sm:$0xff] }
  0xc1   :  { %1153 = vmatpush.msra.mxu3 %v373_v59  ;;  %933 = vmatmul.f32.gmra.mxu1 %v3243_v7  ;;  %v614_v43 = vld [vmem:[#allocation7 + $0xff8] sm:$0xff] }
  0xc2   :  { %1085 = vmatpush.msra.mxu0 %v360_v60  ;;  %1108 = vmatpush.msra.mxu1 %v552_v61  ;;  %v218_v45 = vld [vmem:[#allocation7 + $0x398] sm:$0xff]  ;;  %v553_v61 = vld [vmem:[#allocation7 + $0xe10] sm:$0xff] }
  0xc3   :  { %1131 = vmatpush.msra.mxu2 %v169_v62  ;;  %1154 = vmatpush.msra.mxu3 %v361_v63  ;;  %v410_v46 = vld [vmem:[#allocation7 + $0x998] sm:$0xff] }
  0xc4   :  { %1086 = vmatpush.msra.mxu0 %v348_v0  ;;  %1109 = vmatpush.msra.mxu1 %v540_v1  ;;  %v602_v47 = vld [vmem:[#allocation7 + $0xf98] sm:$0xff]  ;;  %v541_v1 = vld [vmem:[#allocation7 + $0xdb0] sm:$0xff] }
  0xc5   :  { %1132 = vmatpush.msra.mxu2 %v157_v3  ;;  %1155 = vmatpush.msra.mxu3 %v349_v4  ;;  %v206_v49 = vld [vmem:[#allocation7 + $0x338] sm:$0xff] }
  0xc6   :  { %956 = vmatmul.f32.gmra.mxu2 %v3245_v12  ;;  %979 = vmatmul.f32.gmra.mxu3 %v3251_v54  ;;  %v398_v50 = vld [vmem:[#allocation7 + $0x938] sm:$0xff] }
  0xc7   :  { %1087 = vmatpush.msra.mxu0 %v336_v5  ;;  %1110 = vmatpush.msra.mxu1 %v528_v6  ;;  %v590_v51 = vld [vmem:[#allocation7 + $0xf38] sm:$0xff]  ;;  %v529_v6 = vld [vmem:[#allocation7 + $0xd50] sm:$0xff] }
  0xc8   :  { %1133 = vmatpush.msra.mxu2 %v145_v8  ;;  %1156 = vmatpush.msra.mxu3 %v337_v9  ;;  %v386_v55 = vld [vmem:[#allocation7 + $0x8d8] sm:$0xff] }
  0xc9   :  { %999 = vmatmul.f32.vlgmr.msrb.gmra.mxu0 %v3233_v52  ;;  %1111 = vmatpush.msra.mxu1 %v516_v10  ;;  %v578_v56 = vld [vmem:[#allocation7 + $0xed8] sm:$0xff] }
  0xca   :  { %1088 = vmatpush.msra.mxu0 %v324_v11  ;;  %1134 = vmatpush.msra.mxu2 %v133_v13  ;;  %v182_v59 = vld [vmem:[#allocation7 + $0x278] sm:$0xff]  ;;  %v3278_v11 = vld [vmem:[#allocation4 + $0x18] sm:$0xff]  ;;  %v517_v13 = vld [vmem:[#allocation7 + $0xcf0] sm:$0xff] }
  0xcb   :  { %1157 = vmatpush.msra.mxu3 %v325_v14  ;;  %1022 = vmatmul.f32.vlgmr.msrb.gmra.mxu1 %v3235_v57  ;;  %v566_v60 = vld [vmem:[#allocation7 + $0xe78] sm:$0xff] }
  0xcc   :  { %1089 = vmatpush.msra.mxu0 %v312_v15  ;;  %1112 = vmatpush.msra.mxu1 %v504_v16  ;;  %v170_v62 = vld [vmem:[#allocation7 + $0x218] sm:$0xff] }
  0xcd   :  { %1135 = vmatpush.msra.mxu2 %v121_v17  ;;  %1158 = vmatpush.msra.mxu3 %v313_v18  ;;  %v362_v63 = vld [vmem:[#allocation7 + $0x818] sm:$0xff]  ;;  %v505_v17 = vld [vmem:[#allocation7 + $0xc90] sm:$0xff] }
  0xce   :  { %1090 = vmatpush.msra.mxu0 %v300_v19  ;;  %1113 = vmatpush.msra.mxu1 %v492_v20  ;;  %v554_v0 = vld [vmem:[#allocation7 + $0xe18] sm:$0xff] }
  0xcf   :  { %1136 = vmatpush.msra.mxu2 %v109_v21  ;;  %1159 = vmatpush.msra.mxu3 %v301_v22  ;;  %v158_v3 = vld [vmem:[#allocation7 + $0x1b8] sm:$0xff]  ;;  %v493_v21 = vld [vmem:[#allocation7 + $0xc30] sm:$0xff] }
  0xd0   :  { %1045 = vmatmul.f32.vlgmr.msrb.gmra.mxu2 %v3239_v2  ;;  %1068 = vmatmul.f32.vlgmr.msrb.gmra.mxu3 %v3233_v52  ;;  %v637_v52 = vld [vmem:[#allocation7 + $0x10b0] sm:$0xff]  ;;  %v350_v4 = vld [vmem:[#allocation7 + $0x7b8] sm:$0xff] }
  0xd1   :  { %1167 = vmatpush.msrb.mxu0 %v673_v23  ;;  %1190 = vmatpush.msrb.mxu1 %v290_v24  ;;  %v542_v5 = vld [vmem:[#allocation7 + $0xdb8] sm:$0xff] }
  0xd2   :  { %1213 = vmatpush.msrb.mxu2 %v482_v25  ;;  %1236 = vmatpush.msrb.mxu3 %v674_v26  ;;  %v146_v8 = vld [vmem:[#allocation7 + $0x158] sm:$0xff]  ;;  %v291_v25 = vld [vmem:[#allocation7 + $0x5e0] sm:$0xff] }
  0xd3   :  { %1002 = vmatmul.f32.gmra.mxu0 %v3243_v7  ;;  %1191 = vmatpush.msrb.mxu1 %v278_v27  ;;  %v242_v7 = vld [vmem:[#allocation7 + $0x458] sm:$0xff]  ;;  %v483_v26 = vld [vmem:[#allocation7 + $0xbe0] sm:$0xff] }
  0xd4   :  { %1168 = vmatpush.msrb.mxu0 %v661_v28  ;;  %1214 = vmatpush.msrb.mxu2 %v470_v29  ;;  %v338_v9 = vld [vmem:[#allocation7 + $0x758] sm:$0xff]  ;;  %v675_v27 = vld [vmem:[#allocation7 + $0x11e0] sm:$0xff]  ;;  %v292_v28 = vld [vmem:[#allocation7 + $0x5e8] sm:$0xff] }
  0xd5   :  { %1237 = vmatpush.msrb.mxu3 %v662_v30  ;;  %1025 = vmatmul.f32.gmra.mxu1 %v3245_v12  ;;  %v613_v12 = vld [vmem:[#allocation7 + $0xff0] sm:$0xff]  ;;  %v530_v10 = vld [vmem:[#allocation7 + $0xd58] sm:$0xff] }
  0xd6   :  { %1169 = vmatpush.msrb.mxu0 %v649_v31  ;;  %1192 = vmatpush.msrb.mxu1 %v266_v32  ;;  %v134_v14 = vld [vmem:[#allocation7 + $0xf8] sm:$0xff]  ;;  %v3281_v29 = vld [vmem:[#allocation4] sm:$0xff]  ;;  %v471_v31 = vld [vmem:[#allocation7 + $0xb80] sm:$0xff] }
  0xd7   :  { %1215 = vmatpush.msrb.mxu2 %v458_v33  ;;  %1238 = vmatpush.msrb.mxu3 %v650_v34  ;;  %v326_v15 = vld [vmem:[#allocation7 + $0x6f8] sm:$0xff]  ;;  %v279_v32 = vld [vmem:[#allocation7 + $0x580] sm:$0xff]  ;;  %v280_v34 = vld [vmem:[#allocation7 + $0x588] sm:$0xff] }
  0xd8   :  { %1170 = vmatpush.msrb.mxu0 %v637_v52  ;;  %1193 = vmatpush.msrb.mxu1 %v254_v35  ;;  %v518_v16 = vld [vmem:[#allocation7 + $0xcf8] sm:$0xff]  ;;  %v663_v33 = vld [vmem:[#allocation7 + $0x1180] sm:$0xff]  ;;  %v3287_v52 = vld [vmem:[#allocation4 + $0x20] sm:$0xff] }
  0xd9   :  { %1216 = vmatpush.msrb.mxu2 %v446_v36  ;;  %1239 = vmatpush.msrb.mxu3 %v638_v37  ;;  %v122_v18 = vld [vmem:[#allocation7 + $0x98] sm:$0xff]  ;;  %v267_v35 = vld [vmem:[#allocation7 + $0x520] sm:$0xff] }
  0xda   :  { %1171 = vmatpush.msrb.mxu0 %v625_v38  ;;  %1194 = vmatpush.msrb.mxu1 %v242_v7  ;;  %v314_v19 = vld [vmem:[#allocation7 + $0x698] sm:$0xff]  ;;  %v459_v36 = vld [vmem:[#allocation7 + $0xb20] sm:$0xff]  ;;  %v268_v38 = vld [vmem:[#allocation7 + $0x528] sm:$0xff] }
  0xdb   :  { %1217 = vmatpush.msrb.mxu2 %v434_v39  ;;  %1240 = vmatpush.msrb.mxu3 %v626_v40  ;;  %v506_v20 = vld [vmem:[#allocation7 + $0xc98] sm:$0xff]  ;;  %v651_v37 = vld [vmem:[#allocation7 + $0x1120] sm:$0xff] }
  0xdc   :  { %1091 = vmatmul.f32.vlgmr.msra.gmra.mxu0 %v3235_v57  ;;  %1195 = vmatpush.msrb.mxu1 %v230_v41  ;;  %v194_v57 = vld [vmem:[#allocation7 + $0x2d8] sm:$0xff]  ;;  %v255_v7 = vld [vmem:[#allocation7 + $0x4c0] sm:$0xff]  ;;  %v256_v41 = vld [vmem:[#allocation7 + $0x4c8] sm:$0xff] }
  0xdd   :  { %1172 = vmatpush.msrb.mxu0 %v613_v12  ;;  %1218 = vmatpush.msrb.mxu2 %v422_v42  ;;  %v110_v22 = vld [vmem:[#allocation7 + $0x38] sm:$0xff]  ;;  %v447_v39 = vld [vmem:[#allocation7 + $0xac0] sm:$0xff] }
  0xde   :  { %1241 = vmatpush.msrb.mxu3 %v614_v43  ;;  %1114 = vmatmul.f32.vlgmr.msra.gmra.mxu1 %v3239_v2  ;;  %v374_v2 = vld [vmem:[#allocation7 + $0x878] sm:$0xff]  ;;  %v639_v40 = vld [vmem:[#allocation7 + $0x10c0] sm:$0xff] }
  0xdf   :  { %1173 = vmatpush.msrb.mxu0 %v601_v44  ;;  %1196 = vmatpush.msrb.mxu1 %v218_v45  ;;  %v302_v23 = vld [vmem:[#allocation7 + $0x638] sm:$0xff]  ;;  %v243_v12 = vld [vmem:[#allocation7 + $0x460] sm:$0xff]  ;;  %v244_v44 = vld [vmem:[#allocation7 + $0x468] sm:$0xff] }
  0xe0   :  { %1219 = vmatpush.msrb.mxu2 %v410_v46  ;;  %1242 = vmatpush.msrb.mxu3 %v602_v47  ;;  %v494_v24 = vld [vmem:[#allocation7 + $0xc38] sm:$0xff]  ;;  %v435_v42 = vld [vmem:[#allocation7 + $0xa60] sm:$0xff]  ;;  %v232_v47 = vld [vmem:[#allocation7 + $0x408] sm:$0xff] }
  0xe1   :  { %1174 = vmatpush.msrb.mxu0 %v589_v48  ;;  %1197 = vmatpush.msrb.mxu1 %v206_v49  ;;  %v3284_v30 = vld [vmem:[#allocation4 + $0x8] sm:$0xff]  ;;  %v627_v43 = vld [vmem:[#allocation7 + $0x1060] sm:$0xff] }
  0xe2   :  { %1220 = vmatpush.msrb.mxu2 %v398_v50  ;;  %1243 = vmatpush.msrb.mxu3 %v590_v51  ;;  %v423_v45 = vld [vmem:[#allocation7 + $0xa00] sm:$0xff] }
  0xe3   :  { %1175 = vmatpush.msrb.mxu0 %v577_v53  ;;  %1198 = vmatpush.msrb.mxu1 %v194_v57  ;;  %v615_v46 = vld [vmem:[#allocation7 + $0x1000] sm:$0xff]  ;;  %v220_v53 = vld [vmem:[#allocation7 + $0x3a8] sm:$0xff] }
  0xe4   :  { %1221 = vmatpush.msrb.mxu2 %v386_v55  ;;  %1244 = vmatpush.msrb.mxu3 %v578_v56  ;;  %v3291_v48 = vld [vmem:[#allocation4 + $0x10] sm:$0xff] }
  0xe5   :  { %1176 = vmatpush.msrb.mxu0 %v565_v58  ;;  %1199 = vmatpush.msrb.mxu1 %v182_v59  ;;  %v219_v49 = vld [vmem:[#allocation7 + $0x3a0] sm:$0xff]  ;;  %v208_v58 = vld [vmem:[#allocation7 + $0x348] sm:$0xff] }
  0xe6   :  { %1222 = vmatpush.msrb.mxu2 %v374_v2  ;;  %1245 = vmatpush.msrb.mxu3 %v566_v60  ;;  %v411_v50 = vld [vmem:[#allocation7 + $0x9a0] sm:$0xff] }
  0xe7   :  { %1177 = vmatpush.msrb.mxu0 %v553_v61  ;;  %1200 = vmatpush.msrb.mxu1 %v170_v62  ;;  %v603_v51 = vld [vmem:[#allocation7 + $0xfa0] sm:$0xff]  ;;  %v196_v61 = vld [vmem:[#allocation7 + $0x2e8] sm:$0xff] }
  0xe8   :  { %1223 = vmatpush.msrb.mxu2 %v362_v63  ;;  %1246 = vmatpush.msrb.mxu3 %v554_v0  ;;  %v207_v57 = vld [vmem:[#allocation7 + $0x340] sm:$0xff] }
  0xe9   :  { %1178 = vmatpush.msrb.mxu0 %v541_v1  ;;  %1201 = vmatpush.msrb.mxu1 %v158_v3  ;;  %v399_v55 = vld [vmem:[#allocation7 + $0x940] sm:$0xff]  ;;  %v184_v1 = vld [vmem:[#allocation7 + $0x288] sm:$0xff] }
  0xea   :  { %1224 = vmatpush.msrb.mxu2 %v350_v4  ;;  %1247 = vmatpush.msrb.mxu3 %v542_v5  ;;  %v591_v56 = vld [vmem:[#allocation7 + $0xf40] sm:$0xff] }
  0xeb   :  { %1048 = vmatmul.f32.gmra.mxu2 %v3251_v54  ;;  %1071 = vmatmul.f32.gmra.mxu3 %v3278_v11  ;;  %v195_v59 = vld [vmem:[#allocation7 + $0x2e0] sm:$0xff] }
  0xec   :  { %1179 = vmatpush.msrb.mxu0 %v529_v6  ;;  %1202 = vmatpush.msrb.mxu1 %v146_v8  ;;  %v387_v2 = vld [vmem:[#allocation7 + $0x8e0] sm:$0xff]  ;;  %v172_v6 = vld [vmem:[#allocation7 + $0x228] sm:$0xff] }
  0xed   :  { %1225 = vmatpush.msrb.mxu2 %v338_v9  ;;  %1248 = vmatpush.msrb.mxu3 %v530_v10  ;;  %v579_v60 = vld [vmem:[#allocation7 + $0xee0] sm:$0xff] }
  0xee   :  { %1180 = vmatpush.msrb.mxu0 %v517_v13  ;;  %1203 = vmatpush.msrb.mxu1 %v134_v14  ;;  %v183_v62 = vld [vmem:[#allocation7 + $0x280] sm:$0xff]  ;;  %v160_v13 = vld [vmem:[#allocation7 + $0x1c8] sm:$0xff] }
  0xef   :  { %1226 = vmatpush.msrb.mxu2 %v326_v15  ;;  %1249 = vmatpush.msrb.mxu3 %v518_v16  ;;  %v375_v63 = vld [vmem:[#allocation7 + $0x880] sm:$0xff] }
  0xf0   :  { %1181 = vmatpush.msrb.mxu0 %v505_v17  ;;  %1204 = vmatpush.msrb.mxu1 %v122_v18  ;;  %v567_v0 = vld [vmem:[#allocation7 + $0xe80] sm:$0xff]  ;;  %v148_v17 = vld [vmem:[#allocation7 + $0x168] sm:$0xff] }
  0xf1   :  { %1227 = vmatpush.msrb.mxu2 %v314_v19  ;;  %1250 = vmatpush.msrb.mxu3 %v506_v20  ;;  %v171_v3 = vld [vmem:[#allocation7 + $0x220] sm:$0xff] }
  0xf2   :  { %1182 = vmatpush.msrb.mxu0 %v493_v21  ;;  %1205 = vmatpush.msrb.mxu1 %v110_v22  ;;  %v363_v4 = vld [vmem:[#allocation7 + $0x820] sm:$0xff]  ;;  %v136_v21 = vld [vmem:[#allocation7 + $0x108] sm:$0xff] }
  0xf3   :  { %1228 = vmatpush.msrb.mxu2 %v302_v23  ;;  %1251 = vmatpush.msrb.mxu3 %v494_v24  ;;  %v555_v5 = vld [vmem:[#allocation7 + $0xe20] sm:$0xff] }
  0xf4   :  { %1137 = vmatmul.f32.vlgmr.msra.gmra.mxu2 %v3281_v29  ;;  %1160 = vmatmul.f32.vlgmr.msra.gmra.mxu3 %v3284_v30  ;;  %v159_v8 = vld [vmem:[#allocation7 + $0x1c0] sm:$0xff] }
  0xf5   :  { %1259 = vmatpush.msra.mxu0 %v291_v25  ;;  %1282 = vmatpush.msra.mxu1 %v483_v26  ;;  %v351_v9 = vld [vmem:[#allocation7 + $0x7c0] sm:$0xff]  ;;  %v124_v25 = vld [vmem:[#allocation7 + $0xa8] sm:$0xff] }
  0xf6   :  { %1305 = vmatpush.msra.mxu2 %v675_v27  ;;  %1328 = vmatpush.msra.mxu3 %v292_v28  ;;  %v543_v10 = vld [vmem:[#allocation7 + $0xdc0] sm:$0xff] }
  0xf7   :  { %1094 = vmatmul.f32.gmra.mxu0 %v3287_v52  ;;  %1283 = vmatpush.msra.mxu1 %v471_v31  ;;  %v147_v14 = vld [vmem:[#allocation7 + $0x160] sm:$0xff]  ;;  %v112_v31 = vld [vmem:[#allocation7 + $0x48] sm:$0xff] }
  0xf8   :  { %1260 = vmatpush.msra.mxu0 %v279_v32  ;;  %1306 = vmatpush.msra.mxu2 %v663_v33  ;;  %v339_v15 = vld [vmem:[#allocation7 + $0x760] sm:$0xff]  ;;  %v484_v32 = vld [vmem:[#allocation7 + $0xbe8] sm:$0xff]  ;;  %v3300_v33 = vld [vmem:[#allocation4 + $0x28] sm:$0xff] }
  0xf9   :  { %1329 = vmatpush.msra.mxu3 %v280_v34  ;;  %1117 = vmatmul.f32.gmra.mxu1 %v3251_v54  ;;  %v231_v54 = vld [vmem:[#allocation7 + $0x400] sm:$0xff]  ;;  %v676_v34 = vld [vmem:[#allocation7 + $0x11e8] sm:$0xff] }
  0xfa   :  { %1261 = vmatpush.msra.mxu0 %v267_v35  ;;  %1284 = vmatpush.msra.mxu1 %v459_v36  ;;  %v531_v16 = vld [vmem:[#allocation7 + $0xd60] sm:$0xff]  ;;  %v293_v35 = vld [vmem:[#allocation7 + $0x5f0] sm:$0xff] }
  0xfb   :  { %1307 = vmatpush.msra.mxu2 %v651_v37  ;;  %1330 = vmatpush.msra.mxu3 %v268_v38  ;;  %v135_v18 = vld [vmem:[#allocation7 + $0x100] sm:$0xff]  ;;  %v485_v36 = vld [vmem:[#allocation7 + $0xbf0] sm:$0xff]  ;;  %v472_v37 = vld [vmem:[#allocation7 + $0xb88] sm:$0xff] }
  0xfc   :  { %1262 = vmatpush.msra.mxu0 %v255_v7  ;;  %1285 = vmatpush.msra.mxu1 %v447_v39  ;;  %v327_v19 = vld [vmem:[#allocation7 + $0x700] sm:$0xff]  ;;  %v664_v38 = vld [vmem:[#allocation7 + $0x1188] sm:$0xff]  ;;  %v281_v7 = vld [vmem:[#allocation7 + $0x590] sm:$0xff] }
  0xfd   :  { %1308 = vmatpush.msra.mxu2 %v639_v40  ;;  %1331 = vmatpush.msra.mxu3 %v256_v41  ;;  %v519_v20 = vld [vmem:[#allocation7 + $0xd00] sm:$0xff]  ;;  %v473_v39 = vld [vmem:[#allocation7 + $0xb90] sm:$0xff]  ;;  %v460_v40 = vld [vmem:[#allocation7 + $0xb28] sm:$0xff] }
  0xfe   :  { %1263 = vmatpush.msra.mxu0 %v243_v12  ;;  %1286 = vmatpush.msra.mxu1 %v435_v42  ;;  %v123_v22 = vld [vmem:[#allocation7 + $0xa0] sm:$0xff]  ;;  %v652_v41 = vld [vmem:[#allocation7 + $0x1128] sm:$0xff]  ;;  %v269_v12 = vld [vmem:[#allocation7 + $0x530] sm:$0xff] }
  0xff   :  { %1309 = vmatpush.msra.mxu2 %v627_v43  ;;  %1332 = vmatpush.msra.mxu3 %v244_v44  ;;  %v315_v23 = vld [vmem:[#allocation7 + $0x6a0] sm:$0xff]  ;;  %v461_v42 = vld [vmem:[#allocation7 + $0xb30] sm:$0xff]  ;;  %v448_v43 = vld [vmem:[#allocation7 + $0xac8] sm:$0xff] }
 0x100   :  { %1183 = vmatmul.f32.vlgmr.msrb.gmra.mxu0 %v3291_v48  ;;  %1287 = vmatpush.msra.mxu1 %v423_v45  ;;  %v507_v24 = vld [vmem:[#allocation7 + $0xca0] sm:$0xff]  ;;  %v640_v44 = vld [vmem:[#allocation7 + $0x10c8] sm:$0xff]  ;;  %v257_v45 = vld [vmem:[#allocation7 + $0x4d0] sm:$0xff] }
 0x101   :  { %1264 = vmatpush.msra.mxu0 %v231_v54  ;;  %1310 = vmatpush.msra.mxu2 %v615_v46  ;;  %v111_v26 = vld [vmem:[#allocation7 + $0x40] sm:$0xff]  ;;  %v449_v54 = vld [vmem:[#allocation7 + $0xad0] sm:$0xff]  ;;  %v436_v46 = vld [vmem:[#allocation7 + $0xa68] sm:$0xff] }
 0x102   :  { %1333 = vmatpush.msra.mxu3 %v232_v47  ;;  %1140 = vmatmul.f32.gmra.mxu2 %v3278_v11  ;;  %v303_v27 = vld [vmem:[#allocation7 + $0x640] sm:$0xff]  ;;  %v628_v47 = vld [vmem:[#allocation7 + $0x1068] sm:$0xff] }
 0x103   :  { %1265 = vmatpush.msra.mxu0 %v219_v49  ;;  %1288 = vmatpush.msra.mxu1 %v411_v50  ;;  %v495_v28 = vld [vmem:[#allocation7 + $0xc40] sm:$0xff]  ;;  %v245_v49 = vld [vmem:[#allocation7 + $0x470] sm:$0xff] }
 0x104   :  { %1311 = vmatpush.msra.mxu2 %v603_v51  ;;  %1334 = vmatpush.msra.mxu3 %v220_v53  ;;  %v437_v50 = vld [vmem:[#allocation7 + $0xa70] sm:$0xff]  ;;  %v424_v51 = vld [vmem:[#allocation7 + $0xa08] sm:$0xff] }
 0x105   :  { %1163 = vmatmul.f32.gmra.mxu3 %v3287_v52  ;;  %1266 = vmatpush.msra.mxu0 %v207_v57  ;;  %v616_v53 = vld [vmem:[#allocation7 + $0x1008] sm:$0xff]  ;;  %v233_v57 = vld [vmem:[#allocation7 + $0x410] sm:$0xff] }
 0x106   :  { %1289 = vmatpush.msra.mxu1 %v399_v55  ;;  %1312 = vmatpush.msra.mxu2 %v591_v56  ;;  %v425_v55 = vld [vmem:[#allocation7 + $0xa10] sm:$0xff]  ;;  %v412_v56 = vld [vmem:[#allocation7 + $0x9a8] sm:$0xff] }
 0x107   :  { %1335 = vmatpush.msra.mxu3 %v208_v58  ;;  %1267 = vmatpush.msra.mxu0 %v195_v59  ;;  %v604_v58 = vld [vmem:[#allocation7 + $0xfa8] sm:$0xff]  ;;  %v221_v59 = vld [vmem:[#allocation7 + $0x3b0] sm:$0xff] }
 0x108   :  { %1290 = vmatpush.msra.mxu1 %v387_v2  ;;  %1313 = vmatpush.msra.mxu2 %v579_v60  ;;  %v413_v2 = vld [vmem:[#allocation7 + $0x9b0] sm:$0xff]  ;;  %v400_v60 = vld [vmem:[#allocation7 + $0x948] sm:$0xff] }
 0x109   :  { %1336 = vmatpush.msra.mxu3 %v196_v61  ;;  %1268 = vmatpush.msra.mxu0 %v183_v62  ;;  %v592_v61 = vld [vmem:[#allocation7 + $0xf48] sm:$0xff]  ;;  %v209_v62 = vld [vmem:[#allocation7 + $0x350] sm:$0xff] }
 0x10a   :  { %1291 = vmatpush.msra.mxu1 %v375_v63  ;;  %1314 = vmatpush.msra.mxu2 %v567_v0  ;;  %v401_v63 = vld [vmem:[#allocation7 + $0x950] sm:$0xff]  ;;  %v580_v0 = vld [vmem:[#allocation7 + $0xee8] sm:$0xff] }
 0x10b   :  { %1337 = vmatpush.msra.mxu3 %v184_v1  ;;  %1229 = vmatmul.f32.vlgmr.msrb.gmra.mxu2 %v3284_v30  ;;  %v388_v1 = vld [vmem:[#allocation7 + $0x8e8] sm:$0xff] }
 0x10c   :  { %1269 = vmatpush.msra.mxu0 %v171_v3  ;;  %1292 = vmatpush.msra.mxu1 %v363_v4  ;;  %v197_v3 = vld [vmem:[#allocation7 + $0x2f0] sm:$0xff] }
 0x10d   :  { %1315 = vmatpush.msra.mxu2 %v555_v5  ;;  %1338 = vmatpush.msra.mxu3 %v172_v6  ;;  %v389_v4 = vld [vmem:[#allocation7 + $0x8f0] sm:$0xff]  ;;  %v376_v5 = vld [vmem:[#allocation7 + $0x888] sm:$0xff] }
 0x10e   :  { %1252 = vmatmul.f32.vlgmr.msrb.gmra.mxu3 %v3291_v48  ;;  %1270 = vmatpush.msra.mxu0 %v159_v8  ;;  %v568_v6 = vld [vmem:[#allocation7 + $0xe88] sm:$0xff]  ;;  %v185_v8 = vld [vmem:[#allocation7 + $0x290] sm:$0xff] }
 0x10f   :  { %1293 = vmatpush.msra.mxu1 %v351_v9  ;;  %1316 = vmatpush.msra.mxu2 %v543_v10  ;;  %v377_v9 = vld [vmem:[#allocation7 + $0x890] sm:$0xff]  ;;  %v364_v10 = vld [vmem:[#allocation7 + $0x828] sm:$0xff] }
 0x110   :  { %1339 = vmatpush.msra.mxu3 %v160_v13  ;;  %1206 = vmatmul.f32.vlgmr.msrb.gmra.mxu1 %v3281_v29  ;;  %v556_v13 = vld [vmem:[#allocation7 + $0xe28] sm:$0xff] }
 0x111   :  { %1271 = vmatpush.msra.mxu0 %v147_v14  ;;  %1294 = vmatpush.msra.mxu1 %v339_v15  ;;  %v173_v14 = vld [vmem:[#allocation7 + $0x230] sm:$0xff] }
 0x112   :  { %1317 = vmatpush.msra.mxu2 %v531_v16  ;;  %1340 = vmatpush.msra.mxu3 %v148_v17  ;;  %v365_v15 = vld [vmem:[#allocation7 + $0x830] sm:$0xff]  ;;  %v352_v16 = vld [vmem:[#allocation7 + $0x7c8] sm:$0xff] }
 0x113   :  { %1272 = vmatpush.msra.mxu0 %v135_v18  ;;  %1295 = vmatpush.msra.mxu1 %v327_v19  ;;  %v544_v17 = vld [vmem:[#allocation7 + $0xdc8] sm:$0xff]  ;;  %v161_v18 = vld [vmem:[#allocation7 + $0x1d0] sm:$0xff] }
 0x114   :  { %1318 = vmatpush.msra.mxu2 %v519_v20  ;;  %1341 = vmatpush.msra.mxu3 %v136_v21  ;;  %v353_v19 = vld [vmem:[#allocation7 + $0x7d0] sm:$0xff]  ;;  %v340_v20 = vld [vmem:[#allocation7 + $0x768] sm:$0xff] }
 0x115   :  { %1232 = vmatmul.f32.gmra.mxu2 %v3287_v52  ;;  %1273 = vmatpush.msra.mxu0 %v123_v22  ;;  %v532_v21 = vld [vmem:[#allocation7 + $0xd68] sm:$0xff]  ;;  %v149_v22 = vld [vmem:[#allocation7 + $0x170] sm:$0xff] }
 0x116   :  { %1296 = vmatpush.msra.mxu1 %v315_v23  ;;  %1319 = vmatpush.msra.mxu2 %v507_v24  ;;  %v341_v23 = vld [vmem:[#allocation7 + $0x770] sm:$0xff]  ;;  %v328_v24 = vld [vmem:[#allocation7 + $0x708] sm:$0xff] }
 0x117   :  { %1342 = vmatpush.msra.mxu3 %v124_v25  ;;  %1274 = vmatpush.msra.mxu0 %v111_v26  ;;  %v520_v25 = vld [vmem:[#allocation7 + $0xd08] sm:$0xff]  ;;  %v137_v26 = vld [vmem:[#allocation7 + $0x110] sm:$0xff] }
 0x118   :  { %1255 = vmatmul.f32.gmra.mxu3 %v3300_v33  ;;  %1297 = vmatpush.msra.mxu1 %v303_v27  ;;  %v329_v27 = vld [vmem:[#allocation7 + $0x710] sm:$0xff] }
 0x119   :  { %1320 = vmatpush.msra.mxu2 %v495_v28  ;;  %1343 = vmatpush.msra.mxu3 %v112_v31  ;;  %v316_v28 = vld [vmem:[#allocation7 + $0x6a8] sm:$0xff] }
 0x11a   :  { %1209 = vmatmul.f32.gmra.mxu1 %v3278_v11  ;;  %1351 = vmatpush.msrb.mxu0 %v484_v32  ;;  %v508_v31 = vld [vmem:[#allocation7 + $0xca8] sm:$0xff]  ;;  %v125_v32 = vld [vmem:[#allocation7 + $0xb0] sm:$0xff] }
 0x11b   :  { %1374 = vmatpush.msrb.mxu1 %v676_v34  ;;  %1397 = vmatpush.msrb.mxu2 %v293_v35  ;;  %v317_v34 = vld [vmem:[#allocation7 + $0x6b0] sm:$0xff]  ;;  %v304_v35 = vld [vmem:[#allocation7 + $0x648] sm:$0xff] }
 0x11c   :  { %1420 = vmatpush.msrb.mxu3 %v485_v36  ;;  %1186 = vmatmul.f32.gmra.mxu0 %v3300_v33  ;;  %v496_v36 = vld [vmem:[#allocation7 + $0xc48] sm:$0xff] }
 0x11d   :  { %1352 = vmatpush.msrb.mxu0 %v472_v37  ;;  %1375 = vmatpush.msrb.mxu1 %v664_v38  ;;  %v113_v37 = vld [vmem:[#allocation7 + $0x50] sm:$0xff] }
 0x11e   :  { %1398 = vmatpush.msrb.mxu2 %v281_v7  ;;  %1421 = vmatpush.msrb.mxu3 %v473_v39  ;;  %v305_v38 = vld [vmem:[#allocation7 + $0x650] sm:$0xff]  ;;  %v294_v39 = vld [vmem:[#allocation7 + $0x5f8] sm:$0xff] }
 0x11f   :  { %1353 = vmatpush.msrb.mxu0 %v460_v40  ;;  %1376 = vmatpush.msrb.mxu1 %v652_v41  ;;  %v677_v7 = vld [vmem:[#allocation7 + $0x11f0] sm:$0xff]  ;;  %v486_v40 = vld [vmem:[#allocation7 + $0xbf8] sm:$0xff] }
 0x120   :  { %1399 = vmatpush.msrb.mxu2 %v269_v12  ;;  %1422 = vmatpush.msrb.mxu3 %v461_v42  ;;  %v678_v41 = vld [vmem:[#allocation7 + $0x11f8] sm:$0xff]  ;;  %v3313_v12 = vpop.f32.mrf.mxu1  ;;  %v665_v42 = vld [vmem:[#allocation7 + $0x1190] sm:$0xff] }
 0x121   :  { %1354 = vmatpush.msrb.mxu0 %v448_v43  ;;  %1377 = vmatpush.msrb.mxu1 %v640_v44  ;;  %v282_v43 = vld [vmem:[#allocation7 + $0x598] sm:$0xff] }
 0x122   :  { %1400 = vmatpush.msrb.mxu2 %v257_v45  ;;  %1423 = vmatpush.msrb.mxu3 %v449_v54  ;;  %v474_v44 = vld [vmem:[#allocation7 + $0xb98] sm:$0xff]  ;;  %v653_v54 = vld [vmem:[#allocation7 + $0x1130] sm:$0xff] }
 0x123   :  { %1355 = vmatpush.msrb.mxu0 %v436_v46  ;;  %1378 = vmatpush.msrb.mxu1 %v628_v47  ;;  %v666_v45 = vld [vmem:[#allocation7 + $0x1198] sm:$0xff]  ;;  %v3317_v47 = vpop.f32.mrf.mxu0 }
 0x124   :  { %1401 = vmatpush.msrb.mxu2 %v245_v49  ;;  %1424 = vmatpush.msrb.mxu3 %v437_v50  ;;  %v270_v46 = vld [vmem:[#allocation7 + $0x538] sm:$0xff] }
 0x125   :  { %1356 = vmatpush.msrb.mxu0 %v424_v51  ;;  %1379 = vmatpush.msrb.mxu1 %v616_v53  ;;  %v462_v49 = vld [vmem:[#allocation7 + $0xb38] sm:$0xff]  ;;  %v3319_v51 = vpop.f32.mrf.mxu2  ;;  %v641_v53 = vld [vmem:[#allocation7 + $0x10d0] sm:$0xff] }
 0x126   :  { %1402 = vmatpush.msrb.mxu2 %v233_v57  ;;  %1425 = vmatpush.msrb.mxu3 %v425_v55  ;;  %v654_v50 = vld [vmem:[#allocation7 + $0x1138] sm:$0xff] }
 0x127   :  { %1357 = vmatpush.msrb.mxu0 %v412_v56  ;;  %1380 = vmatpush.msrb.mxu1 %v604_v58  ;;  %v258_v57 = vld [vmem:[#allocation7 + $0x4d8] sm:$0xff] }
 0x128   :  { %1403 = vmatpush.msrb.mxu2 %v221_v59  ;;  %1426 = vmatpush.msrb.mxu3 %v413_v2  ;;  %v450_v55 = vld [vmem:[#allocation7 + $0xad8] sm:$0xff]  ;;  %v629_v59 = vld [vmem:[#allocation7 + $0x1070] sm:$0xff] }
 0x129   :  { %1358 = vmatpush.msrb.mxu0 %v400_v60  ;;  %1381 = vmatpush.msrb.mxu1 %v592_v61  ;;  %v642_v56 = vld [vmem:[#allocation7 + $0x10d8] sm:$0xff]  ;;  %v3321_v60 = vpop.f32.mrf.mxu3 }
 0x12a   :  { %1404 = vmatpush.msrb.mxu2 %v209_v62  ;;  %1427 = vmatpush.msrb.mxu3 %v401_v63  ;;  %v246_v58 = vld [vmem:[#allocation7 + $0x478] sm:$0xff]  ;;  %v617_v62 = vld [vmem:[#allocation7 + $0x1010] sm:$0xff] }
 0x12b   :  { %1275 = vmatmul.f32.vlgmr.msra.gmra.mxu0 %v3281_v29  ;;  %1382 = vmatpush.msrb.mxu1 %v580_v0  ;;  %v438_v2 = vld [vmem:[#allocation7 + $0xa78] sm:$0xff]  ;;  %v3324_v0 = vpop.f32.mrf.mxu1 }
 0x12c   :  { %1359 = vmatpush.msrb.mxu0 %v388_v1  ;;  %1405 = vmatpush.msrb.mxu2 %v197_v3  ;;  %v630_v61 = vld [vmem:[#allocation7 + $0x1078] sm:$0xff] }
 0x12d   :  { %1428 = vmatpush.msrb.mxu3 %v389_v4  ;;  %1298 = vmatmul.f32.vlgmr.msra.gmra.mxu1 %v3284_v30  ;;  %v234_v63 = vld [vmem:[#allocation7 + $0x418] sm:$0xff]  ;;  %v605_v4 = vld [vmem:[#allocation7 + $0xfb0] sm:$0xff] }
 0x12e   :  { %1360 = vmatpush.msrb.mxu0 %v376_v5  ;;  %1383 = vmatpush.msrb.mxu1 %v568_v6  ;;  %v426_v1 = vld [vmem:[#allocation7 + $0xa18] sm:$0xff]  ;;  %v3327_v6 = vpop.f32.mrf.mxu2 }
 0x12f   :  { %1406 = vmatpush.msrb.mxu2 %v185_v8  ;;  %1429 = vmatpush.msrb.mxu3 %v377_v9  ;;  %v618_v3 = vld [vmem:[#allocation7 + $0x1018] sm:$0xff] }
 0x130   :  { %1321 = vmatmul.f32.vlgmr.msra.gmra.mxu2 %v3291_v48  ;;  %1361 = vmatpush.msrb.mxu0 %v364_v10  ;;  %v222_v5 = vld [vmem:[#allocation7 + $0x3b8] sm:$0xff]  ;;  %v3329_v10 = vpop.f32.mrf.mxu0 }
 0x131   :  { %1384 = vmatpush.msrb.mxu1 %v556_v13  ;;  %1407 = vmatpush.msrb.mxu2 %v173_v14  ;;  %v414_v8 = vld [vmem:[#allocation7 + $0x9b8] sm:$0xff]  ;;  %v593_v13 = vld [vmem:[#allocation7 + $0xf50] sm:$0xff] }
 0x132   :  { %1430 = vmatpush.msrb.mxu3 %v365_v15  ;;  %1362 = vmatpush.msrb.mxu0 %v352_v16  ;;  %v606_v9 = vld [vmem:[#allocation7 + $0xfb8] sm:$0xff] }
 0x133   :  { %1385 = vmatpush.msrb.mxu1 %v544_v17  ;;  %1408 = vmatpush.msrb.mxu2 %v161_v18  ;;  %v210_v14 = vld [vmem:[#allocation7 + $0x358] sm:$0xff]  ;;  %v581_v17 = vld [vmem:[#allocation7 + $0xef0] sm:$0xff]  ;;  %v3331_v18 = vpop.f32.mrf.mxu3 }
 0x134   :  { %1431 = vmatpush.msrb.mxu3 %v353_v19  ;;  %1278 = vmatmul.f32.gmra.mxu0 %v3278_v11  ;;  %v402_v15 = vld [vmem:[#allocation7 + $0x958] sm:$0xff] }
 0x135   :  { %1344 = vmatmul.f32.vlgmr.msra.gmra.mxu3 %v3281_v29  ;;  %1363 = vmatpush.msrb.mxu0 %v340_v20  ;;  %v594_v16 = vld [vmem:[#allocation7 + $0xf58] sm:$0xff] }
 0x136   :  { %1386 = vmatpush.msrb.mxu1 %v532_v21  ;;  %1409 = vmatpush.msrb.mxu2 %v149_v22  ;;  %v198_v19 = vld [vmem:[#allocation7 + $0x2f8] sm:$0xff]  ;;  %v569_v22 = vld [vmem:[#allocation7 + $0xe90] sm:$0xff] }
 0x137   :  { %1432 = vmatpush.msrb.mxu3 %v341_v23  ;;  %1301 = vmatmul.f32.gmra.mxu1 %v3287_v52  ;;  %v390_v20 = vld [vmem:[#allocation7 + $0x8f8] sm:$0xff] }
 0x138   :  { %1364 = vmatpush.msrb.mxu0 %v328_v24  ;;  %1387 = vmatpush.msrb.mxu1 %v520_v25  ;;  %v582_v21 = vld [vmem:[#allocation7 + $0xef8] sm:$0xff] }
 0x139   :  { %1410 = vmatpush.msrb.mxu2 %v137_v26  ;;  %1433 = vmatpush.msrb.mxu3 %v329_v27  ;;  %v186_v23 = vld [vmem:[#allocation7 + $0x298] sm:$0xff]  ;;  %v3334_v26 = vpop.f32.mrf.mxu1  ;;  %v557_v27 = vld [vmem:[#allocation7 + $0xe30] sm:$0xff] }
 0x13a   :  { %1324 = vmatmul.f32.gmra.mxu2 %v3300_v33  ;;  %1365 = vmatpush.msrb.mxu0 %v316_v28  ;;  %v378_v24 = vld [vmem:[#allocation7 + $0x898] sm:$0xff] }
 0x13b   :  { %1388 = vmatpush.msrb.mxu1 %v508_v31  ;;  %1411 = vmatpush.msrb.mxu2 %v125_v32  ;;  %v570_v25 = vld [vmem:[#allocation7 + $0xe98] sm:$0xff] }
 0x13c   :  { %1434 = vmatpush.msrb.mxu3 %v317_v34  ;;  %1366 = vmatpush.msrb.mxu0 %v304_v35  ;;  %v174_v28 = vld [vmem:[#allocation7 + $0x238] sm:$0xff]  ;;  %v3337_v34 = vpop.f32.mrf.mxu2  ;;  %v545_v35 = vld [vmem:[#allocation7 + $0xdd0] sm:$0xff] }
 0x13d   :  { %1389 = vmatpush.msrb.mxu1 %v496_v36  ;;  %1412 = vmatpush.msrb.mxu2 %v113_v37  ;;  %v366_v31 = vld [vmem:[#allocation7 + $0x838] sm:$0xff]  ;;  %v3339_v37 = vpop.f32.mrf.mxu0 }
 0x13e   :  { %1435 = vmatpush.msrb.mxu3 %v305_v38  ;;  %1367 = vmatmul.f32.vlgmr.msrb.gmra.mxu0 %v3284_v30  ;;  %v558_v32 = vld [vmem:[#allocation7 + $0xe38] sm:$0xff] }
 0x13f   :  { %1347 = vmatmul.f32.gmra.mxu3 %v3278_v11  ;;  %1443 = vmatpush.msra.mxu0 %v677_v7  ;;  %v162_v36 = vld [vmem:[#allocation7 + $0x1d8] sm:$0xff] }
 0x140   :  { %1466 = vmatpush.msra.mxu1 %v294_v39  ;;  %1489 = vmatpush.msra.mxu2 %v486_v40  ;;  %v354_v38 = vld [vmem:[#allocation7 + $0x7d8] sm:$0xff]  ;;  %v533_v39 = vld [vmem:[#allocation7 + $0xd70] sm:$0xff] }
 0x141   :  { %1512 = vmatpush.msra.mxu3 %v678_v41  ;;  %1390 = vmatmul.f32.vlgmr.msrb.gmra.mxu1 %v3291_v48  ;;  %v546_v7 = vld [vmem:[#allocation7 + $0xdd8] sm:$0xff] }
 0x142   :  { %1444 = vmatpush.msra.mxu0 %v665_v42  ;;  %1467 = vmatpush.msra.mxu1 %v282_v43  ;;  %v150_v40 = vld [vmem:[#allocation7 + $0x178] sm:$0xff]  ;;  %v3341_v42 = vpop.f32.mrf.mxu3 }
 0x143   :  { %1490 = vmatpush.msra.mxu2 %v474_v44  ;;  %1513 = vmatpush.msra.mxu3 %v666_v45  ;;  %v342_v41 = vld [vmem:[#allocation7 + $0x778] sm:$0xff]  ;;  %v521_v44 = vld [vmem:[#allocation7 + $0xd10] sm:$0xff] }
 0x144   :  { %1445 = vmatpush.msra.mxu0 %v653_v54  ;;  %1468 = vmatpush.msra.mxu1 %v270_v46  ;;  %v534_v43 = vld [vmem:[#allocation7 + $0xd78] sm:$0xff]  ;;  %v3344_v54 = vpop.f32.mrf.mxu1 }
 0x145   :  { %1491 = vmatpush.msra.mxu2 %v462_v49  ;;  %1514 = vmatpush.msra.mxu3 %v654_v50  ;;  %v138_v45 = vld [vmem:[#allocation7 + $0x118] sm:$0xff]  ;;  %v509_v50 = vld [vmem:[#allocation7 + $0xcb0] sm:$0xff] }
 0x146   :  { %1446 = vmatpush.msra.mxu0 %v641_v53  ;;  %1469 = vmatpush.msra.mxu1 %v258_v57  ;;  %v330_v46 = vld [vmem:[#allocation7 + $0x718] sm:$0xff]  ;;  %v3346_v57 = vpop.f32.mrf.mxu2 }
 0x147   :  { %1492 = vmatpush.msra.mxu2 %v450_v55  ;;  %1515 = vmatpush.msra.mxu3 %v642_v56  ;;  %v522_v49 = vld [vmem:[#allocation7 + $0xd18] sm:$0xff] }
 0x148   :  { %1370 = vmatmul.f32.gmra.mxu0 %v3287_v52  ;;  %1470 = vmatpush.msra.mxu1 %v246_v58  ;;  %v126_v53 = vld [vmem:[#allocation7 + $0xb8] sm:$0xff]  ;;  %v497_v58 = vld [vmem:[#allocation7 + $0xc50] sm:$0xff] }
 0x149   :  { %1447 = vmatpush.msra.mxu0 %v629_v59  ;;  %1493 = vmatpush.msra.mxu2 %v438_v2  ;;  %v318_v55 = vld [vmem:[#allocation7 + $0x6b8] sm:$0xff] }
 0x14a   :  { %1516 = vmatpush.msra.mxu3 %v630_v61  ;;  %1393 = vmatmul.f32.gmra.mxu1 %v3300_v33  ;;  %v510_v56 = vld [vmem:[#allocation7 + $0xcb8] sm:$0xff] }
 0x14b   :  { %1448 = vmatpush.msra.mxu0 %v617_v62  ;;  %1471 = vmatpush.msra.mxu1 %v234_v63  ;;  %v114_v59 = vld [vmem:[#allocation7 + $0x58] sm:$0xff]  ;;  %v3351_v62 = vpop.f32.mrf.mxu3 }
 0x14c   :  { %1494 = vmatpush.msra.mxu2 %v426_v1  ;;  %1517 = vmatpush.msra.mxu3 %v618_v3  ;;  %v306_v2 = vld [vmem:[#allocation7 + $0x658] sm:$0xff] }
 0x14d   :  { %1449 = vmatpush.msra.mxu0 %v605_v4  ;;  %1472 = vmatpush.msra.mxu1 %v222_v5  ;;  %v498_v61 = vld [vmem:[#allocation7 + $0xc58] sm:$0xff]  ;;  %v3353_v5 = vpop.f32.mrf.mxu1 }
 0x14e   :  { %1495 = vmatpush.msra.mxu2 %v414_v8  ;;  %1518 = vmatpush.msra.mxu3 %v606_v9  ;;  %v1604_v63 = vld [vmem:[#allocation10 + $0x168] sm:$0xff]  ;;  %v1601_v8 = vld [vmem:[#allocation10 + $0x150] sm:$0xff] }
 0x14f   :  { %1450 = vmatpush.msra.mxu0 %v593_v13  ;;  %1473 = vmatpush.msra.mxu1 %v210_v14  ;;  %v1652_v1 = vld [vmem:[#allocation10 + $0x2e8] sm:$0xff]  ;;  %v1649_v9 = vld [vmem:[#allocation10 + $0x2d0] sm:$0xff] }
 0x150   :  { %1496 = vmatpush.msra.mxu2 %v402_v15  ;;  %1519 = vmatpush.msra.mxu3 %v594_v16  ;;  %v1700_v3 = vld [vmem:[#allocation10 + $0x468] sm:$0xff]  ;;  %v1697_v13 = vld [vmem:[#allocation10 + $0x450] sm:$0xff]  ;;  %v1598_v15 = vld [vmem:[#allocation10 + $0x138] sm:$0xff] }
 0x151   :  { %1413 = vmatmul.f32.vlgmr.msrb.gmra.mxu2 %v3281_v29  ;;  %1451 = vmatpush.msra.mxu0 %v581_v17  ;;  %v1748_v4 = vld [vmem:[#allocation10 + $0x5e8] sm:$0xff]  ;;  %v1745_v14 = vld [vmem:[#allocation10 + $0x5d0] sm:$0xff]  ;;  %v1646_v16 = vld [vmem:[#allocation10 + $0x2b8] sm:$0xff]  ;;  %v3358_v17 = vpop.f32.mrf.mxu2 }
 0x152   :  { %1474 = vmatpush.msra.mxu1 %v198_v19  ;;  %1497 = vmatpush.msra.mxu2 %v390_v20  ;;  %v1694_v19 = vld [vmem:[#allocation10 + $0x438] sm:$0xff] }
 0x153   :  { %1520 = vmatpush.msra.mxu3 %v582_v21  ;;  %1452 = vmatpush.msra.mxu0 %v569_v22  ;;  %v1742_v20 = vld [vmem:[#allocation10 + $0x5b8] sm:$0xff]  ;;  %v1595_v21 = vld [vmem:[#allocation10 + $0x120] sm:$0xff] }
 0x154   :  { %1436 = vmatmul.f32.vlgmr.msrb.gmra.mxu3 %v3284_v30  ;;  %1475 = vmatpush.msra.mxu1 %v186_v23  ;;  %v1643_v22 = vld [vmem:[#allocation10 + $0x2a0] sm:$0xff] }
 0x155   :  { %1498 = vmatpush.msra.mxu2 %v378_v24  ;;  %1521 = vmatpush.msra.mxu3 %v570_v25  ;;  %v1691_v23 = vld [vmem:[#allocation10 + $0x420] sm:$0xff]  ;;  %v3363_v24 = vpop.f32.mrf.mxu3  ;;  %v3365_v25 = vpop.f32.mrf.mxu1 }
 0x156   :  { %1453 = vmatpush.msra.mxu0 %v557_v27  ;;  %1476 = vmatpush.msra.mxu1 %v174_v28  ;;  %v1592_v27 = vld [vmem:[#allocation10 + $0x108] sm:$0xff] }
 0x157   :  { %1499 = vmatpush.msra.mxu2 %v366_v31  ;;  %1522 = vmatpush.msra.mxu3 %v558_v32  ;;  %v1640_v28 = vld [vmem:[#allocation10 + $0x288] sm:$0xff]  ;;  %v1589_v32 = vld [vmem:[#allocation10 + $0xf0] sm:$0xff] }
 0x158   :  { %1454 = vmatpush.msra.mxu0 %v545_v35  ;;  %1477 = vmatpush.msra.mxu1 %v162_v36  ;;  %v1688_v31 = vld [vmem:[#allocation10 + $0x408] sm:$0xff]  ;;  %v1637_v35 = vld [vmem:[#allocation10 + $0x270] sm:$0xff] }
 0x159   :  { %1500 = vmatpush.msra.mxu2 %v354_v38  ;;  %1523 = vmatpush.msra.mxu3 %v546_v7  ;;  %v1685_v36 = vld [vmem:[#allocation10 + $0x3f0] sm:$0xff]  ;;  %v3369_v38 = vpop.f32.mrf.mxu2 }
 0x15a   :  { %1416 = vmatmul.f32.gmra.mxu2 %v3278_v11  ;;  %1455 = vmatpush.msra.mxu0 %v533_v39  ;;  %v3349_v11 = vpop.f32.mrf.mxu0  ;;  %v1733_v7 = vld [vmem:[#allocation10 + $0x570] sm:$0xff] }
 0x15b   :  { %1478 = vmatpush.msra.mxu1 %v150_v40  ;;  %1501 = vmatpush.msra.mxu2 %v342_v41  ;;  %v1586_v40 = vld [vmem:[#allocation10 + $0xd8] sm:$0xff] }
 0x15c   :  { %1524 = vmatpush.msra.mxu3 %v534_v43  ;;  %1456 = vmatpush.msra.mxu0 %v521_v44  ;;  %v1634_v41 = vld [vmem:[#allocation10 + $0x258] sm:$0xff] }
 0x15d   :  { %1439 = vmatmul.f32.gmra.mxu3 %v3287_v52  ;;  %1479 = vmatpush.msra.mxu1 %v138_v45  ;;  %v1730_v43 = vld [vmem:[#allocation10 + $0x558] sm:$0xff] }
 0x15e   :  { %1502 = vmatpush.msra.mxu2 %v330_v46  ;;  %1525 = vmatpush.msra.mxu3 %v522_v49  ;;  %v3374_v44 = vld [vmem:[#allocation9] sm:$0xff]  ;;  %v3014_v45 = vld [vmem:[#allocation4 + $0x18] sm:$0xff] }
 0x15f   :  { %1457 = vmatpush.msra.mxu0 %v509_v50  ;;  %1480 = vmatpush.msra.mxu1 %v126_v53  ;;  %v1583_v46 = vld [vmem:[#allocation10 + $0xc0] sm:$0xff]  ;;  %v3376_v50 = vpop.f32.mrf.mxu3 }
 0x160   :  { %1503 = vmatpush.msra.mxu2 %v318_v55  ;;  %1526 = vmatpush.msra.mxu3 %v510_v56  ;;  %v1631_v49 = vld [vmem:[#allocation10 + $0x240] sm:$0xff]  ;;  %v1580_v55 = vld [vmem:[#allocation10 + $0xa8] sm:$0xff] }
 0x161   :  { %1458 = vmatpush.msra.mxu0 %v497_v58  ;;  %1481 = vmatpush.msra.mxu1 %v114_v59  ;;  %v1679_v53 = vld [vmem:[#allocation10 + $0x3c0] sm:$0xff]  ;;  %v1628_v56 = vld [vmem:[#allocation10 + $0x228] sm:$0xff]  ;;  %v683_v58 = vperm.slane %v3374_v44, 0  ;;  %v684_v59 = vperm.slane %v3374_v44, 1 }
 0x162   :  { %1504 = vmatpush.msra.mxu2 %v306_v2  ;;  %1527 = vmatpush.msra.mxu3 %v498_v61  ;;  %v3380_v2 = vpop.f32.mrf.mxu1  ;;  %v1676_v61 = vld [vmem:[#allocation10 + $0x3a8] sm:$0xff] }
 0x163   :  { %1459 = vmatmul.f32.vlgmr.msra.gmra.mxu0 %v3291_v48  ;;  %1505 = vmatmul.f32.vlgmr.msra.gmra.mxu2 %v3284_v30  ;;  %v3360_v30 = vpop.f32.mrf.mxu0 }
 0x164   :  { %2143 = vmatpush.msrb.mxu0 %v1604_v63  ;;  %2166 = vmatpush.msrb.mxu1 %v1652_v1  ;;  %v1724_v63 = vld [vmem:[#allocation10 + $0x528] sm:$0xff]  ;;  %v685_v1 = vperm.slane %v3374_v44, 2 }
 0x165   :  { %2189 = vmatpush.msrb.mxu2 %v1700_v3  ;;  %2212 = vmatpush.msrb.mxu3 %v1748_v4  ;;  %v686_v3 = vperm.slane %v3374_v44, 3  ;;  %v1577_v4 = vld [vmem:[#allocation10 + $0x90] sm:$0xff] }
 0x166   :  { %1528 = vmatmul.f32.vlgmr.msra.gmra.mxu3 %v3291_v48  ;;  %2144 = vmatpush.msrb.mxu0 %v1601_v8  ;;  %v1739_v48 = vld [vmem:[#allocation10 + $0x5a0] sm:$0xff]  ;;  %v1625_v8 = vld [vmem:[#allocation10 + $0x210] sm:$0xff] }
 0x167   :  { %2167 = vmatpush.msrb.mxu1 %v1649_v9  ;;  %2190 = vmatpush.msrb.mxu2 %v1697_v13  ;;  %v1673_v9 = vld [vmem:[#allocation10 + $0x390] sm:$0xff] }
 0x168   :  { %2213 = vmatpush.msrb.mxu3 %v1745_v14  ;;  %1482 = vmatmul.f32.vlgmr.msra.gmra.mxu1 %v3281_v29  ;;  %v1736_v29 = vld [vmem:[#allocation10 + $0x588] sm:$0xff]  ;;  %v1721_v13 = vld [vmem:[#allocation10 + $0x510] sm:$0xff] }
 0x169   :  { %2145 = vmatpush.msrb.mxu0 %v1598_v15  ;;  %2168 = vmatpush.msrb.mxu1 %v1646_v16  ;;  %v1574_v15 = vld [vmem:[#allocation10 + $0x78] sm:$0xff] }
 0x16a   :  { %2191 = vmatpush.msrb.mxu2 %v1694_v19  ;;  %2214 = vmatpush.msrb.mxu3 %v1742_v20  ;;  %v1622_v16 = vld [vmem:[#allocation10 + $0x1f8] sm:$0xff]  ;;  %v725_v19 = vadd.f32 %v3317_v47, %v683_v58  ;;  %v794_v20 = vadd.f32 %v3321_v60, %v684_v59  ;;  %v1571_v47 = vld [vmem:[#allocation10 + $0x60] sm:$0xff] }
 0x16b   :  { %2146 = vmatpush.msrb.mxu0 %v1595_v21  ;;  %2169 = vmatpush.msrb.mxu1 %v1643_v22  ;;  %v3371_v39 = vpop.f32.mrf.mxu0  ;;  %v3392_v21 = vpop.f32.mrf.mxu2  ;;  %v1670_v22 = vld [vmem:[#allocation10 + $0x378] sm:$0xff]  ;;  %v1667_v60 = vld [vmem:[#allocation10 + $0x360] sm:$0xff] }
 0x16c   :  { %2192 = vmatpush.msrb.mxu2 %v1691_v23  ;;  %2215 = vmatpush.msrb.mxu3 %v1739_v48  ;;  %v1718_v23 = vld [vmem:[#allocation10 + $0x4f8] sm:$0xff]  ;;  %v863_v48 = vadd.f32 %v3337_v34, %v685_v1  ;;  %v817_v34 = vadd.f32 %v3339_v37, %v794_v20  ;;  %v1709_v37 = vld [vmem:[#allocation10 + $0x4b0] sm:$0xff]  ;;  %v1940_v20 = vld [vmem:[#allocation10 + $0xbe8] sm:$0xff] }
 0x16d   :  { %1462 = vmatmul.f32.gmra.mxu0 %v3300_v33  ;;  %1508 = vmatmul.f32.gmra.mxu2 %v3287_v52  ;;  %v1682_v52 = vld [vmem:[#allocation10 + $0x3d8] sm:$0xff] }
 0x16e   :  { %2147 = vmatpush.msrb.mxu0 %v1592_v27  ;;  %2170 = vmatpush.msrb.mxu1 %v1640_v28  ;;  %v932_v27 = vadd.f32 %v3353_v5, %v686_v3  ;;  %v1619_v28 = vld [vmem:[#allocation10 + $0x1e0] sm:$0xff]  ;;  %v1664_v5 = vld [vmem:[#allocation10 + $0x348] sm:$0xff] }
 0x16f   :  { %2193 = vmatpush.msrb.mxu2 %v1688_v31  ;;  %2216 = vmatpush.msrb.mxu3 %v1736_v29  ;;  %v1715_v31 = vld [vmem:[#allocation10 + $0x4e0] sm:$0xff]  ;;  %v1568_v29 = vld [vmem:[#allocation10 + $0x48] sm:$0xff] }
 0x170   :  { %1531 = vmatmul.f32.gmra.mxu3 %v3300_v33  ;;  %2148 = vmatpush.msrb.mxu0 %v1589_v32  ;;  %v1727_v33 = vld [vmem:[#allocation10 + $0x540] sm:$0xff]  ;;  %v1616_v32 = vld [vmem:[#allocation10 + $0x1c8] sm:$0xff] }
 0x171   :  { %2171 = vmatpush.msrb.mxu1 %v1637_v35  ;;  %2194 = vmatpush.msrb.mxu2 %v1685_v36  ;;  %v748_v35 = vadd.f32 %v3313_v12, %v725_v19  ;;  %v3402_v36 = vpop.f32.mrf.mxu3  ;;  %v1661_v12 = vld [vmem:[#allocation10 + $0x330] sm:$0xff]  ;;  %v1892_v19 = vld [vmem:[#allocation10 + $0xa68] sm:$0xff] }
 0x172   :  { %2217 = vmatpush.msrb.mxu3 %v1733_v7  ;;  %1485 = vmatmul.f32.gmra.mxu1 %v3014_v45  ;;  %v1712_v7 = vld [vmem:[#allocation10 + $0x4c8] sm:$0xff]  ;;  %v3406_v45 = vpop.f32.mrf.mxu1 }
 0x173   :  { %2149 = vmatpush.msrb.mxu0 %v1586_v40  ;;  %2172 = vmatpush.msrb.mxu1 %v1634_v41  ;;  %v3384_v14 = vpop.f32.mrf.mxu0  ;;  %v886_v40 = vadd.f32 %v3341_v42, %v863_v48  ;;  %v955_v41 = vadd.f32 %v3358_v17, %v932_v27  ;;  %v840_v42 = vadd.f32 %v3334_v26, %v817_v34  ;;  %v1658_v17 = vld [vmem:[#allocation10 + $0x318] sm:$0xff]  ;;  %v1607_v26 = vld [vmem:[#allocation10 + $0x180] sm:$0xff] }
 0x174   :  { %2195 = vmatpush.msrb.mxu2 %v1682_v52  ;;  %2218 = vmatpush.msrb.mxu3 %v1730_v43  ;;  %v1565_v52 = vld [vmem:[#allocation10 + $0x30] sm:$0xff] }
 0x175   :  { %2150 = vmatpush.msrb.mxu0 %v1583_v46  ;;  %2173 = vmatpush.msrb.mxu1 %v1631_v49  ;;  %v1613_v43 = vld [vmem:[#allocation10 + $0x1b0] sm:$0xff]  ;;  %v1562_v46 = vld [vmem:[#allocation10 + $0x18] sm:$0xff] }
 0x176   :  { %2196 = vmatpush.msrb.mxu2 %v1679_v53  ;;  %2219 = vmatpush.msrb.mxu3 %v1727_v33  ;;  %v1610_v49 = vld [vmem:[#allocation10 + $0x198] sm:$0xff]  ;;  %v771_v53 = vadd.f32 %v3319_v51, %v748_v35  ;;  %v1559_v51 = vld [vmem:[#allocation10] sm:$0xff] }
 0x177   :  { %2151 = vmatpush.msrb.mxu0 %v1580_v55  ;;  %2174 = vmatpush.msrb.mxu1 %v1628_v56  ;;  %v1706_v33 = vld [vmem:[#allocation10 + $0x498] sm:$0xff]  ;;  %v3410_v55 = vpop.f32.mrf.mxu2  ;;  %v728_v56 = vadd.f32 %v3329_v10, %v683_v58  ;;  %v1655_v10 = vld [vmem:[#allocation10 + $0x300] sm:$0xff] }
 0x178   :  { %2197 = vmatpush.msrb.mxu2 %v1676_v61  ;;  %2220 = vmatpush.msrb.mxu3 %v1724_v63  ;;  %v909_v61 = vadd.f32 %v3360_v30, %v886_v40  ;;  %v978_v63 = vadd.f32 %v3363_v24, %v955_v41  ;;  %v1703_v30 = vld [vmem:[#allocation10 + $0x480] sm:$0xff]  ;;  %v935_v24 = vadd.f32 %v3365_v25, %v686_v3  ;;  %v3428_v58 = vmax.f32 %v771_v53, 0.0  ;;  %v1844_v25 = vld [vmem:[#allocation10 + $0x8e8] sm:$0xff]  ;;  %v1829_v53 = vld [vmem:[#allocation10 + $0x870] sm:$0xff] }
 0x179   :  { %2152 = vmatpush.msrb.mxu0 %v1577_v4  ;;  %2175 = vmatpush.msrb.mxu1 %v1625_v8  ;;  %v797_v8 = vadd.f32 %v3331_v18, %v684_v59  ;;  %v3432_v18 = vpop.f32.mrf.mxu3 }
 0x17a   :  { %2198 = vmatpush.msrb.mxu2 %v1673_v9  ;;  %2221 = vmatpush.msrb.mxu3 %v1721_v13  ;;  %v866_v9 = vadd.f32 %v3346_v57, %v685_v1  ;;  %v3430_v13 = vmax.f32 %v840_v42, 0.0  ;;  %v751_v57 = vadd.f32 %v3324_v0, %v728_v56  ;;  %v3435_v59 = vmax.f32 %v909_v61, 0.0  ;;  %v3446_v48 = vpop.f32.mrf.mxu1  ;;  %v1877_v42 = vld [vmem:[#allocation10 + $0x9f0] sm:$0xff] }
 0x17b   :  { %2153 = vmatpush.msrb.mxu0 %v1574_v15  ;;  %2176 = vmatpush.msrb.mxu1 %v1622_v16  ;;  %v3417_v4 = vpop.f32.mrf.mxu0  ;;  %v3437_v1 = vmax.f32 %v978_v63, 0.0  ;;  %v1796_v15 = vld [vmem:[#allocation10 + $0x768] sm:$0xff]  ;;  %v820_v3 = vadd.f32 %v3349_v11, %v797_v8  ;;  %v958_v0 = vadd.f32 %v3369_v38, %v935_v24  ;;  %v1889_v11 = vld [vmem:[#allocation10 + $0xa50] sm:$0xff]  ;;  %v1826_v63 = vld [vmem:[#allocation10 + $0x858] sm:$0xff] }
 0x17c   :  { %2199 = vmatpush.msrb.mxu2 %v1670_v22  ;;  %2222 = vmatpush.msrb.mxu3 %v1718_v23  ;;  %v889_v16 = vadd.f32 %v3351_v62, %v866_v9  ;;  %v1793_v22 = vld [vmem:[#allocation10 + $0x750] sm:$0xff]  ;;  %v774_v27 = vadd.f32 %v3327_v6, %v751_v57  ;;  %v1787_v6 = vld [vmem:[#allocation10 + $0x720] sm:$0xff]  ;;  %v1772_v24 = vld [vmem:[#allocation10 + $0x6a8] sm:$0xff] }
 0x17d   :  { %2154 = vmatpush.msrb.mxu0 %v1571_v47  ;;  %2177 = vmatpush.msrb.mxu1 %v1619_v28  ;;  %v1841_v23 = vld [vmem:[#allocation10 + $0x8d0] sm:$0xff]  ;;  %v1790_v47 = vld [vmem:[#allocation10 + $0x738] sm:$0xff]  ;;  %v843_v38 = vadd.f32 %v3344_v54, %v820_v3  ;;  %v981_v35 = vadd.f32 %v3376_v50, %v958_v0  ;;  %v1784_v50 = vld [vmem:[#allocation10 + $0x708] sm:$0xff] }
 0x17e   :  { %2200 = vmatpush.msrb.mxu2 %v1667_v60  ;;  %2223 = vmatpush.msrb.mxu3 %v1715_v31  ;;  %v1937_v62 = vld [vmem:[#allocation10 + $0xbd0] sm:$0xff]  ;;  %v1838_v28 = vld [vmem:[#allocation10 + $0x8b8] sm:$0xff]  ;;  %v912_v60 = vadd.f32 %v3371_v39, %v889_v16  ;;  %v3456_v54 = vmax.f32 %v774_v27, 0.0  ;;  %v1775_v8 = vld [vmem:[#allocation10 + $0x6c0] sm:$0xff]  ;;  %v688_v16 = vperm.slane %v3374_v44, 5 }
 0x17f   :  { %2155 = vmatpush.msrb.mxu0 %v1568_v29  ;;  %2178 = vmatpush.msrb.mxu1 %v1616_v32  ;;  %v1886_v31 = vld [vmem:[#allocation10 + $0xa38] sm:$0xff]  ;;  %v3451_v32 = vpop.f32.mrf.mxu2  ;;  %v3458_v39 = vmax.f32 %v843_v38, 0.0  ;;  %v1823_v9 = vld [vmem:[#allocation10 + $0x840] sm:$0xff]  ;;  %v1868_v3 = vld [vmem:[#allocation10 + $0x9a8] sm:$0xff] }
 0x180   :  { %2201 = vmatpush.msrb.mxu2 %v1664_v5  ;;  %2224 = vmatpush.msrb.mxu3 %v1712_v7  ;;  %v1934_v29 = vld [vmem:[#allocation10 + $0xbb8] sm:$0xff]  ;;  %v1835_v5 = vld [vmem:[#allocation10 + $0x8a0] sm:$0xff]  ;;  %v3460_v40 = vmax.f32 %v912_v60, 0.0  ;;  %v1769_v0 = vld [vmem:[#allocation10 + $0x690] sm:$0xff] }
 0x181   :  { %2156 = vmatpush.msrb.mxu0 %v1565_v52  ;;  %2179 = vmatpush.msrb.mxu1 %v1613_v43  ;;  %v1883_v7 = vld [vmem:[#allocation10 + $0xa20] sm:$0xff]  ;;  %v3462_v41 = vpop.f32.mrf.mxu3  ;;  %v3464_v52 = vmax.f32 %v981_v35, 0.0  ;;  %v1832_v43 = vld [vmem:[#allocation10 + $0x888] sm:$0xff]  ;;  %v1814_v38 = vld [vmem:[#allocation10 + $0x7f8] sm:$0xff] }
 0x182   :  { %2202 = vmatpush.msrb.mxu2 %v1661_v12  ;;  %2225 = vmatpush.msrb.mxu3 %v1709_v37  ;;  %v1880_v12 = vld [vmem:[#allocation10 + $0xa08] sm:$0xff]  ;;  %v3467_v37 = vpop.f32.mrf.mxu1  ;;  %v1862_v60 = vld [vmem:[#allocation10 + $0x978] sm:$0xff]  ;;  %v1913_v35 = vld [vmem:[#allocation10 + $0xb10] sm:$0xff] }
 0x183   :  { %2157 = vmatpush.msrb.mxu0 %v1562_v46  ;;  %2180 = vmatpush.msrb.mxu1 %v1610_v49  ;;  %v3454_v34 = vpop.f32.mrf.mxu0  ;;  %v1931_v46 = vld [vmem:[#allocation10 + $0xba0] sm:$0xff]  ;;  %v1781_v49 = vld [vmem:[#allocation10 + $0x6f0] sm:$0xff]  ;;  %v1916_v27 = vld [vmem:[#allocation10 + $0xb28] sm:$0xff] }
 0x184   :  { %2203 = vmatpush.msrb.mxu2 %v1658_v17  ;;  %2226 = vmatpush.msrb.mxu3 %v1706_v33  ;;  %v1928_v17 = vld [vmem:[#allocation10 + $0xb88] sm:$0xff]  ;;  %v1778_v33 = vld [vmem:[#allocation10 + $0x6d8] sm:$0xff] }
 0x185   :  { %2158 = vmatpush.msrb.mxu0 %v1559_v51  ;;  %2181 = vmatpush.msrb.mxu1 %v1607_v26  ;;  %v1874_v51 = vld [vmem:[#allocation10 + $0x9d8] sm:$0xff]  ;;  %v1925_v26 = vld [vmem:[#allocation10 + $0xb70] sm:$0xff] }
 0x186   :  { %2204 = vmatpush.msrb.mxu2 %v1655_v10  ;;  %2227 = vmatpush.msrb.mxu3 %v1703_v30  ;;  %v1871_v10 = vld [vmem:[#allocation10 + $0x9c0] sm:$0xff]  ;;  %v1922_v30 = vld [vmem:[#allocation10 + $0xb58] sm:$0xff] }
 0x187   :  { %2159 = vmatmul.f32.vlgmr.msrb.gmra.mxu0 %v3428_v58  ;;  %2182 = vmatmul.f32.vlgmr.msrb.gmra.mxu1 %v3430_v13  ;;  %v3472_v56 = vpop.f32.mrf.mxu2 }
 0x188   :  { %2205 = vmatmul.f32.vlgmr.msrb.gmra.mxu2 %v3435_v59  ;;  %2228 = vmatmul.f32.vlgmr.msrb.gmra.mxu3 %v3437_v1 }
 0x189   :  { %2235 = vmatpush.msra.mxu0 %v1796_v15  ;;  %2258 = vmatpush.msra.mxu1 %v1844_v25  ;;  %v3476_v57 = vpop.f32.mrf.mxu3  ;;  %v687_v15 = vperm.slane %v3374_v44, 4  ;;  %v1820_v25 = vld [vmem:[#allocation10 + $0x828] sm:$0xff] }
 0x18a   :  { %2281 = vmatpush.msra.mxu2 %v1892_v19  ;;  %2304 = vmatpush.msra.mxu3 %v1940_v20  ;;  %v689_v19 = vperm.slane %v3374_v44, 6  ;;  %v1919_v20 = vld [vmem:[#allocation10 + $0xb40] sm:$0xff] }
 0x18b   :  { %2236 = vmatpush.msra.mxu0 %v1793_v22  ;;  %2259 = vmatpush.msra.mxu1 %v1841_v23  ;;  %v3474_v61 = vpop.f32.mrf.mxu0  ;;  %v1817_v23 = vld [vmem:[#allocation10 + $0x810] sm:$0xff] }
 0x18c   :  { %2282 = vmatpush.msra.mxu2 %v1889_v11  ;;  %2305 = vmatpush.msra.mxu3 %v1937_v62  ;;  %v1865_v11 = vld [vmem:[#allocation10 + $0x990] sm:$0xff]  ;;  %v690_v62 = vperm.slane %v3374_v44, 7  ;;  %v1988_v44 = vld [vmem:[#allocation10 + $0xd68] sm:$0xff] }
 0x18d   :  { %2237 = vmatpush.msra.mxu0 %v1790_v47  ;;  %2260 = vmatpush.msra.mxu1 %v1838_v28  ;;  %v1207_v22 = vpop.f32.mrf.mxu1  ;;  %v1766_v47 = vld [vmem:[#allocation10 + $0x678] sm:$0xff]  ;;  %v1001_v28 = vadd.f32 %v3384_v14, %v687_v15  ;;  %v1859_v14 = vld [vmem:[#allocation10 + $0x960] sm:$0xff] }
 0x18e   :  { %2283 = vmatpush.msra.mxu2 %v1886_v31  ;;  %2306 = vmatpush.msra.mxu3 %v1934_v29  ;;  %v1070_v31 = vadd.f32 %v3402_v36, %v688_v16  ;;  %v1139_v29 = vadd.f32 %v3451_v32, %v689_v19  ;;  %v1808_v32 = vld [vmem:[#allocation10 + $0x7c8] sm:$0xff] }
 0x18f   :  { %2238 = vmatpush.msra.mxu0 %v1787_v6  ;;  %2261 = vmatpush.msra.mxu1 %v1835_v5  ;;  %v1763_v6 = vld [vmem:[#allocation10 + $0x660] sm:$0xff]  ;;  %v1230_v5 = vpop.f32.mrf.mxu2  ;;  %v1024_v36 = vadd.f32 %v3380_v2, %v1001_v28  ;;  %v1904_v2 = vld [vmem:[#allocation10 + $0xac8] sm:$0xff] }
 0x190   :  { %2284 = vmatpush.msra.mxu2 %v1883_v7  ;;  %2162 = vmatmul.f32.gmra.mxu0 %v3456_v54 }
 0x191   :  { %2185 = vmatmul.f32.gmra.mxu1 %v3458_v39  ;;  %2208 = vmatmul.f32.gmra.mxu2 %v3460_v40 }
 0x192   :  { %2231 = vmatmul.f32.gmra.mxu3 %v3464_v52  ;;  %2239 = vmatpush.msra.mxu0 %v1784_v50  ;;  %v1811_v50 = vld [vmem:[#allocation10 + $0x7e0] sm:$0xff] }
 0x193   :  { %2262 = vmatpush.msra.mxu1 %v1832_v43  ;;  %2285 = vmatpush.msra.mxu2 %v1880_v12  ;;  %v1184_v7 = vpop.f32.mrf.mxu0  ;;  %v1208_v43 = vadd.f32 %v1207_v22, %v690_v62  ;;  %v1910_v12 = vld [vmem:[#allocation10 + $0xaf8] sm:$0xff]  ;;  %v1751_v22 = vld [vmem:[#allocation10 + $0x600] sm:$0xff] }
 0x194   :  { %2307 = vmatpush.msra.mxu3 %v1931_v46  ;;  %2240 = vmatpush.msra.mxu0 %v1781_v49  ;;  %v1760_v46 = vld [vmem:[#allocation10 + $0x648] sm:$0xff] }
 0x195   :  { %2263 = vmatpush.msra.mxu1 %v1829_v53  ;;  %2286 = vmatpush.msra.mxu2 %v1877_v42  ;;  %v1856_v49 = vld [vmem:[#allocation10 + $0x948] sm:$0xff]  ;;  %v1093_v53 = vadd.f32 %v3454_v34, %v1070_v31  ;;  %v1162_v42 = vadd.f32 %v3462_v41, %v1139_v29  ;;  %v1142_v34 = vadd.f32 %v3472_v56, %v689_v19  ;;  %v1802_v41 = vld [vmem:[#allocation10 + $0x798] sm:$0xff]  ;;  %v1799_v19 = vld [vmem:[#allocation10 + $0x780] sm:$0xff] }
 0x196   :  { %2308 = vmatpush.msra.mxu3 %v1928_v17  ;;  %2241 = vmatpush.msra.mxu0 %v1778_v33  ;;  %v1907_v17 = vld [vmem:[#allocation10 + $0xae0] sm:$0xff]  ;;  %v1757_v33 = vld [vmem:[#allocation10 + $0x630] sm:$0xff]  ;;  %v2084_v29 = vld [vmem:[#allocation10 + $0x1068] sm:$0xff] }
 0x197   :  { %2264 = vmatpush.msra.mxu1 %v1826_v63  ;;  %2287 = vmatpush.msra.mxu2 %v1874_v51  ;;  %v1253_v63 = vpop.f32.mrf.mxu3  ;;  %v1231_v51 = vadd.f32 %v1230_v5, %v1208_v43 }
 0x198   :  { %2309 = vmatpush.msra.mxu3 %v1925_v26  ;;  %2242 = vmatpush.msra.mxu0 %v1775_v8  ;;  %v1805_v26 = vld [vmem:[#allocation10 + $0x7b0] sm:$0xff] }
 0x199   :  { %2265 = vmatpush.msra.mxu1 %v1823_v9  ;;  %2288 = vmatpush.msra.mxu2 %v1871_v10  ;;  %v1853_v8 = vld [vmem:[#allocation10 + $0x930] sm:$0xff]  ;;  %v1754_v9 = vld [vmem:[#allocation10 + $0x618] sm:$0xff]  ;;  %v1210_v10 = vpop.f32.mrf.mxu1  ;;  %v1254_v56 = vadd.f32 %v1253_v63, %v1231_v51  ;;  %v1976_v63 = vld [vmem:[#allocation10 + $0xd08] sm:$0xff] }
 0x19a   :  { %2310 = vmatpush.msra.mxu3 %v1922_v30  ;;  %2243 = vmatpush.msra.mxu0 %v1772_v24  ;;  %v1047_v30 = vadd.f32 %v3392_v21, %v1024_v36  ;;  %v1850_v24 = vld [vmem:[#allocation10 + $0x918] sm:$0xff]  ;;  %v1073_v21 = vadd.f32 %v3432_v18, %v688_v16  ;;  %v2024_v51 = vld [vmem:[#allocation10 + $0xe88] sm:$0xff] }
 0x19b   :  { %2266 = vmatpush.msra.mxu1 %v1820_v25  ;;  %2289 = vmatpush.msra.mxu2 %v1868_v3  ;;  %v1004_v25 = vadd.f32 %v3417_v4, %v687_v15  ;;  %v1116_v3 = vadd.f32 %v3446_v48, %v1093_v53  ;;  %v1187_v4 = vpop.f32.mrf.mxu0  ;;  %v1898_v48 = vld [vmem:[#allocation10 + $0xa98] sm:$0xff]  ;;  %v1233_v15 = vpop.f32.mrf.mxu2  ;;  %v2129_v53 = vld [vmem:[#allocation10 + $0x11d0] sm:$0xff] }
 0x19c   :  { %2311 = vmatpush.msra.mxu3 %v1919_v20  ;;  %2244 = vmatpush.msra.mxu0 %v1769_v0  ;;  %v1185_v20 = vadd.f32 %v1184_v7, %v1162_v42  ;;  %v1901_v0 = vld [vmem:[#allocation10 + $0xab0] sm:$0xff]  ;;  %v2078_v36 = vld [vmem:[#allocation10 + $0x1038] sm:$0xff] }
 0x19d   :  { %2267 = vmatpush.msra.mxu1 %v1817_v23  ;;  %2290 = vmatpush.msra.mxu2 %v1865_v11  ;;  %v1847_v23 = vld [vmem:[#allocation10 + $0x900] sm:$0xff]  ;;  %v1211_v11 = vadd.f32 %v1210_v10, %v690_v62  ;;  %v1027_v18 = vadd.f32 %v3406_v45, %v1004_v25  ;;  %v3509_v16 = vmax.f32 %v1116_v3, 0.0  ;;  %v2036_v62 = vld [vmem:[#allocation10 + $0xee8] sm:$0xff]  ;;  %v1985_v45 = vld [vmem:[#allocation10 + $0xd50] sm:$0xff] }
 0x19e   :  { %2312 = vmatpush.msra.mxu3 %v1916_v27  ;;  %2245 = vmatpush.msra.mxu0 %v1766_v47  ;;  %v3505_v27 = vmax.f32 %v1047_v30, 0.0  ;;  %v1165_v47 = vadd.f32 %v3476_v57, %v1142_v34  ;;  %v3511_v28 = vmax.f32 %v1185_v20, 0.0  ;;  %v1895_v57 = vld [vmem:[#allocation10 + $0xa80] sm:$0xff]  ;;  %v2081_v7 = vld [vmem:[#allocation10 + $0x1050] sm:$0xff]  ;;  %v2072_v10 = vld [vmem:[#allocation10 + $0x1008] sm:$0xff] }
 0x19f   :  { %2268 = vmatpush.msra.mxu1 %v1814_v38  ;;  %2291 = vmatpush.msra.mxu2 %v1862_v60  ;;  %v1096_v38 = vadd.f32 %v3474_v61, %v1073_v21  ;;  %v3514_v60 = vmax.f32 %v1254_v56, 0.0  ;;  %v1234_v31 = vadd.f32 %v1233_v15, %v1211_v11  ;;  %v1050_v61 = vadd.f32 %v3410_v55, %v1027_v18  ;;  %v2027_v55 = vld [vmem:[#allocation10 + $0xea0] sm:$0xff]  ;;  %v3533_v30 = vld [vmem:[#allocation9 + $0x8] sm:$0xf]  ;;  %v2069_v25 = vld [vmem:[#allocation10 + $0xff0] sm:$0xff] }
 0x1a0   :  { %2313 = vmatpush.msra.mxu3 %v1913_v35  ;;  %2246 = vmatpush.msra.mxu0 %v1763_v6  ;;  %v1256_v35 = vpop.f32.mrf.mxu3  ;;  %v2033_v6 = vld [vmem:[#allocation10 + $0xed0] sm:$0xff]  ;;  %v1188_v5 = vadd.f32 %v1187_v4, %v1165_v47  ;;  %v2126_v34 = vld [vmem:[#allocation10 + $0x11b8] sm:$0xff]  ;;  %v2123_v3 = vld [vmem:[#allocation10 + $0x11a0] sm:$0xff] }
 0x1a1   :  { %2269 = vmatpush.msra.mxu1 %v1811_v50  ;;  %2292 = vmatpush.msra.mxu2 %v1859_v14  ;;  %v1982_v50 = vld [vmem:[#allocation10 + $0xd38] sm:$0xff]  ;;  %v2132_v14 = vld [vmem:[#allocation10 + $0x11e8] sm:$0xff]  ;;  %v1119_v43 = vadd.f32 %v3467_v37, %v1096_v38  ;;  %v1967_v20 = vld [vmem:[#allocation10 + $0xcc0] sm:$0xff] }
 0x1a2   :  { %2314 = vmatpush.msra.mxu3 %v1910_v12  ;;  %2247 = vmatpush.msra.mxu0 %v1760_v46  ;;  %v2030_v12 = vld [vmem:[#allocation10 + $0xeb8] sm:$0xff]  ;;  %v1257_v46 = vadd.f32 %v1256_v35, %v1234_v31  ;;  %v3522_v42 = vmax.f32 %v1188_v5, 0.0  ;;  %v2012_v11 = vld [vmem:[#allocation10 + $0xe28] sm:$0xff]  ;;  %v2063_v4 = vld [vmem:[#allocation10 + $0xfc0] sm:$0xff] }
 0x1a3   :  { %2270 = vmatpush.msra.mxu1 %v1808_v32  ;;  %2293 = vmatpush.msra.mxu2 %v1856_v49  ;;  %v1979_v49 = vld [vmem:[#allocation10 + $0xd20] sm:$0xff]  ;;  %v3526_v37 = vmax.f32 %v1119_v43, 0.0  ;;  %v2066_v56 = vld [vmem:[#allocation10 + $0xfd8] sm:$0xff]  ;;  %v1961_v47 = vld [vmem:[#allocation10 + $0xc90] sm:$0xff] }
 0x1a4   :  { %2315 = vmatpush.msra.mxu3 %v1907_v17  ;;  %2248 = vmatpush.msra.mxu0 %v1757_v33  ;;  %v3524_v17 = vmax.f32 %v1050_v61, 0.0  ;;  %v3528_v33 = vmax.f32 %v1257_v46, 0.0  ;;  %v2009_v18 = vld [vmem:[#allocation10 + $0xe10] sm:$0xff]  ;;  %v2114_v38 = vld [vmem:[#allocation10 + $0x1158] sm:$0xff]  ;;  %v2111_v5 = vld [vmem:[#allocation10 + $0x1140] sm:$0xff] }
 0x1a5   :  { %2271 = vmatpush.msra.mxu1 %v1805_v26  ;;  %2294 = vmatpush.msra.mxu2 %v1853_v8  ;;  %v2075_v8 = vld [vmem:[#allocation10 + $0x1020] sm:$0xff]  ;;  %v1958_v31 = vld [vmem:[#allocation10 + $0xc78] sm:$0xff]  ;;  %v2057_v35 = vld [vmem:[#allocation10 + $0xf90] sm:$0xff] }
 0x1a6   :  { %2316 = vmatpush.msra.mxu3 %v1904_v2  ;;  %2249 = vmatpush.msra.mxu0 %v1754_v9  ;;  %v1973_v2 = vld [vmem:[#allocation10 + $0xcf0] sm:$0xff]  ;;  %v1955_v61 = vld [vmem:[#allocation10 + $0xc60] sm:$0xff]  ;;  %v1952_v46 = vld [vmem:[#allocation10 + $0xc48] sm:$0xff] }
 0x1a7   :  { %2272 = vmatpush.msra.mxu1 %v1802_v41  ;;  %2295 = vmatpush.msra.mxu2 %v1850_v24  ;;  %v2021_v9 = vld [vmem:[#allocation10 + $0xe70] sm:$0xff]  ;;  %v1970_v41 = vld [vmem:[#allocation10 + $0xcd8] sm:$0xff] }
 0x1a8   :  { %2317 = vmatpush.msra.mxu3 %v1901_v0  ;;  %2250 = vmatpush.msra.mxu0 %v1751_v22  ;;  %v1276_v32 = vpop.f32.mrf.mxu0  ;;  %v2018_v24 = vld [vmem:[#allocation10 + $0xe58] sm:$0xff]  ;;  %v2015_v0 = vld [vmem:[#allocation10 + $0xe40] sm:$0xff]  ;;  %v691_v22 = vperm.slane %v3533_v30, 0 }
 0x1a9   :  { %2273 = vmatpush.msra.mxu1 %v1799_v19  ;;  %2296 = vmatpush.msra.mxu2 %v1847_v23  ;;  %v2120_v19 = vld [vmem:[#allocation10 + $0x1188] sm:$0xff] }
 0x1aa   :  { %2318 = vmatpush.msra.mxu3 %v1898_v48  ;;  %2251 = vmatmul.f32.vlgmr.msra.gmra.mxu0 %v3505_v27  ;;  %v1299_v26 = vpop.f32.mrf.mxu1  ;;  %v1964_v23 = vld [vmem:[#allocation10 + $0xca8] sm:$0xff]  ;;  %v2117_v48 = vld [vmem:[#allocation10 + $0x1170] sm:$0xff]  ;;  %v1277_v15 = vadd.f32 %v1276_v32, %v691_v22 }
 0x1ab   :  { %2274 = vmatmul.f32.vlgmr.msra.gmra.mxu1 %v3509_v16  ;;  %2297 = vmatmul.f32.vlgmr.msra.gmra.mxu2 %v3511_v28 }
 0x1ac   :  { %2327 = vmatpush.msrb.mxu0 %v1988_v44  ;;  %2350 = vmatpush.msrb.mxu1 %v2036_v62  ;;  %v2060_v62 = vld [vmem:[#allocation10 + $0xfa8] sm:$0xff] }
 0x1ad   :  { %2319 = vmatpush.msra.mxu3 %v1895_v57  ;;  %2373 = vmatpush.msrb.mxu2 %v2084_v29  ;;  %v692_v57 = vperm.slane %v3533_v30, 1  ;;  %v2006_v29 = vld [vmem:[#allocation10 + $0xdf8] sm:$0xff] }
 0x1ae   :  { %2320 = vmatmul.f32.vlgmr.msra.gmra.mxu3 %v3514_v60  ;;  %2328 = vmatpush.msrb.mxu0 %v1985_v45 }
 0x1af   :  { %2351 = vmatpush.msrb.mxu1 %v2033_v6  ;;  %2374 = vmatpush.msrb.mxu2 %v2081_v7  ;;  %v1300_v7 = vadd.f32 %v1299_v26, %v1277_v15  ;;  %v1997_v26 = vld [vmem:[#allocation10 + $0xdb0] sm:$0xff] }
 0x1b0   :  { %2329 = vmatpush.msrb.mxu0 %v1982_v50  ;;  %2396 = vmatpush.msrb.mxu3 %v2132_v14  ;;  %v2003_v50 = vld [vmem:[#allocation10 + $0xde0] sm:$0xff]  ;;  %v2054_v14 = vld [vmem:[#allocation10 + $0xf78] sm:$0xff] }
 0x1b1   :  { %2352 = vmatpush.msrb.mxu1 %v2030_v12  ;;  %2375 = vmatpush.msrb.mxu2 %v2078_v36  ;;  %v1279_v21 = vpop.f32.mrf.mxu0  ;;  %v2108_v12 = vld [vmem:[#allocation10 + $0x1128] sm:$0xff] }
 0x1b2   :  { %2330 = vmatpush.msrb.mxu0 %v1979_v49  ;;  %2397 = vmatpush.msrb.mxu3 %v2129_v53  ;;  %v2000_v36 = vld [vmem:[#allocation10 + $0xdc8] sm:$0xff]  ;;  %v2051_v49 = vld [vmem:[#allocation10 + $0xf60] sm:$0xff]  ;;  %v2105_v53 = vld [vmem:[#allocation10 + $0x1110] sm:$0xff] }
 0x1b3   :  { %2353 = vmatpush.msrb.mxu1 %v2027_v55  ;;  %2254 = vmatmul.f32.gmra.mxu0 %v3524_v17  ;;  %v1322_v6 = vpop.f32.mrf.mxu2  ;;  %v1280_v55 = vadd.f32 %v1279_v21, %v691_v22  ;;  %v1991_v22 = vld [vmem:[#allocation10 + $0xd80] sm:$0xff] }
 0x1b4   :  { %2277 = vmatmul.f32.gmra.mxu1 %v3526_v37  ;;  %2300 = vmatmul.f32.gmra.mxu2 %v3522_v42  ;;  %v1302_v44 = vpop.f32.mrf.mxu1 }
 0x1b5   :  { %2331 = vmatpush.msrb.mxu0 %v1976_v63  ;;  %2354 = vmatpush.msrb.mxu1 %v2024_v51  ;;  %v1323_v63 = vadd.f32 %v1322_v6, %v1300_v7  ;;  %v1949_v51 = vld [vmem:[#allocation10 + $0xc30] sm:$0xff]  ;;  %v1698_v6 = vld [vmem:[#allocation10 + $0x458] sm:$0xff] }
 0x1b6   :  { %2323 = vmatmul.f32.gmra.mxu3 %v3528_v33  ;;  %2376 = vmatpush.msrb.mxu2 %v2075_v8  ;;  %v2048_v8 = vld [vmem:[#allocation10 + $0xf48] sm:$0xff] }
 0x1b7   :  { %2332 = vmatpush.msrb.mxu0 %v1973_v2  ;;  %2355 = vmatpush.msrb.mxu1 %v2021_v9  ;;  %v2102_v9 = vld [vmem:[#allocation10 + $0x10f8] sm:$0xff] }
 0x1b8   :  { %2377 = vmatpush.msrb.mxu2 %v2072_v10  ;;  %2398 = vmatpush.msrb.mxu3 %v2126_v34  ;;  %v1345_v45 = vpop.f32.mrf.mxu3  ;;  %v1946_v10 = vld [vmem:[#allocation10 + $0xc18] sm:$0xff] }
 0x1b9   :  { %2333 = vmatpush.msrb.mxu0 %v1970_v41  ;;  %2356 = vmatpush.msrb.mxu1 %v2018_v24  ;;  %v1346_v43 = vadd.f32 %v1345_v45, %v692_v57  ;;  %v1994_v34 = vld [vmem:[#allocation10 + $0xd98] sm:$0xff]  ;;  %v2045_v24 = vld [vmem:[#allocation10 + $0xf30] sm:$0xff] }
 0x1ba   :  { %2378 = vmatpush.msrb.mxu2 %v2069_v25  ;;  %2399 = vmatpush.msrb.mxu3 %v2123_v3  ;;  %v2099_v25 = vld [vmem:[#allocation10 + $0x10e0] sm:$0xff]  ;;  %v1303_v3 = vadd.f32 %v1302_v44, %v1280_v55  ;;  %v1701_v45 = vld [vmem:[#allocation10 + $0x470] sm:$0xff]  ;;  %v1692_v55 = vld [vmem:[#allocation10 + $0x428] sm:$0xff] }
 0x1bb   :  { %2334 = vmatpush.msrb.mxu0 %v1967_v20  ;;  %2357 = vmatpush.msrb.mxu1 %v2015_v0  ;;  %v1368_v32 = vpop.f32.mrf.mxu0  ;;  %v3540_v20 = vmax.f32 %v1323_v63, 0.0  ;;  %v1943_v0 = vld [vmem:[#allocation10 + $0xc00] sm:$0xff] }
 0x1bc   :  { %2379 = vmatpush.msrb.mxu2 %v2066_v56  ;;  %2400 = vmatpush.msrb.mxu3 %v2120_v19  ;;  %v1369_v2 = vadd.f32 %v1368_v32, %v1346_v43  ;;  %v1653_v56 = vld [vmem:[#allocation10 + $0x2f0] sm:$0xff]  ;;  %v1635_v63 = vld [vmem:[#allocation10 + $0x260] sm:$0xff] }
 0x1bd   :  { %2335 = vmatpush.msrb.mxu0 %v1964_v23  ;;  %2358 = vmatpush.msrb.mxu1 %v2012_v11  ;;  %v1325_v19 = vpop.f32.mrf.mxu2  ;;  %v1605_v11 = vld [vmem:[#allocation10 + $0x170] sm:$0xff] }
 0x1be   :  { %2380 = vmatpush.msrb.mxu2 %v2063_v4  ;;  %2401 = vmatpush.msrb.mxu3 %v2117_v48  ;;  %v1391_v41 = vpop.f32.mrf.mxu1  ;;  %v2042_v4 = vld [vmem:[#allocation10 + $0xf18] sm:$0xff]  ;;  %v1326_v44 = vadd.f32 %v1325_v19, %v1303_v3  ;;  %v1641_v43 = vld [vmem:[#allocation10 + $0x290] sm:$0xff]  ;;  %v1743_v19 = vld [vmem:[#allocation10 + $0x5c0] sm:$0xff] }
 0x1bf   :  { %2336 = vmatpush.msrb.mxu0 %v1961_v47  ;;  %2359 = vmatpush.msrb.mxu1 %v2009_v18  ;;  %v1392_v23 = vadd.f32 %v1391_v41, %v1369_v2  ;;  %v1650_v48 = vld [vmem:[#allocation10 + $0x2d8] sm:$0xff]  ;;  %v2096_v47 = vld [vmem:[#allocation10 + $0x10c8] sm:$0xff]  ;;  %v1629_v41 = vld [vmem:[#allocation10 + $0x230] sm:$0xff] }
 0x1c0   :  { %2381 = vmatpush.msrb.mxu2 %v2060_v62  ;;  %2402 = vmatpush.msrb.mxu3 %v2114_v38  ;;  %v1602_v18 = vld [vmem:[#allocation10 + $0x158] sm:$0xff]  ;;  %v2039_v62 = vld [vmem:[#allocation10 + $0xf00] sm:$0xff]  ;;  %v3547_v7 = vmax.f32 %v1326_v44, 0.0  ;;  %v1581_v3 = vld [vmem:[#allocation10 + $0xb0] sm:$0xff] }
 0x1c1   :  { %2337 = vmatpush.msrb.mxu0 %v1958_v31  ;;  %2360 = vmatpush.msrb.mxu1 %v2006_v29  ;;  %v3545_v31 = vmax.f32 %v1392_v23, 0.0  ;;  %v1647_v29 = vld [vmem:[#allocation10 + $0x2c0] sm:$0xff]  ;;  %v1572_v44 = vld [vmem:[#allocation10 + $0x68] sm:$0xff] }
 0x1c2   :  { %2382 = vmatpush.msrb.mxu2 %v2057_v35  ;;  %2403 = vmatpush.msrb.mxu3 %v2111_v5  ;;  %v1348_v21 = vpop.f32.mrf.mxu3  ;;  %v1599_v35 = vld [vmem:[#allocation10 + $0x140] sm:$0xff] }
 0x1c3   :  { %2338 = vmatpush.msrb.mxu0 %v1955_v61  ;;  %2361 = vmatpush.msrb.mxu1 %v2003_v50  ;;  %v1349_v15 = vadd.f32 %v1348_v21, %v692_v57  ;;  %v1644_v57 = vld [vmem:[#allocation10 + $0x2a8] sm:$0xff]  ;;  %v2093_v50 = vld [vmem:[#allocation10 + $0x10b0] sm:$0xff]  ;;  %v1683_v21 = vld [vmem:[#allocation10 + $0x3e0] sm:$0xff] }
 0x1c4   :  { %2383 = vmatpush.msrb.mxu2 %v2054_v14  ;;  %2404 = vmatpush.msrb.mxu3 %v2108_v12  ;;  %v1596_v61 = vld [vmem:[#allocation10 + $0x128] sm:$0xff]  ;;  %v1593_v12 = vld [vmem:[#allocation10 + $0x110] sm:$0xff]  ;;  %v1623_v23 = vld [vmem:[#allocation10 + $0x200] sm:$0xff] }
 0x1c5   :  { %2339 = vmatpush.msrb.mxu0 %v1952_v46  ;;  %2362 = vmatpush.msrb.mxu1 %v2000_v36  ;;  %v1371_v38 = vpop.f32.mrf.mxu0  ;;  %v1695_v46 = vld [vmem:[#allocation10 + $0x440] sm:$0xff]  ;;  %v1638_v36 = vld [vmem:[#allocation10 + $0x278] sm:$0xff] }
 0x1c6   :  { %2384 = vmatpush.msrb.mxu2 %v2051_v49  ;;  %2405 = vmatpush.msrb.mxu3 %v2105_v53  ;;  %v1372_v5 = vadd.f32 %v1371_v38, %v1349_v15  ;;  %v2090_v49 = vld [vmem:[#allocation10 + $0x1098] sm:$0xff]  ;;  %v1740_v15 = vld [vmem:[#allocation10 + $0x5a8] sm:$0xff]  ;;  %v693_v38 = vperm.slane %v3533_v30, 2 }
 0x1c7   :  { %2340 = vmatpush.msrb.mxu0 %v1949_v51  ;;  %2363 = vmatpush.msrb.mxu1 %v1997_v26  ;;  %v1394_v14 = vpop.f32.mrf.mxu1  ;;  %v1590_v53 = vld [vmem:[#allocation10 + $0xf8] sm:$0xff]  ;;  %v2087_v51 = vld [vmem:[#allocation10 + $0x1080] sm:$0xff] }
 0x1c8   :  { %2385 = vmatpush.msrb.mxu2 %v2048_v8  ;;  %2406 = vmatpush.msrb.mxu3 %v2102_v9  ;;  %v1395_v32 = vadd.f32 %v1394_v14, %v1372_v5  ;;  %v1587_v26 = vld [vmem:[#allocation10 + $0xe0] sm:$0xff]  ;;  %v1689_v8 = vld [vmem:[#allocation10 + $0x410] sm:$0xff]  ;;  %v1632_v9 = vld [vmem:[#allocation10 + $0x248] sm:$0xff] }
 0x1c9   :  { %2341 = vmatpush.msrb.mxu0 %v1946_v10  ;;  %2364 = vmatpush.msrb.mxu1 %v1994_v34  ;;  %v1749_v10 = vld [vmem:[#allocation10 + $0x5f0] sm:$0xff]  ;;  %v1584_v34 = vld [vmem:[#allocation10 + $0xc8] sm:$0xff]  ;;  %v1671_v5 = vld [vmem:[#allocation10 + $0x380] sm:$0xff] }
 0x1ca   :  { %2386 = vmatpush.msrb.mxu2 %v2045_v24  ;;  %2407 = vmatpush.msrb.mxu3 %v2099_v25  ;;  %v3551_v2 = vmax.f32 %v1395_v32, 0.0  ;;  %v1686_v24 = vld [vmem:[#allocation10 + $0x3f8] sm:$0xff]  ;;  %v1731_v14 = vld [vmem:[#allocation10 + $0x560] sm:$0xff]  ;;  %v1728_v32 = vld [vmem:[#allocation10 + $0x548] sm:$0xff] }
 0x1cb   :  { %2342 = vmatpush.msrb.mxu0 %v1943_v0  ;;  %2365 = vmatpush.msrb.mxu1 %v1991_v22  ;;  %v1746_v0 = vld [vmem:[#allocation10 + $0x5d8] sm:$0xff] }
 0x1cc   :  { %2343 = vmatmul.f32.vlgmr.msrb.gmra.mxu0 %v3540_v20  ;;  %2387 = vmatpush.msrb.mxu2 %v2042_v4  ;;  %v1626_v22 = vld [vmem:[#allocation10 + $0x218] sm:$0xff] }
 0x1cd   :  { %2442 = vmatpush.msra.mxu1 %v1653_v56  ;;  %2419 = vmatpush.msra.mxu0 %v1605_v11  ;;  %v1578_v56 = vld [vmem:[#allocation10 + $0x98] sm:$0xff]  ;;  %v1680_v11 = vld [vmem:[#allocation10 + $0x3c8] sm:$0xff] }
 0x1ce   :  { %2408 = vmatpush.msrb.mxu3 %v2096_v47  ;;  %2388 = vmatpush.msrb.mxu2 %v2039_v62  ;;  %v1620_v47 = vld [vmem:[#allocation10 + $0x1e8] sm:$0xff]  ;;  %v1737_v62 = vld [vmem:[#allocation10 + $0x590] sm:$0xff] }
 0x1cf   :  { %2443 = vmatpush.msra.mxu1 %v1650_v48  ;;  %2420 = vmatpush.msra.mxu0 %v1602_v18  ;;  %v1575_v48 = vld [vmem:[#allocation10 + $0x80] sm:$0xff]  ;;  %v1677_v18 = vld [vmem:[#allocation10 + $0x3b0] sm:$0xff] }
 0x1d0   :  { %2465 = vmatpush.msra.mxu2 %v1701_v45  ;;  %2366 = vmatmul.f32.vlgmr.msrb.gmra.mxu1 %v3545_v31  ;;  %v1674_v45 = vld [vmem:[#allocation10 + $0x398] sm:$0xff] }
 0x1d1   :  { %2444 = vmatpush.msra.mxu1 %v1647_v29  ;;  %2421 = vmatpush.msra.mxu0 %v1599_v35  ;;  %v1617_v29 = vld [vmem:[#allocation10 + $0x1d0] sm:$0xff] }
 0x1d2   :  { %2466 = vmatpush.msra.mxu2 %v1698_v6  ;;  %2409 = vmatpush.msrb.mxu3 %v2093_v50  ;;  %v1569_v35 = vld [vmem:[#allocation10 + $0x50] sm:$0xff]  ;;  %v1614_v6 = vld [vmem:[#allocation10 + $0x1b8] sm:$0xff] }
 0x1d3   :  { %2445 = vmatpush.msra.mxu1 %v1644_v57  ;;  %2422 = vmatpush.msra.mxu0 %v1596_v61  ;;  %v1734_v57 = vld [vmem:[#allocation10 + $0x578] sm:$0xff] }
 0x1d4   :  { %2346 = vmatmul.f32.gmra.mxu0 %v3547_v7  ;;  %2467 = vmatpush.msra.mxu2 %v1695_v46  ;;  %v1414_v25 = vpop.f32.mrf.mxu2  ;;  %v1566_v50 = vld [vmem:[#allocation10 + $0x38] sm:$0xff]  ;;  %v1668_v46 = vld [vmem:[#allocation10 + $0x368] sm:$0xff] }
 0x1d5   :  { %2446 = vmatpush.msra.mxu1 %v1641_v43  ;;  %2423 = vmatpush.msra.mxu0 %v1593_v12  ;;  %v1415_v43 = vadd.f32 %v1414_v25, %v693_v38  ;;  %v1611_v12 = vld [vmem:[#allocation10 + $0x1a0] sm:$0xff]  ;;  %v1662_v25 = vld [vmem:[#allocation10 + $0x338] sm:$0xff] }
 0x1d6   :  { %2410 = vmatpush.msrb.mxu3 %v2090_v49  ;;  %2468 = vmatpush.msra.mxu2 %v1692_v55  ;;  %v1608_v49 = vld [vmem:[#allocation10 + $0x188] sm:$0xff] }
 0x1d7   :  { %2447 = vmatpush.msra.mxu1 %v1638_v36  ;;  %2424 = vmatpush.msra.mxu0 %v1590_v53  ;;  %v1437_v4 = vpop.f32.mrf.mxu3  ;;  %v1563_v36 = vld [vmem:[#allocation10 + $0x20] sm:$0xff]  ;;  %v1665_v53 = vld [vmem:[#allocation10 + $0x350] sm:$0xff] }
 0x1d8   :  { %2411 = vmatpush.msrb.mxu3 %v2087_v51  ;;  %2469 = vmatpush.msra.mxu2 %v1689_v8  ;;  %v1560_v51 = vld [vmem:[#allocation10 + $0x8] sm:$0xff]  ;;  %v1438_v8 = vadd.f32 %v1437_v4, %v1415_v43  ;;  %v1791_v4 = vld [vmem:[#allocation10 + $0x740] sm:$0xff] }
 0x1d9   :  { %2448 = vmatpush.msra.mxu1 %v1635_v63  ;;  %2425 = vmatpush.msra.mxu0 %v1587_v26  ;;  %v1725_v26 = vld [vmem:[#allocation10 + $0x530] sm:$0xff] }
 0x1da   :  { %2488 = vmatpush.msra.mxu3 %v1749_v10  ;;  %2369 = vmatmul.f32.gmra.mxu1 %v3551_v2 }
 0x1db   :  { %2449 = vmatpush.msra.mxu1 %v1632_v9  ;;  %2426 = vmatpush.msra.mxu0 %v1584_v34  ;;  %v694_v9 = vperm.slane %v3533_v30, 3  ;;  %v1797_v34 = vld [vmem:[#allocation10 + $0x770] sm:$0xff]  ;;  %v1776_v30 = vld [vmem:[#allocation10 + $0x6c8] sm:$0xff] }
 0x1dc   :  { %2470 = vmatpush.msra.mxu2 %v1686_v24  ;;  %2489 = vmatpush.msra.mxu3 %v1746_v0  ;;  %v1794_v0 = vld [vmem:[#allocation10 + $0x758] sm:$0xff] }
 0x1dd   :  { %2450 = vmatpush.msra.mxu1 %v1629_v41  ;;  %2427 = vmatpush.msra.mxu0 %v1581_v3  ;;  %v1417_v61 = vpop.f32.mrf.mxu2  ;;  %v1845_v41 = vld [vmem:[#allocation10 + $0x8f0] sm:$0xff]  ;;  %v1722_v3 = vld [vmem:[#allocation10 + $0x518] sm:$0xff] }
 0x1de   :  { %2471 = vmatpush.msra.mxu2 %v1683_v21  ;;  %2490 = vmatpush.msra.mxu3 %v1743_v19  ;;  %v1659_v21 = vld [vmem:[#allocation10 + $0x320] sm:$0xff] }
 0x1df   :  { %2451 = vmatpush.msra.mxu1 %v1626_v22  ;;  %2428 = vmatpush.msra.mxu0 %v1578_v56  ;;  %v1842_v22 = vld [vmem:[#allocation10 + $0x8d8] sm:$0xff]  ;;  %v1719_v56 = vld [vmem:[#allocation10 + $0x500] sm:$0xff] }
 0x1e0   :  { %2472 = vmatpush.msra.mxu2 %v1680_v11  ;;  %2491 = vmatpush.msra.mxu3 %v1740_v15  ;;  %v1440_v55 = vpop.f32.mrf.mxu3  ;;  %v1460_v63 = vpop.f32.mrf.mxu0  ;;  %v1418_v11 = vadd.f32 %v1417_v61, %v693_v38 }
 0x1e1   :  { %2452 = vmatpush.msra.mxu1 %v1623_v23  ;;  %2429 = vmatpush.msra.mxu0 %v1575_v48  ;;  %v1461_v24 = vadd.f32 %v1460_v63, %v1438_v8  ;;  %v1839_v48 = vld [vmem:[#allocation10 + $0x8c0] sm:$0xff] }
 0x1e2   :  { %2473 = vmatpush.msra.mxu2 %v1677_v18  ;;  %2492 = vmatpush.msra.mxu3 %v1737_v62  ;;  %v1716_v18 = vld [vmem:[#allocation10 + $0x4e8] sm:$0xff]  ;;  %v1779_v63 = vld [vmem:[#allocation10 + $0x6e0] sm:$0xff] }
 0x1e3   :  { %2453 = vmatpush.msra.mxu1 %v1620_v47  ;;  %2430 = vmatpush.msra.mxu0 %v1572_v44  ;;  %v3560_v15 = vmax.f32 %v1461_v24, 0.0  ;;  %v1656_v47 = vld [vmem:[#allocation10 + $0x308] sm:$0xff]  ;;  %v1827_v8 = vld [vmem:[#allocation10 + $0x860] sm:$0xff] }
 0x1e4   :  { %2474 = vmatpush.msra.mxu2 %v1674_v45  ;;  %2493 = vmatpush.msra.mxu3 %v1734_v57  ;;  %v1788_v44 = vld [vmem:[#allocation10 + $0x728] sm:$0xff]  ;;  %v1441_v57 = vadd.f32 %v1440_v55, %v1418_v11  ;;  %v1707_v55 = vld [vmem:[#allocation10 + $0x4a0] sm:$0xff]  ;;  %v1770_v11 = vld [vmem:[#allocation10 + $0x698] sm:$0xff] }
 0x1e5   :  { %2454 = vmatpush.msra.mxu1 %v1617_v29  ;;  %2431 = vmatpush.msra.mxu0 %v1569_v35  ;;  %v1483_v10 = vpop.f32.mrf.mxu1  ;;  %v1836_v62 = vld [vmem:[#allocation10 + $0x8a8] sm:$0xff]  ;;  %v1893_v29 = vld [vmem:[#allocation10 + $0xa70] sm:$0xff] }
 0x1e6   :  { %2475 = vmatpush.msra.mxu2 %v1671_v5  ;;  %2494 = vmatpush.msra.mxu3 %v1731_v14  ;;  %v1484_v19 = vadd.f32 %v1483_v10, %v694_v9  ;;  %v1506_v23 = vpop.f32.mrf.mxu2  ;;  %v1785_v5 = vld [vmem:[#allocation10 + $0x710] sm:$0xff]  ;;  %v1890_v14 = vld [vmem:[#allocation10 + $0xa58] sm:$0xff]  ;;  %v1884_v10 = vld [vmem:[#allocation10 + $0xa28] sm:$0xff] }
 0x1e7   :  { %2455 = vmatpush.msra.mxu1 %v1614_v6  ;;  %2432 = vmatpush.msra.mxu0 %v1566_v50  ;;  %v1713_v6 = vld [vmem:[#allocation10 + $0x4d0] sm:$0xff]  ;;  %v1824_v24 = vld [vmem:[#allocation10 + $0x848] sm:$0xff] }
 0x1e8   :  { %2476 = vmatpush.msra.mxu2 %v1668_v46  ;;  %2495 = vmatpush.msra.mxu3 %v1728_v32  ;;  %v1507_v45 = vadd.f32 %v1506_v23, %v1484_v19  ;;  %v1833_v50 = vld [vmem:[#allocation10 + $0x890] sm:$0xff]  ;;  %v1710_v46 = vld [vmem:[#allocation10 + $0x4b8] sm:$0xff] }
 0x1e9   :  { %2456 = vmatpush.msra.mxu1 %v1611_v12  ;;  %2433 = vmatpush.msra.mxu0 %v1563_v36  ;;  %v1529_v38 = vpop.f32.mrf.mxu3  ;;  %v1782_v36 = vld [vmem:[#allocation10 + $0x6f8] sm:$0xff] }
 0x1ea   :  { %2477 = vmatpush.msra.mxu2 %v1665_v53  ;;  %2496 = vmatpush.msra.mxu3 %v1725_v26  ;;  %v1463_v35 = vpop.f32.mrf.mxu0  ;;  %v1530_v12 = vadd.f32 %v1529_v38, %v1507_v45  ;;  %v1830_v32 = vld [vmem:[#allocation10 + $0x878] sm:$0xff]  ;;  %v1932_v45 = vld [vmem:[#allocation10 + $0xba8] sm:$0xff] }
 0x1eb   :  { %2457 = vmatpush.msra.mxu1 %v1608_v49  ;;  %2434 = vmatpush.msra.mxu0 %v1560_v51  ;;  %v1464_v43 = vadd.f32 %v1463_v35, %v1441_v57  ;;  %v1887_v49 = vld [vmem:[#allocation10 + $0xa40] sm:$0xff]  ;;  %v1938_v19 = vld [vmem:[#allocation10 + $0xbd8] sm:$0xff]  ;;  %v1764_v35 = vld [vmem:[#allocation10 + $0x668] sm:$0xff] }
 0x1ec   :  { %2435 = vmatmul.f32.vlgmr.msra.gmra.mxu0 %v3428_v58  ;;  %2458 = vmatmul.f32.vlgmr.msra.gmra.mxu1 %v3430_v13  ;;  %v1812_v38 = vld [vmem:[#allocation10 + $0x7e8] sm:$0xff]  ;;  %v1869_v57 = vld [vmem:[#allocation10 + $0x9b0] sm:$0xff] }
 0x1ed   :  { %2511 = vmatpush.msrb.mxu0 %v1797_v34  ;;  %2534 = vmatpush.msrb.mxu1 %v1845_v41  ;;  %v3567_v26 = vmax.f32 %v1464_v43, 0.0  ;;  %v3569_v34 = vmax.f32 %v1530_v12, 0.0  ;;  %v1704_v41 = vld [vmem:[#allocation10 + $0x488] sm:$0xff]  ;;  %v1758_v43 = vld [vmem:[#allocation10 + $0x638] sm:$0xff] }
 0x1ee   :  { %2478 = vmatpush.msra.mxu2 %v1662_v25  ;;  %2497 = vmatpush.msra.mxu3 %v1722_v3  ;;  %v1881_v25 = vld [vmem:[#allocation10 + $0xa10] sm:$0xff]  ;;  %v1806_v12 = vld [vmem:[#allocation10 + $0x7b8] sm:$0xff] }
 0x1ef   :  { %2512 = vmatpush.msrb.mxu0 %v1794_v0  ;;  %2535 = vmatpush.msrb.mxu1 %v1842_v22  ;;  %v1486_v61 = vpop.f32.mrf.mxu1  ;;  %v1941_v0 = vld [vmem:[#allocation10 + $0xbf0] sm:$0xff] }
 0x1f0   :  { %2479 = vmatpush.msra.mxu2 %v1659_v21  ;;  %2498 = vmatpush.msra.mxu3 %v1719_v56  ;;  %v1487_v53 = vadd.f32 %v1486_v61, %v694_v9  ;;  %v1509_v51 = vpop.f32.mrf.mxu2  ;;  %v1773_v22 = vld [vmem:[#allocation10 + $0x6b0] sm:$0xff]  ;;  %v1878_v56 = vld [vmem:[#allocation10 + $0x9f8] sm:$0xff] }
 0x1f1   :  { %2513 = vmatpush.msrb.mxu0 %v1791_v4  ;;  %2536 = vmatpush.msrb.mxu1 %v1839_v48  ;;  %v1821_v21 = vld [vmem:[#allocation10 + $0x830] sm:$0xff]  ;;  %v1818_v4 = vld [vmem:[#allocation10 + $0x818] sm:$0xff]  ;;  %v1875_v48 = vld [vmem:[#allocation10 + $0x9e0] sm:$0xff] }
 0x1f2   :  { %2480 = vmatpush.msra.mxu2 %v1656_v47  ;;  %2499 = vmatpush.msra.mxu3 %v1716_v18  ;;  %v1510_v9 = vadd.f32 %v1509_v51, %v1487_v53  ;;  %v1935_v47 = vld [vmem:[#allocation10 + $0xbc0] sm:$0xff]  ;;  %v1809_v61 = vld [vmem:[#allocation10 + $0x7d0] sm:$0xff]  ;;  %v1860_v53 = vld [vmem:[#allocation10 + $0x968] sm:$0xff] }
 0x1f3   :  { %2389 = vmatmul.f32.vlgmr.msrb.gmra.mxu2 %v3560_v15  ;;  %2514 = vmatpush.msrb.mxu0 %v1788_v44  ;;  %v1532_v3 = vpop.f32.mrf.mxu3  ;;  %v1767_v18 = vld [vmem:[#allocation10 + $0x680] sm:$0xff]  ;;  %v1800_v51 = vld [vmem:[#allocation10 + $0x788] sm:$0xff] }
 0x1f4   :  { %2537 = vmatpush.msrb.mxu1 %v1836_v62  ;;  %2557 = vmatpush.msrb.mxu2 %v1893_v29  ;;  %v1533_v23 = vadd.f32 %v1532_v3, %v1510_v9  ;;  %v1815_v44 = vld [vmem:[#allocation10 + $0x800] sm:$0xff]  ;;  %v1872_v62 = vld [vmem:[#allocation10 + $0x9c8] sm:$0xff]  ;;  %v1854_v9 = vld [vmem:[#allocation10 + $0x938] sm:$0xff] }
 0x1f5   :  { %2500 = vmatpush.msra.mxu3 %v1713_v6  ;;  %2438 = vmatmul.f32.gmra.mxu0 %v3456_v54  ;;  %v1929_v6 = vld [vmem:[#allocation10 + $0xb90] sm:$0xff]  ;;  %v2034_v3 = vld [vmem:[#allocation10 + $0xed8] sm:$0xff] }
 0x1f6   :  { %2461 = vmatmul.f32.gmra.mxu1 %v3458_v39  ;;  %2515 = vmatpush.msrb.mxu0 %v1785_v5  ;;  %v3573_v29 = vmax.f32 %v1533_v23, 0.0  ;;  %v1761_v5 = vld [vmem:[#allocation10 + $0x650] sm:$0xff]  ;;  %v1908_v23 = vld [vmem:[#allocation10 + $0xae8] sm:$0xff] }
 0x1f7   :  { %2538 = vmatpush.msrb.mxu1 %v1833_v50  ;;  %2558 = vmatpush.msrb.mxu2 %v1890_v14  ;;  %v1866_v50 = vld [vmem:[#allocation10 + $0x998] sm:$0xff] }
 0x1f8   :  { %2501 = vmatpush.msra.mxu3 %v1710_v46  ;;  %2516 = vmatpush.msrb.mxu0 %v1782_v36  ;;  %v1926_v14 = vld [vmem:[#allocation10 + $0xb78] sm:$0xff]  ;;  %v1863_v46 = vld [vmem:[#allocation10 + $0x980] sm:$0xff] }
 0x1f9   :  { %2539 = vmatpush.msrb.mxu1 %v1830_v32  ;;  %2559 = vmatpush.msrb.mxu2 %v1887_v49  ;;  %v1923_v36 = vld [vmem:[#allocation10 + $0xb60] sm:$0xff] }
 0x1fa   :  { %2502 = vmatpush.msra.mxu3 %v1707_v55  ;;  %2517 = vmatpush.msrb.mxu0 %v1779_v63  ;;  %v1755_v32 = vld [vmem:[#allocation10 + $0x620] sm:$0xff]  ;;  %v1920_v55 = vld [vmem:[#allocation10 + $0xb48] sm:$0xff] }
 0x1fb   :  { %2540 = vmatpush.msrb.mxu1 %v1827_v8  ;;  %2560 = vmatpush.msrb.mxu2 %v1884_v10  ;;  %v1803_v49 = vld [vmem:[#allocation10 + $0x7a0] sm:$0xff]  ;;  %v1752_v63 = vld [vmem:[#allocation10 + $0x608] sm:$0xff]  ;;  %v1857_v8 = vld [vmem:[#allocation10 + $0x950] sm:$0xff] }
 0x1fc   :  { %2503 = vmatpush.msra.mxu3 %v1704_v41  ;;  %2392 = vmatmul.f32.gmra.mxu2 %v3567_v26  ;;  %v1917_v10 = vld [vmem:[#allocation10 + $0xb30] sm:$0xff] }
 0x1fd   :  { %2412 = vmatmul.f32.vlgmr.msrb.gmra.mxu3 %v3569_v34  ;;  %2518 = vmatpush.msrb.mxu0 %v1776_v30  ;;  %v1989_v41 = vld [vmem:[#allocation10 + $0xd70] sm:$0xff] }
 0x1fe   :  { %2541 = vmatpush.msrb.mxu1 %v1824_v24  ;;  %2561 = vmatpush.msrb.mxu2 %v1881_v25  ;;  %v2037_v30 = vld [vmem:[#allocation10 + $0xef0] sm:$0xff]  ;;  %v1914_v24 = vld [vmem:[#allocation10 + $0xb18] sm:$0xff] }
 0x1ff   :  { %2580 = vmatpush.msrb.mxu3 %v1941_v0  ;;  %2519 = vmatpush.msrb.mxu0 %v1773_v22  ;;  %v1986_v25 = vld [vmem:[#allocation10 + $0xd58] sm:$0xff]  ;;  %v1851_v0 = vld [vmem:[#allocation10 + $0x920] sm:$0xff] }
 0x200   :  { %2542 = vmatpush.msrb.mxu1 %v1821_v21  ;;  %2562 = vmatpush.msrb.mxu2 %v1878_v56  ;;  %v1911_v22 = vld [vmem:[#allocation10 + $0xb00] sm:$0xff] }
 0x201   :  { %2581 = vmatpush.msrb.mxu3 %v1938_v19  ;;  %2520 = vmatpush.msrb.mxu0 %v1770_v11  ;;  %v1983_v21 = vld [vmem:[#allocation10 + $0xd40] sm:$0xff]  ;;  %v1848_v19 = vld [vmem:[#allocation10 + $0x908] sm:$0xff] }
 0x202   :  { %2543 = vmatpush.msrb.mxu1 %v1818_v4  ;;  %2563 = vmatpush.msrb.mxu2 %v1875_v48  ;;  %v2031_v56 = vld [vmem:[#allocation10 + $0xec0] sm:$0xff]  ;;  %v1980_v11 = vld [vmem:[#allocation10 + $0xd28] sm:$0xff]  ;;  %v2085_v48 = vld [vmem:[#allocation10 + $0x1070] sm:$0xff] }
 0x203   :  { %2582 = vmatpush.msrb.mxu3 %v1935_v47  ;;  %2521 = vmatpush.msrb.mxu0 %v1767_v18  ;;  %v2028_v4 = vld [vmem:[#allocation10 + $0xea8] sm:$0xff]  ;;  %v1905_v47 = vld [vmem:[#allocation10 + $0xad0] sm:$0xff] }
 0x204   :  { %2544 = vmatpush.msrb.mxu1 %v1815_v44  ;;  %2564 = vmatpush.msrb.mxu2 %v1872_v62  ;;  %v1977_v18 = vld [vmem:[#allocation10 + $0xd10] sm:$0xff]  ;;  %v2082_v62 = vld [vmem:[#allocation10 + $0x1058] sm:$0xff] }
 0x205   :  { %2583 = vmatpush.msrb.mxu3 %v1932_v45  ;;  %2481 = vmatmul.f32.vlgmr.msra.gmra.mxu2 %v3435_v59  ;;  %v2025_v44 = vld [vmem:[#allocation10 + $0xe90] sm:$0xff]  ;;  %v1902_v45 = vld [vmem:[#allocation10 + $0xab8] sm:$0xff] }
 0x206   :  { %2415 = vmatmul.f32.gmra.mxu3 %v3573_v29  ;;  %2522 = vmatpush.msrb.mxu0 %v1764_v35  ;;  %v1974_v35 = vld [vmem:[#allocation10 + $0xcf8] sm:$0xff] }
 0x207   :  { %2545 = vmatpush.msrb.mxu1 %v1812_v38  ;;  %2565 = vmatpush.msrb.mxu2 %v1869_v57  ;;  %v2022_v38 = vld [vmem:[#allocation10 + $0xe78] sm:$0xff]  ;;  %v2079_v57 = vld [vmem:[#allocation10 + $0x1040] sm:$0xff] }
 0x208   :  { %2584 = vmatpush.msrb.mxu3 %v1929_v6  ;;  %2523 = vmatpush.msrb.mxu0 %v1761_v5  ;;  %v1899_v6 = vld [vmem:[#allocation10 + $0xaa0] sm:$0xff] }
 0x209   :  { %2546 = vmatpush.msrb.mxu1 %v1809_v61  ;;  %2566 = vmatpush.msrb.mxu2 %v1866_v50  ;;  %v1971_v5 = vld [vmem:[#allocation10 + $0xce0] sm:$0xff]  ;;  %v2076_v50 = vld [vmem:[#allocation10 + $0x1028] sm:$0xff] }
 0x20a   :  { %2585 = vmatpush.msrb.mxu3 %v1926_v14  ;;  %2524 = vmatpush.msrb.mxu0 %v1758_v43  ;;  %v2019_v61 = vld [vmem:[#allocation10 + $0xe60] sm:$0xff]  ;;  %v1896_v14 = vld [vmem:[#allocation10 + $0xa88] sm:$0xff] }
 0x20b   :  { %2547 = vmatpush.msrb.mxu1 %v1806_v12  ;;  %2567 = vmatpush.msrb.mxu2 %v1863_v46  ;;  %v1968_v43 = vld [vmem:[#allocation10 + $0xcc8] sm:$0xff]  ;;  %v2073_v46 = vld [vmem:[#allocation10 + $0x1010] sm:$0xff] }
 0x20c   :  { %2586 = vmatpush.msrb.mxu3 %v1923_v36  ;;  %2525 = vmatpush.msrb.mxu0 %v1755_v32  ;;  %v2016_v12 = vld [vmem:[#allocation10 + $0xe48] sm:$0xff]  ;;  %v2133_v36 = vld [vmem:[#allocation10 + $0x11f0] sm:$0xff] }
 0x20d   :  { %2548 = vmatpush.msrb.mxu1 %v1803_v49  ;;  %2568 = vmatpush.msrb.mxu2 %v1860_v53  ;;  %v1965_v32 = vld [vmem:[#allocation10 + $0xcb0] sm:$0xff]  ;;  %v2070_v53 = vld [vmem:[#allocation10 + $0xff8] sm:$0xff] }
 0x20e   :  { %2587 = vmatpush.msrb.mxu3 %v1920_v55  ;;  %2484 = vmatmul.f32.gmra.mxu2 %v3460_v40  ;;  %v2013_v49 = vld [vmem:[#allocation10 + $0xe30] sm:$0xff]  ;;  %v2130_v55 = vld [vmem:[#allocation10 + $0x11d8] sm:$0xff] }
 0x20f   :  { %2504 = vmatmul.f32.vlgmr.msra.gmra.mxu3 %v3437_v1  ;;  %2526 = vmatpush.msrb.mxu0 %v1752_v63  ;;  %v1962_v63 = vld [vmem:[#allocation10 + $0xc98] sm:$0xff] }
 0x210   :  { %2549 = vmatpush.msrb.mxu1 %v1800_v51  ;;  %2569 = vmatpush.msrb.mxu2 %v1857_v8  ;;  %v2010_v51 = vld [vmem:[#allocation10 + $0xe18] sm:$0xff]  ;;  %v2067_v8 = vld [vmem:[#allocation10 + $0xfe0] sm:$0xff] }
 0x211   :  { %2588 = vmatpush.msrb.mxu3 %v1917_v10  ;;  %2527 = vmatmul.f32.vlgmr.msrb.gmra.mxu0 %v3505_v27  ;;  %v2127_v10 = vld [vmem:[#allocation10 + $0x11c0] sm:$0xff] }
 0x212   :  { %2550 = vmatmul.f32.vlgmr.msrb.gmra.mxu1 %v3509_v16  ;;  %2603 = vmatpush.msra.mxu0 %v1989_v41  ;;  %v1959_v41 = vld [vmem:[#allocation10 + $0xc80] sm:$0xff] }
 0x213   :  { %2626 = vmatpush.msra.mxu1 %v2037_v30  ;;  %2570 = vmatpush.msrb.mxu2 %v1854_v9  ;;  %v2007_v30 = vld [vmem:[#allocation10 + $0xe00] sm:$0xff]  ;;  %v2064_v9 = vld [vmem:[#allocation10 + $0xfc8] sm:$0xff] }
 0x214   :  { %2589 = vmatpush.msrb.mxu3 %v1914_v24  ;;  %2604 = vmatpush.msra.mxu0 %v1986_v25  ;;  %v2124_v24 = vld [vmem:[#allocation10 + $0x11a8] sm:$0xff] }
 0x215   :  { %2627 = vmatpush.msra.mxu1 %v2034_v3  ;;  %2571 = vmatpush.msrb.mxu2 %v1851_v0  ;;  %v1956_v25 = vld [vmem:[#allocation10 + $0xc68] sm:$0xff]  ;;  %v2061_v0 = vld [vmem:[#allocation10 + $0xfb0] sm:$0xff] }
 0x216   :  { %2590 = vmatpush.msrb.mxu3 %v1911_v22  ;;  %2605 = vmatpush.msra.mxu0 %v1983_v21  ;;  %v2004_v3 = vld [vmem:[#allocation10 + $0xde8] sm:$0xff]  ;;  %v2121_v22 = vld [vmem:[#allocation10 + $0x1190] sm:$0xff] }
 0x217   :  { %2628 = vmatpush.msra.mxu1 %v2031_v56  ;;  %2572 = vmatpush.msrb.mxu2 %v1848_v19  ;;  %v1953_v21 = vld [vmem:[#allocation10 + $0xc50] sm:$0xff]  ;;  %v2058_v19 = vld [vmem:[#allocation10 + $0xf98] sm:$0xff] }
 0x218   :  { %2591 = vmatpush.msrb.mxu3 %v1908_v23  ;;  %2606 = vmatpush.msra.mxu0 %v1980_v11  ;;  %v2001_v56 = vld [vmem:[#allocation10 + $0xdd0] sm:$0xff]  ;;  %v2118_v23 = vld [vmem:[#allocation10 + $0x1178] sm:$0xff] }
 0x219   :  { %2629 = vmatpush.msra.mxu1 %v2028_v4  ;;  %2649 = vmatpush.msra.mxu2 %v2085_v48  ;;  %v1950_v11 = vld [vmem:[#allocation10 + $0xc38] sm:$0xff]  ;;  %v2055_v48 = vld [vmem:[#allocation10 + $0xf80] sm:$0xff] }
 0x21a   :  { %2507 = vmatmul.f32.gmra.mxu3 %v3464_v52  ;;  %2573 = vmatmul.f32.vlgmr.msrb.gmra.mxu2 %v3511_v28  ;;  %v1998_v4 = vld [vmem:[#allocation10 + $0xdb8] sm:$0xff] }
 0x21b   :  { %2592 = vmatpush.msrb.mxu3 %v1905_v47  ;;  %2530 = vmatmul.f32.gmra.mxu0 %v3524_v17  ;;  %v2115_v47 = vld [vmem:[#allocation10 + $0x1160] sm:$0xff] }
 0x21c   :  { %2553 = vmatmul.f32.gmra.mxu1 %v3526_v37  ;;  %2607 = vmatpush.msra.mxu0 %v1977_v18  ;;  %v1947_v18 = vld [vmem:[#allocation10 + $0xc20] sm:$0xff] }
 0x21d   :  { %2630 = vmatpush.msra.mxu1 %v2025_v44  ;;  %2650 = vmatpush.msra.mxu2 %v2082_v62  ;;  %v1995_v44 = vld [vmem:[#allocation10 + $0xda0] sm:$0xff]  ;;  %v2052_v62 = vld [vmem:[#allocation10 + $0xf68] sm:$0xff] }
 0x21e   :  { %2593 = vmatpush.msrb.mxu3 %v1902_v45  ;;  %2608 = vmatpush.msra.mxu0 %v1974_v35  ;;  %v2112_v45 = vld [vmem:[#allocation10 + $0x1148] sm:$0xff] }
 0x21f   :  { %2631 = vmatpush.msra.mxu1 %v2022_v38  ;;  %2651 = vmatpush.msra.mxu2 %v2079_v57  ;;  %v1944_v35 = vld [vmem:[#allocation10 + $0xc08] sm:$0xff]  ;;  %v2049_v57 = vld [vmem:[#allocation10 + $0xf50] sm:$0xff] }
 0x220   :  { %2594 = vmatpush.msrb.mxu3 %v1899_v6  ;;  %2609 = vmatpush.msra.mxu0 %v1971_v5  ;;  %v1992_v38 = vld [vmem:[#allocation10 + $0xd88] sm:$0xff]  ;;  %v2109_v6 = vld [vmem:[#allocation10 + $0x1130] sm:$0xff]  ;;  %v1606_v5 = vld [vmem:[#allocation10 + $0x178] sm:$0xff] }
 0x221   :  { %2632 = vmatpush.msra.mxu1 %v2019_v61  ;;  %2652 = vmatpush.msra.mxu2 %v2076_v50  ;;  %v1654_v61 = vld [vmem:[#allocation10 + $0x2f8] sm:$0xff] }
 0x222   :  { %2595 = vmatpush.msrb.mxu3 %v1896_v14  ;;  %2610 = vmatpush.msra.mxu0 %v1968_v43  ;;  %v2046_v50 = vld [vmem:[#allocation10 + $0xf38] sm:$0xff]  ;;  %v1603_v43 = vld [vmem:[#allocation10 + $0x160] sm:$0xff] }
 0x223   :  { %2633 = vmatpush.msra.mxu1 %v2016_v12  ;;  %2653 = vmatpush.msra.mxu2 %v2073_v46  ;;  %v2106_v14 = vld [vmem:[#allocation10 + $0x1118] sm:$0xff]  ;;  %v1651_v12 = vld [vmem:[#allocation10 + $0x2e0] sm:$0xff] }
 0x224   :  { %2672 = vmatpush.msra.mxu3 %v2133_v36  ;;  %2576 = vmatmul.f32.gmra.mxu2 %v3522_v42  ;;  %v2043_v46 = vld [vmem:[#allocation10 + $0xf20] sm:$0xff] }
 0x225   :  { %2596 = vmatmul.f32.vlgmr.msrb.gmra.mxu3 %v3514_v60  ;;  %2611 = vmatpush.msra.mxu0 %v1965_v32  ;;  %v2103_v36 = vld [vmem:[#allocation10 + $0x1100] sm:$0xff]  ;;  %v1600_v32 = vld [vmem:[#allocation10 + $0x148] sm:$0xff] }
 0x226   :  { %2634 = vmatpush.msra.mxu1 %v2013_v49  ;;  %2654 = vmatpush.msra.mxu2 %v2070_v53  ;;  %v1648_v49 = vld [vmem:[#allocation10 + $0x2c8] sm:$0xff] }
 0x227   :  { %2673 = vmatpush.msra.mxu3 %v2130_v55  ;;  %2612 = vmatpush.msra.mxu0 %v1962_v63  ;;  %v2040_v53 = vld [vmem:[#allocation10 + $0xf08] sm:$0xff]  ;;  %v1597_v63 = vld [vmem:[#allocation10 + $0x130] sm:$0xff] }
 0x228   :  { %2635 = vmatpush.msra.mxu1 %v2010_v51  ;;  %2655 = vmatpush.msra.mxu2 %v2067_v8  ;;  %v2100_v55 = vld [vmem:[#allocation10 + $0x10e8] sm:$0xff]  ;;  %v1645_v51 = vld [vmem:[#allocation10 + $0x2b0] sm:$0xff]  ;;  %v1702_v8 = vld [vmem:[#allocation10 + $0x478] sm:$0xff] }
 0x229   :  { %2674 = vmatpush.msra.mxu3 %v2127_v10  ;;  %2613 = vmatpush.msra.mxu0 %v1959_v41  ;;  %v2097_v10 = vld [vmem:[#allocation10 + $0x10d0] sm:$0xff]  ;;  %v1594_v41 = vld [vmem:[#allocation10 + $0x118] sm:$0xff] }
 0x22a   :  { %2636 = vmatpush.msra.mxu1 %v2007_v30  ;;  %2656 = vmatpush.msra.mxu2 %v2064_v9  ;;  %v1642_v30 = vld [vmem:[#allocation10 + $0x298] sm:$0xff]  ;;  %v1699_v9 = vld [vmem:[#allocation10 + $0x460] sm:$0xff] }
 0x22b   :  { %2675 = vmatpush.msra.mxu3 %v2124_v24  ;;  %2614 = vmatpush.msra.mxu0 %v1956_v25  ;;  %v2094_v24 = vld [vmem:[#allocation10 + $0x10b8] sm:$0xff]  ;;  %v1591_v25 = vld [vmem:[#allocation10 + $0x100] sm:$0xff] }
 0x22c   :  { %2637 = vmatpush.msra.mxu1 %v2004_v3  ;;  %2657 = vmatpush.msra.mxu2 %v2061_v0  ;;  %v1639_v3 = vld [vmem:[#allocation10 + $0x280] sm:$0xff]  ;;  %v1696_v0 = vld [vmem:[#allocation10 + $0x448] sm:$0xff] }
 0x22d   :  { %2676 = vmatpush.msra.mxu3 %v2121_v22  ;;  %2615 = vmatpush.msra.mxu0 %v1953_v21  ;;  %v2091_v22 = vld [vmem:[#allocation10 + $0x10a0] sm:$0xff]  ;;  %v1588_v21 = vld [vmem:[#allocation10 + $0xe8] sm:$0xff] }
 0x22e   :  { %2599 = vmatmul.f32.gmra.mxu3 %v3528_v33  ;;  %2638 = vmatpush.msra.mxu1 %v2001_v56  ;;  %v1636_v56 = vld [vmem:[#allocation10 + $0x268] sm:$0xff] }
 0x22f   :  { %2658 = vmatpush.msra.mxu2 %v2058_v19  ;;  %2677 = vmatpush.msra.mxu3 %v2118_v23  ;;  %v1693_v19 = vld [vmem:[#allocation10 + $0x430] sm:$0xff]  ;;  %v2088_v23 = vld [vmem:[#allocation10 + $0x1088] sm:$0xff] }
 0x230   :  { %2616 = vmatpush.msra.mxu0 %v1950_v11  ;;  %2639 = vmatpush.msra.mxu1 %v1998_v4  ;;  %v1585_v11 = vld [vmem:[#allocation10 + $0xd0] sm:$0xff] }
 0x231   :  { %2659 = vmatpush.msra.mxu2 %v2055_v48  ;;  %2678 = vmatpush.msra.mxu3 %v2115_v47  ;;  %v1633_v4 = vld [vmem:[#allocation10 + $0x250] sm:$0xff]  ;;  %v1690_v48 = vld [vmem:[#allocation10 + $0x418] sm:$0xff] }
 0x232   :  { %2617 = vmatpush.msra.mxu0 %v1947_v18  ;;  %2640 = vmatpush.msra.mxu1 %v1995_v44  ;;  %v1750_v47 = vld [vmem:[#allocation10 + $0x5f8] sm:$0xff] }
 0x233   :  { %2660 = vmatpush.msra.mxu2 %v2052_v62  ;;  %2679 = vmatpush.msra.mxu3 %v2112_v45  ;;  %v1582_v18 = vld [vmem:[#allocation10 + $0xb8] sm:$0xff]  ;;  %v1687_v62 = vld [vmem:[#allocation10 + $0x400] sm:$0xff] }
 0x234   :  { %2618 = vmatpush.msra.mxu0 %v1944_v35  ;;  %2641 = vmatpush.msra.mxu1 %v1992_v38  ;;  %v1630_v44 = vld [vmem:[#allocation10 + $0x238] sm:$0xff]  ;;  %v1747_v45 = vld [vmem:[#allocation10 + $0x5e0] sm:$0xff] }
 0x235   :  { %2661 = vmatpush.msra.mxu2 %v2049_v57  ;;  %2680 = vmatpush.msra.mxu3 %v2109_v6  ;;  %v1579_v35 = vld [vmem:[#allocation10 + $0xa0] sm:$0xff]  ;;  %v1684_v57 = vld [vmem:[#allocation10 + $0x3e8] sm:$0xff] }
 0x236   :  { %2619 = vmatmul.f32.vlgmr.msra.gmra.mxu0 %v3540_v20  ;;  %2642 = vmatmul.f32.vlgmr.msra.gmra.mxu1 %v3545_v31  ;;  %v1627_v38 = vld [vmem:[#allocation10 + $0x220] sm:$0xff]  ;;  %v1744_v6 = vld [vmem:[#allocation10 + $0x5c8] sm:$0xff] }
 0x237   :  { %2695 = vmatpush.msrb.mxu0 %v1606_v5  ;;  %2718 = vmatpush.msrb.mxu1 %v1654_v61  ;;  %v1576_v5 = vld [vmem:[#allocation10 + $0x88] sm:$0xff] }
 0x238   :  { %2662 = vmatpush.msra.mxu2 %v2046_v50  ;;  %2681 = vmatpush.msra.mxu3 %v2106_v14  ;;  %v1624_v61 = vld [vmem:[#allocation10 + $0x208] sm:$0xff]  ;;  %v1681_v50 = vld [vmem:[#allocation10 + $0x3d0] sm:$0xff] }
 0x239   :  { %2696 = vmatpush.msrb.mxu0 %v1603_v43  ;;  %2719 = vmatpush.msrb.mxu1 %v1651_v12  ;;  %v1741_v14 = vld [vmem:[#allocation10 + $0x5b0] sm:$0xff] }
 0x23a   :  { %2663 = vmatpush.msra.mxu2 %v2043_v46  ;;  %2682 = vmatpush.msra.mxu3 %v2103_v36  ;;  %v1573_v43 = vld [vmem:[#allocation10 + $0x70] sm:$0xff]  ;;  %v1678_v46 = vld [vmem:[#allocation10 + $0x3b8] sm:$0xff] }
 0x23b   :  { %2697 = vmatpush.msrb.mxu0 %v1600_v32  ;;  %2720 = vmatpush.msrb.mxu1 %v1648_v49  ;;  %v1621_v12 = vld [vmem:[#allocation10 + $0x1f0] sm:$0xff]  ;;  %v1738_v36 = vld [vmem:[#allocation10 + $0x598] sm:$0xff] }
 0x23c   :  { %2664 = vmatpush.msra.mxu2 %v2040_v53  ;;  %2683 = vmatpush.msra.mxu3 %v2100_v55  ;;  %v1570_v32 = vld [vmem:[#allocation10 + $0x58] sm:$0xff]  ;;  %v1675_v53 = vld [vmem:[#allocation10 + $0x3a0] sm:$0xff] }
 0x23d   :  { %2665 = vmatmul.f32.vlgmr.msra.gmra.mxu2 %v3560_v15  ;;  %2698 = vmatpush.msrb.mxu0 %v1597_v63  ;;  %v1618_v49 = vld [vmem:[#allocation10 + $0x1d8] sm:$0xff]  ;;  %v1735_v55 = vld [vmem:[#allocation10 + $0x580] sm:$0xff] }
 0x23e   :  { %2721 = vmatpush.msrb.mxu1 %v1645_v51  ;;  %2741 = vmatpush.msrb.mxu2 %v1702_v8  ;;  %v1567_v63 = vld [vmem:[#allocation10 + $0x40] sm:$0xff]  ;;  %v1672_v8 = vld [vmem:[#allocation10 + $0x388] sm:$0xff] }
 0x23f   :  { %2684 = vmatpush.msra.mxu3 %v2097_v10  ;;  %2622 = vmatmul.f32.gmra.mxu0 %v3547_v7  ;;  %v1615_v51 = vld [vmem:[#allocation10 + $0x1c0] sm:$0xff]  ;;  %v1732_v10 = vld [vmem:[#allocation10 + $0x568] sm:$0xff] }
 0x240   :  { %2645 = vmatmul.f32.gmra.mxu1 %v3551_v2  ;;  %2699 = vmatpush.msrb.mxu0 %v1594_v41  ;;  %v3596_v41 = vpop.f32.mrf.mxu0 }
 0x241   :  { %2722 = vmatpush.msrb.mxu1 %v1642_v30  ;;  %2742 = vmatpush.msrb.mxu2 %v1699_v9  ;;  %v1564_v30 = vld [vmem:[#allocation10 + $0x28] sm:$0xff] }
 0x242   :  { %2685 = vmatpush.msra.mxu3 %v2094_v24  ;;  %2700 = vmatpush.msrb.mxu0 %v1591_v25  ;;  %v1612_v9 = vld [vmem:[#allocation10 + $0x1a8] sm:$0xff]  ;;  %v1669_v24 = vld [vmem:[#allocation10 + $0x370] sm:$0xff] }
 0x243   :  { %2723 = vmatpush.msrb.mxu1 %v1639_v3  ;;  %2743 = vmatpush.msrb.mxu2 %v1696_v0  ;;  %v1729_v25 = vld [vmem:[#allocation10 + $0x550] sm:$0xff]  ;;  %v3598_v3 = vpop.f32.mrf.mxu1 }
 0x244   :  { %2686 = vmatpush.msra.mxu3 %v2091_v22  ;;  %2701 = vmatpush.msrb.mxu0 %v1588_v21  ;;  %v1561_v0 = vld [vmem:[#allocation10 + $0x10] sm:$0xff]  ;;  %v1666_v21 = vld [vmem:[#allocation10 + $0x358] sm:$0xff] }
 0x245   :  { %2724 = vmatpush.msrb.mxu1 %v1636_v56  ;;  %2744 = vmatpush.msrb.mxu2 %v1693_v19  ;;  %v1609_v22 = vld [vmem:[#allocation10 + $0x190] sm:$0xff]  ;;  %v1726_v56 = vld [vmem:[#allocation10 + $0x538] sm:$0xff]  ;;  %v3600_v19 = vpop.f32.mrf.mxu2 }
 0x246   :  { %2687 = vmatpush.msra.mxu3 %v2088_v23  ;;  %2668 = vmatmul.f32.gmra.mxu2 %v3567_v26  ;;  %v1798_v23 = vld [vmem:[#allocation10 + $0x778] sm:$0xff] }
 0x247   :  { %2688 = vmatmul.f32.vlgmr.msra.gmra.mxu3 %v3569_v34  ;;  %2702 = vmatpush.msrb.mxu0 %v1585_v11  ;;  %v1846_v11 = vld [vmem:[#allocation10 + $0x8f8] sm:$0xff] }
 0x248   :  { %2725 = vmatpush.msrb.mxu1 %v1633_v4  ;;  %2745 = vmatpush.msrb.mxu2 %v1690_v48  ;;  %v1663_v4 = vld [vmem:[#allocation10 + $0x340] sm:$0xff] }
 0x249   :  { %2764 = vmatpush.msrb.mxu3 %v1750_v47  ;;  %2703 = vmatpush.msrb.mxu0 %v1582_v18  ;;  %v1723_v48 = vld [vmem:[#allocation10 + $0x520] sm:$0xff] }
 0x24a   :  { %2726 = vmatpush.msrb.mxu1 %v1630_v44  ;;  %2746 = vmatpush.msrb.mxu2 %v1687_v62  ;;  %v1795_v47 = vld [vmem:[#allocation10 + $0x760] sm:$0xff]  ;;  %v1660_v44 = vld [vmem:[#allocation10 + $0x328] sm:$0xff] }
 0x24b   :  { %2765 = vmatpush.msrb.mxu3 %v1747_v45  ;;  %2704 = vmatpush.msrb.mxu0 %v1579_v35  ;;  %v1843_v18 = vld [vmem:[#allocation10 + $0x8e0] sm:$0xff]  ;;  %v1720_v62 = vld [vmem:[#allocation10 + $0x508] sm:$0xff]  ;;  %v3606_v35 = vpop.f32.mrf.mxu3 }
 0x24c   :  { %2727 = vmatpush.msrb.mxu1 %v1627_v38  ;;  %2747 = vmatpush.msrb.mxu2 %v1684_v57  ;;  %v3604_v45 = vld [vmem:[#allocation12] sm:$0x7]  ;;  %v1792_v38 = vld [vmem:[#allocation10 + $0x748] sm:$0xff] }
 0x24d   :  { %2766 = vmatpush.msrb.mxu3 %v1744_v6  ;;  %2705 = vmatpush.msrb.mxu0 %v1576_v5  ;;  %v1840_v57 = vld [vmem:[#allocation10 + $0x8c8] sm:$0xff]  ;;  %v3608_v6 = vpop.f32.mrf.mxu0  ;;  %v1789_v5 = vld [vmem:[#allocation10 + $0x730] sm:$0xff] }
 0x24e   :  { %2728 = vmatpush.msrb.mxu1 %v1624_v61  ;;  %2748 = vmatpush.msrb.mxu2 %v1681_v50  ;;  %v2137_v61 = vperm.slane %v3604_v45, 0  ;;  %v3611_v50 = vpop.f32.mrf.mxu1 }
 0x24f   :  { %2767 = vmatpush.msrb.mxu3 %v1741_v14  ;;  %2706 = vmatpush.msrb.mxu0 %v1573_v43  ;;  %v1837_v14 = vld [vmem:[#allocation10 + $0x8b0] sm:$0xff]  ;;  %v1894_v43 = vld [vmem:[#allocation10 + $0xa78] sm:$0xff] }
 0x250   :  { %2691 = vmatmul.f32.gmra.mxu3 %v3573_v29  ;;  %2729 = vmatpush.msrb.mxu1 %v1621_v12  ;;  %v1714_v12 = vld [vmem:[#allocation10 + $0x4d8] sm:$0xff] }
 0x251   :  { %2749 = vmatpush.msrb.mxu2 %v1678_v46  ;;  %2768 = vmatpush.msrb.mxu3 %v1738_v36  ;;  %v3613_v46 = vpop.f32.mrf.mxu2  ;;  %v1786_v36 = vld [vmem:[#allocation10 + $0x718] sm:$0xff] }
 0x252   :  { %2707 = vmatpush.msrb.mxu0 %v1570_v32  ;;  %2730 = vmatpush.msrb.mxu1 %v1618_v49  ;;  %v1834_v32 = vld [vmem:[#allocation10 + $0x898] sm:$0xff]  ;;  %v1891_v49 = vld [vmem:[#allocation10 + $0xa60] sm:$0xff] }
 0x253   :  { %2750 = vmatpush.msrb.mxu2 %v1675_v53  ;;  %2769 = vmatpush.msrb.mxu3 %v1735_v55  ;;  %v2161_v53 = vadd.f32 %v3596_v41, %v2137_v61  ;;  %v1711_v55 = vld [vmem:[#allocation10 + $0x4c0] sm:$0xff]  ;;  %v1828_v41 = vld [vmem:[#allocation10 + $0x868] sm:$0xff] }
 0x254   :  { %2708 = vmatpush.msrb.mxu0 %v1567_v63  ;;  %2731 = vmatpush.msrb.mxu1 %v1615_v51  ;;  %v1783_v63 = vld [vmem:[#allocation10 + $0x700] sm:$0xff] }
 0x255   :  { %2751 = vmatpush.msrb.mxu2 %v1672_v8  ;;  %2770 = vmatpush.msrb.mxu3 %v1732_v10  ;;  %v1831_v51 = vld [vmem:[#allocation10 + $0x880] sm:$0xff]  ;;  %v1888_v8 = vld [vmem:[#allocation10 + $0xa48] sm:$0xff]  ;;  %v2252_v10 = vpop.f32.mrf.mxu0 }
 0x256   :  { %2709 = vmatpush.msrb.mxu0 %v1564_v30  ;;  %2732 = vmatpush.msrb.mxu1 %v1612_v9  ;;  %v1780_v30 = vld [vmem:[#allocation10 + $0x6e8] sm:$0xff]  ;;  %v3619_v9 = vpop.f32.mrf.mxu3 }
 0x257   :  { %2752 = vmatpush.msrb.mxu2 %v1669_v24  ;;  %2771 = vmatpush.msrb.mxu3 %v1729_v25  ;;  %v1885_v24 = vld [vmem:[#allocation10 + $0xa30] sm:$0xff]  ;;  %v2275_v25 = vpop.f32.mrf.mxu1 }
 0x258   :  { %2710 = vmatpush.msrb.mxu0 %v1561_v0  ;;  %2733 = vmatpush.msrb.mxu1 %v1609_v22  ;;  %v1777_v0 = vld [vmem:[#allocation10 + $0x6d0] sm:$0xff] }
 0x259   :  { %2753 = vmatpush.msrb.mxu2 %v1666_v21  ;;  %2772 = vmatpush.msrb.mxu3 %v1726_v56  ;;  %v2298_v21 = vpop.f32.mrf.mxu2  ;;  %v1825_v56 = vld [vmem:[#allocation10 + $0x850] sm:$0xff] }
 0x25a   :  { %2711 = vmatmul.f32.vlgmr.msrb.gmra.mxu0 %v3428_v58  ;;  %2734 = vmatmul.f32.vlgmr.msrb.gmra.mxu1 %v3430_v13  ;;  %v1657_v58 = vld [vmem:[#allocation10 + $0x310] sm:$0xff] }
 0x25b   :  { %2787 = vmatpush.msra.mxu0 %v1798_v23  ;;  %2810 = vmatpush.msra.mxu1 %v1846_v11  ;;  %v1717_v13 = vld [vmem:[#allocation10 + $0x4f0] sm:$0xff]  ;;  %v1882_v23 = vld [vmem:[#allocation10 + $0xa18] sm:$0xff] }
 0x25c   :  { %2754 = vmatpush.msrb.mxu2 %v1663_v4  ;;  %2773 = vmatpush.msrb.mxu3 %v1723_v48  ;;  %v1942_v11 = vld [vmem:[#allocation10 + $0xbf8] sm:$0xff]  ;;  %v1879_v48 = vld [vmem:[#allocation10 + $0xa00] sm:$0xff] }
 0x25d   :  { %2788 = vmatpush.msra.mxu0 %v1795_v47  ;;  %2811 = vmatpush.msra.mxu1 %v1843_v18  ;;  %v1774_v4 = vld [vmem:[#allocation10 + $0x6b8] sm:$0xff]  ;;  %v2164_v47 = vadd.f32 %v3608_v6, %v2137_v61  ;;  %v1771_v18 = vld [vmem:[#allocation10 + $0x6a0] sm:$0xff]  ;;  %v1816_v6 = vld [vmem:[#allocation10 + $0x808] sm:$0xff] }
 0x25e   :  { %2755 = vmatpush.msrb.mxu2 %v1660_v44  ;;  %2774 = vmatpush.msrb.mxu3 %v1720_v62  ;;  %v1819_v62 = vld [vmem:[#allocation10 + $0x820] sm:$0xff] }
 0x25f   :  { %2789 = vmatpush.msra.mxu0 %v1792_v38  ;;  %2812 = vmatpush.msra.mxu1 %v1840_v57  ;;  %v1876_v38 = vld [vmem:[#allocation10 + $0x9e8] sm:$0xff]  ;;  %v2187_v61 = vadd.f32 %v3611_v50, %v2164_v47  ;;  %v1810_v50 = vld [vmem:[#allocation10 + $0x7d8] sm:$0xff] }
 0x260   :  { %2756 = vmatpush.msrb.mxu2 %v1657_v58  ;;  %2775 = vmatpush.msrb.mxu3 %v1717_v13  ;;  %v1936_v57 = vld [vmem:[#allocation10 + $0xbc8] sm:$0xff]  ;;  %v2255_v13 = vpop.f32.mrf.mxu0 }
 0x261   :  { %2757 = vmatmul.f32.vlgmr.msrb.gmra.mxu2 %v3435_v59  ;;  %2790 = vmatpush.msra.mxu0 %v1789_v5  ;;  %v1708_v59 = vld [vmem:[#allocation10 + $0x4a8] sm:$0xff]  ;;  %v1873_v5 = vld [vmem:[#allocation10 + $0x9d0] sm:$0xff] }
 0x262   :  { %2813 = vmatpush.msra.mxu1 %v1837_v14  ;;  %2833 = vmatpush.msra.mxu2 %v1894_v43  ;;  %v1765_v14 = vld [vmem:[#allocation10 + $0x670] sm:$0xff]  ;;  %v2278_v43 = vpop.f32.mrf.mxu1 }
 0x263   :  { %2776 = vmatpush.msrb.mxu3 %v1714_v12  ;;  %2714 = vmatmul.f32.gmra.mxu0 %v3456_v54  ;;  %v2184_v54 = vadd.f32 %v3598_v3, %v2161_v53  ;;  %v1822_v3 = vld [vmem:[#allocation10 + $0x838] sm:$0xff]  ;;  %v1813_v12 = vld [vmem:[#allocation10 + $0x7f0] sm:$0xff] }
 0x264   :  { %2737 = vmatmul.f32.gmra.mxu1 %v3458_v39  ;;  %2791 = vmatpush.msra.mxu0 %v1786_v36  ;;  %v1705_v39 = vld [vmem:[#allocation10 + $0x490] sm:$0xff]  ;;  %v2210_v36 = vadd.f32 %v3613_v46, %v2187_v61  ;;  %v1807_v46 = vld [vmem:[#allocation10 + $0x7c0] sm:$0xff]  ;;  %v1984_v61 = vld [vmem:[#allocation10 + $0xd48] sm:$0xff] }
 0x265   :  { %2814 = vmatpush.msra.mxu1 %v1834_v32  ;;  %2834 = vmatpush.msra.mxu2 %v1891_v49  ;;  %v2207_v22 = vadd.f32 %v3600_v19, %v2184_v54  ;;  %v1939_v19 = vld [vmem:[#allocation10 + $0xbe0] sm:$0xff]  ;;  %v1870_v32 = vld [vmem:[#allocation10 + $0x9b8] sm:$0xff] }
 0x266   :  { %2777 = vmatpush.msrb.mxu3 %v1711_v55  ;;  %2792 = vmatpush.msra.mxu0 %v1783_v63  ;;  %v1930_v49 = vld [vmem:[#allocation10 + $0xb98] sm:$0xff]  ;;  %v2301_v55 = vpop.f32.mrf.mxu2 }
 0x267   :  { %2815 = vmatpush.msra.mxu1 %v1831_v51  ;;  %2835 = vmatpush.msra.mxu2 %v1888_v8  ;;  %v2230_v44 = vadd.f32 %v3606_v35, %v2207_v22  ;;  %v1933_v35 = vld [vmem:[#allocation10 + $0xbb0] sm:$0xff]  ;;  %v1762_v63 = vld [vmem:[#allocation10 + $0x658] sm:$0xff]  ;;  %v1867_v51 = vld [vmem:[#allocation10 + $0x9a0] sm:$0xff] }
 0x268   :  { %2778 = vmatpush.msrb.mxu3 %v1708_v59  ;;  %2793 = vmatpush.msra.mxu0 %v1780_v30  ;;  %v1927_v8 = vld [vmem:[#allocation10 + $0xb80] sm:$0xff]  ;;  %v2233_v30 = vadd.f32 %v3619_v9, %v2210_v36  ;;  %v2344_v54 = vpop.f32.mrf.mxu0  ;;  %v1861_v22 = vld [vmem:[#allocation10 + $0x970] sm:$0xff] }
 0x269   :  { %2816 = vmatpush.msra.mxu1 %v1828_v41  ;;  %2836 = vmatpush.msra.mxu2 %v1885_v24  ;;  %v2253_v58 = vadd.f32 %v2252_v10, %v2230_v44  ;;  %v1759_v59 = vld [vmem:[#allocation10 + $0x640] sm:$0xff]  ;;  %v1864_v41 = vld [vmem:[#allocation10 + $0x988] sm:$0xff]  ;;  %v1753_v9 = vld [vmem:[#allocation10 + $0x610] sm:$0xff] }
 0x26a   :  { %2779 = vmatpush.msrb.mxu3 %v1705_v39  ;;  %2760 = vmatmul.f32.gmra.mxu2 %v3460_v40  ;;  %v2321_v40 = vpop.f32.mrf.mxu3  ;;  %v1924_v24 = vld [vmem:[#allocation10 + $0xb68] sm:$0xff]  ;;  %v2038_v44 = vld [vmem:[#allocation10 + $0xef8] sm:$0xff]  ;;  %v1909_v36 = vld [vmem:[#allocation10 + $0xaf0] sm:$0xff] }
 0x26b   :  { %2780 = vmatmul.f32.vlgmr.msrb.gmra.mxu3 %v3437_v1  ;;  %2794 = vmatpush.msra.mxu0 %v1777_v0  ;;  %v1768_v1 = vld [vmem:[#allocation10 + $0x688] sm:$0xff]  ;;  %v2276_v53 = vadd.f32 %v2275_v25, %v2253_v58  ;;  %v2035_v58 = vld [vmem:[#allocation10 + $0xee0] sm:$0xff] }
 0x26c   :  { %2817 = vmatpush.msra.mxu1 %v1825_v56  ;;  %2837 = vmatpush.msra.mxu2 %v1882_v23  ;;  %v1756_v25 = vld [vmem:[#allocation10 + $0x628] sm:$0xff]  ;;  %v2367_v23 = vpop.f32.mrf.mxu1 }
 0x26d   :  { %2856 = vmatpush.msra.mxu3 %v1942_v11  ;;  %2795 = vmatpush.msra.mxu0 %v1774_v4  ;;  %v2299_v10 = vadd.f32 %v2298_v21, %v2276_v53  ;;  %v1804_v39 = vld [vmem:[#allocation10 + $0x7a8] sm:$0xff]  ;;  %v1921_v21 = vld [vmem:[#allocation10 + $0xb50] sm:$0xff]  ;;  %v1858_v4 = vld [vmem:[#allocation10 + $0x958] sm:$0xff] }
 0x26e   :  { %2818 = vmatpush.msra.mxu1 %v1822_v3  ;;  %2838 = vmatpush.msra.mxu2 %v1879_v48  ;;  %v1801_v11 = vld [vmem:[#allocation10 + $0x790] sm:$0xff]  ;;  %v1918_v3 = vld [vmem:[#allocation10 + $0xb38] sm:$0xff] }
 0x26f   :  { %2857 = vmatpush.msra.mxu3 %v1939_v19  ;;  %2796 = vmatpush.msra.mxu0 %v1771_v18  ;;  %v2322_v56 = vadd.f32 %v2321_v40, %v2299_v10  ;;  %v1990_v18 = vld [vmem:[#allocation10 + $0xd78] sm:$0xff]  ;;  %v1915_v40 = vld [vmem:[#allocation10 + $0xb20] sm:$0xff]  ;;  %v2029_v53 = vld [vmem:[#allocation10 + $0xeb0] sm:$0xff] }
 0x270   :  { %2819 = vmatpush.msra.mxu1 %v1819_v62  ;;  %2839 = vmatpush.msra.mxu2 %v1876_v38  ;;  %v1855_v38 = vld [vmem:[#allocation10 + $0x940] sm:$0xff] }
 0x271   :  { %2858 = vmatpush.msra.mxu3 %v1936_v57  ;;  %2797 = vmatpush.msra.mxu0 %v1768_v1  ;;  %v2345_v48 = vadd.f32 %v2344_v54, %v2322_v56  ;;  %v1987_v1 = vld [vmem:[#allocation10 + $0xd60] sm:$0xff]  ;;  %v2080_v54 = vld [vmem:[#allocation10 + $0x1048] sm:$0xff]  ;;  %v2017_v56 = vld [vmem:[#allocation10 + $0xe50] sm:$0xff] }
 0x272   :  { %2820 = vmatpush.msra.mxu1 %v1816_v6  ;;  %2840 = vmatpush.msra.mxu2 %v1873_v5  ;;  %v2324_v0 = vpop.f32.mrf.mxu3  ;;  %v1912_v6 = vld [vmem:[#allocation10 + $0xb08] sm:$0xff] }
 0x273   :  { %2859 = vmatpush.msra.mxu3 %v1933_v35  ;;  %2798 = vmatpush.msra.mxu0 %v1765_v14  ;;  %v2368_v62 = vadd.f32 %v2367_v23, %v2345_v48  ;;  %v2032_v35 = vld [vmem:[#allocation10 + $0xec8] sm:$0xff]  ;;  %v2074_v23 = vld [vmem:[#allocation10 + $0x1018] sm:$0xff]  ;;  %v2131_v48 = vld [vmem:[#allocation10 + $0x11e0] sm:$0xff] }
 0x274   :  { %2783 = vmatmul.f32.gmra.mxu3 %v3464_v52  ;;  %2821 = vmatpush.msra.mxu1 %v1813_v12  ;;  %v2256_v52 = vadd.f32 %v2255_v13, %v2233_v30  ;;  %v1852_v13 = vld [vmem:[#allocation10 + $0x928] sm:$0xff]  ;;  %v1849_v12 = vld [vmem:[#allocation10 + $0x910] sm:$0xff]  ;;  %v1903_v30 = vld [vmem:[#allocation10 + $0xac0] sm:$0xff] }
 0x275   :  { %2841 = vmatpush.msra.mxu2 %v1870_v32  ;;  %2860 = vmatpush.msra.mxu3 %v1930_v49  ;;  %v2370_v49 = vpop.f32.mrf.mxu1 }
 0x276   :  { %2799 = vmatpush.msra.mxu0 %v1762_v63  ;;  %2822 = vmatpush.msra.mxu1 %v1810_v50  ;;  %v2390_v47 = vpop.f32.mrf.mxu2  ;;  %v2279_v19 = vadd.f32 %v2278_v43, %v2256_v52  ;;  %v2347_v43 = vpop.f32.mrf.mxu0  ;;  %v1906_v50 = vld [vmem:[#allocation10 + $0xad8] sm:$0xff] }
 0x277   :  { %2842 = vmatpush.msra.mxu2 %v1867_v51  ;;  %2861 = vmatpush.msra.mxu3 %v1927_v8  ;;  %v2391_v5 = vadd.f32 %v2390_v47, %v2368_v62  ;;  %v1978_v51 = vld [vmem:[#allocation10 + $0xd18] sm:$0xff]  ;;  %v1963_v47 = vld [vmem:[#allocation10 + $0xca0] sm:$0xff]  ;;  %v1960_v62 = vld [vmem:[#allocation10 + $0xc88] sm:$0xff] }
 0x278   :  { %2800 = vmatpush.msra.mxu0 %v1759_v59  ;;  %2823 = vmatpush.msra.mxu1 %v1807_v46  ;;  %v2302_v57 = vadd.f32 %v2301_v55, %v2279_v19  ;;  %v2086_v55 = vld [vmem:[#allocation10 + $0x1078] sm:$0xff]  ;;  %v2083_v46 = vld [vmem:[#allocation10 + $0x1060] sm:$0xff] }
 0x279   :  { %2843 = vmatpush.msra.mxu2 %v1864_v41  ;;  %2862 = vmatpush.msra.mxu3 %v1924_v24  ;;  %v2026_v59 = vld [vmem:[#allocation10 + $0xe98] sm:$0xff]  ;;  %v1975_v41 = vld [vmem:[#allocation10 + $0xd00] sm:$0xff] }
 0x27a   :  { %2801 = vmatpush.msra.mxu0 %v1756_v25  ;;  %2824 = vmatpush.msra.mxu1 %v1804_v39  ;;  %v2325_v32 = vadd.f32 %v2324_v0, %v2302_v57  ;;  %v2023_v24 = vld [vmem:[#allocation10 + $0xe80] sm:$0xff]  ;;  %v1972_v39 = vld [vmem:[#allocation10 + $0xce8] sm:$0xff]  ;;  %v2005_v57 = vld [vmem:[#allocation10 + $0xdf0] sm:$0xff] }
 0x27b   :  { %2844 = vmatpush.msra.mxu2 %v1861_v22  ;;  %2863 = vmatpush.msra.mxu3 %v1921_v21  ;;  %v2020_v0 = vld [vmem:[#allocation10 + $0xe68] sm:$0xff]  ;;  %v2077_v22 = vld [vmem:[#allocation10 + $0x1030] sm:$0xff]  ;;  %v2011_v19 = vld [vmem:[#allocation10 + $0xe20] sm:$0xff] }
 0x27c   :  { %2802 = vmatpush.msra.mxu0 %v1753_v9  ;;  %2825 = vmatpush.msra.mxu1 %v1801_v11  ;;  %v2348_v63 = vadd.f32 %v2347_v43, %v2325_v32  ;;  %v2134_v9 = vld [vmem:[#allocation10 + $0x11f8] sm:$0xff]  ;;  %v2056_v43 = vld [vmem:[#allocation10 + $0xf88] sm:$0xff] }
 0x27d   :  { %2845 = vmatpush.msra.mxu2 %v1858_v4  ;;  %2864 = vmatpush.msra.mxu3 %v1918_v3  ;;  %v1966_v11 = vld [vmem:[#allocation10 + $0xcb8] sm:$0xff]  ;;  %v2071_v3 = vld [vmem:[#allocation10 + $0x1000] sm:$0xff]  ;;  %v1996_v32 = vld [vmem:[#allocation10 + $0xda8] sm:$0xff] }
 0x27e   :  { %2803 = vmatmul.f32.vlgmr.msra.gmra.mxu0 %v3505_v27  ;;  %2826 = vmatmul.f32.vlgmr.msra.gmra.mxu1 %v3509_v16  ;;  %v1981_v16 = vld [vmem:[#allocation10 + $0xd30] sm:$0xff]  ;;  %v2371_v10 = vadd.f32 %v2370_v49, %v2348_v63  ;;  %v2014_v4 = vld [vmem:[#allocation10 + $0xe38] sm:$0xff] }
 0x27f   :  { %2879 = vmatpush.msrb.mxu0 %v1990_v18  ;;  %2902 = vmatpush.msrb.mxu1 %v2038_v44  ;;  %v2393_v8 = vpop.f32.mrf.mxu2  ;;  %v2068_v18 = vld [vmem:[#allocation10 + $0xfe8] sm:$0xff]  ;;  %v1945_v49 = vld [vmem:[#allocation10 + $0xc10] sm:$0xff]  ;;  %v2110_v63 = vld [vmem:[#allocation10 + $0x1138] sm:$0xff] }
 0x280   :  { %2846 = vmatpush.msra.mxu2 %v1855_v38  ;;  %2865 = vmatpush.msra.mxu3 %v1915_v40  ;;  %v2413_v14 = vpop.f32.mrf.mxu3  ;;  %v2394_v25 = vadd.f32 %v2393_v8, %v2371_v10  ;;  %v2128_v44 = vld [vmem:[#allocation10 + $0x11c8] sm:$0xff]  ;;  %v2065_v38 = vld [vmem:[#allocation10 + $0xfd0] sm:$0xff]  ;;  %v2107_v8 = vld [vmem:[#allocation10 + $0x1120] sm:$0xff]  ;;  %v2459_v10 = vpop.f32.mrf.mxu1 }
 0x281   :  { %2880 = vmatpush.msrb.mxu0 %v1987_v1  ;;  %2903 = vmatpush.msrb.mxu1 %v2035_v58  ;;  %v2414_v27 = vadd.f32 %v2413_v14, %v2391_v5  ;;  %v1957_v40 = vld [vmem:[#allocation10 + $0xc70] sm:$0xff]  ;;  %v2062_v1 = vld [vmem:[#allocation10 + $0xfb8] sm:$0xff]  ;;  %v2059_v5 = vld [vmem:[#allocation10 + $0xfa0] sm:$0xff] }
 0x282   :  { %2847 = vmatpush.msra.mxu2 %v1852_v13  ;;  %2866 = vmatpush.msra.mxu3 %v1912_v6  ;;  %v2122_v58 = vld [vmem:[#allocation10 + $0x1198] sm:$0xff]  ;;  %v1999_v14 = vld [vmem:[#allocation10 + $0xdc0] sm:$0xff] }
 0x283   :  { %2881 = vmatpush.msrb.mxu0 %v1984_v61  ;;  %2904 = vmatpush.msrb.mxu1 %v2032_v35  ;;  %2971 = vst [vmem:[#allocation13] sm:$0xff] %v2414_v27  ;;  %v1954_v13 = vld [vmem:[#allocation10 + $0xc58] sm:$0xff]  ;;  %v2119_v61 = vld [vmem:[#allocation10 + $0x1180] sm:$0xff]  ;;  %v1948_v27 = vld [vmem:[#allocation10 + $0xc28] sm:$0xff] }
 0x284   :  { %2848 = vmatpush.msra.mxu2 %v1849_v12  ;;  %2867 = vmatpush.msra.mxu3 %v1909_v36  ;;  %v2002_v6 = vld [vmem:[#allocation10 + $0xdd8] sm:$0xff]  ;;  %v1951_v35 = vld [vmem:[#allocation10 + $0xc40] sm:$0xff]  ;;  %v2116_v12 = vld [vmem:[#allocation10 + $0x1168] sm:$0xff]  ;;  %v2436_v36 = vpop.f32.mrf.mxu0 }
 0x285   :  { %2849 = vmatmul.f32.vlgmr.msra.gmra.mxu2 %v3511_v28  ;;  %2882 = vmatpush.msrb.mxu0 %v1981_v16  ;;  %v1900_v28 = vld [vmem:[#allocation10 + $0xaa8] sm:$0xff]  ;;  %v2053_v16 = vld [vmem:[#allocation10 + $0xf70] sm:$0xff] }
 0x286   :  { %2905 = vmatpush.msrb.mxu1 %v2029_v53  ;;  %2925 = vmatpush.msrb.mxu2 %v2086_v55  ;;  %v1993_v53 = vld [vmem:[#allocation10 + $0xd90] sm:$0xff]  ;;  %v2050_v55 = vld [vmem:[#allocation10 + $0xf58] sm:$0xff] }
 0x287   :  { %2868 = vmatpush.msra.mxu3 %v1906_v50  ;;  %2806 = vmatmul.f32.gmra.mxu0 %v3524_v17  ;;  %v1897_v17 = vld [vmem:[#allocation10 + $0xa90] sm:$0xff] }
 0x288   :  { %2829 = vmatmul.f32.gmra.mxu1 %v3526_v37  ;;  %2883 = vmatpush.msrb.mxu0 %v1978_v51  ;;  %v1969_v37 = vld [vmem:[#allocation10 + $0xcd0] sm:$0xff]  ;;  %v2482_v50 = vpop.f32.mrf.mxu2  ;;  %v2047_v51 = vld [vmem:[#allocation10 + $0xf40] sm:$0xff] }
 0x289   :  { %2906 = vmatpush.msrb.mxu1 %v2026_v59  ;;  %2926 = vmatpush.msrb.mxu2 %v2083_v46  ;;  %v2416_v52 = vpop.f32.mrf.mxu3  ;;  %v2044_v59 = vld [vmem:[#allocation10 + $0xf28] sm:$0xff] }
 0x28a   :  { %2869 = vmatpush.msra.mxu3 %v1903_v30  ;;  %2884 = vmatpush.msrb.mxu0 %v1975_v41  ;;  %v2417_v21 = vadd.f32 %v2416_v52, %v2394_v25  ;;  %v2104_v46 = vld [vmem:[#allocation10 + $0x1108] sm:$0xff]  ;;  %v2041_v30 = vld [vmem:[#allocation10 + $0xf10] sm:$0xff]  ;;  %v2098_v25 = vld [vmem:[#allocation10 + $0x10d8] sm:$0xff]  ;;  %v2462_v52 = vpop.f32.mrf.mxu1 }
 0x28b   :  { %2907 = vmatpush.msrb.mxu1 %v2023_v24  ;;  %2927 = vmatpush.msrb.mxu2 %v2080_v54  ;;  %v2101_v41 = vld [vmem:[#allocation10 + $0x10f0] sm:$0xff] }
 0x28c   :  { %2870 = vmatpush.msra.mxu3 %v1900_v28  ;;  %2885 = vmatpush.msrb.mxu0 %v1972_v39  ;;  %2974 = vst [vmem:[#allocation13 + $0x18] sm:$0xff] %v2417_v21  ;;  %v2439_v54 = vpop.f32.mrf.mxu0  ;;  %v2095_v28 = vld [vmem:[#allocation10 + $0x10c0] sm:$0xff] }
 0x28d   :  { %2908 = vmatpush.msrb.mxu1 %v2020_v0  ;;  %2928 = vmatpush.msrb.mxu2 %v2077_v22  ;;  %v2089_v0 = vld [vmem:[#allocation10 + $0x1090] sm:$0xff] }
 0x28e   :  { %2871 = vmatpush.msra.mxu3 %v1897_v17  ;;  %2852 = vmatmul.f32.gmra.mxu2 %v3522_v42  ;;  %v2008_v42 = vld [vmem:[#allocation10 + $0xe08] sm:$0xff] }
 0x28f   :  { %2872 = vmatmul.f32.vlgmr.msra.gmra.mxu3 %v3514_v60  ;;  %2886 = vmatpush.msrb.mxu0 %v1969_v37  ;;  %v2125_v60 = vld [vmem:[#allocation10 + $0x11b0] sm:$0xff] }
 0x290   :  { %2909 = vmatpush.msrb.mxu1 %v2017_v56  ;;  %2929 = vmatpush.msrb.mxu2 %v2074_v23 }
 0x291   :  { %2948 = vmatpush.msrb.mxu3 %v2134_v9  ;;  %2887 = vmatpush.msrb.mxu0 %v1966_v11  ;;  %v2485_v39 = vpop.f32.mrf.mxu2 }
 0x292   :  { %2910 = vmatpush.msrb.mxu1 %v2014_v4  ;;  %2930 = vmatpush.msrb.mxu2 %v2071_v3  ;;  %v2505_v24 = vpop.f32.mrf.mxu3  ;;  %v2551_v56 = vpop.f32.mrf.mxu1 }
 0x293   :  { %2949 = vmatpush.msrb.mxu3 %v2131_v48  ;;  %2888 = vmatpush.msrb.mxu0 %v1963_v47 }
 0x294   :  { %2911 = vmatpush.msrb.mxu1 %v2011_v19  ;;  %2931 = vmatpush.msrb.mxu2 %v2068_v18  ;;  %v2528_v21 = vpop.f32.mrf.mxu0 }
 0x295   :  { %2950 = vmatpush.msrb.mxu3 %v2128_v44  ;;  %2889 = vmatpush.msrb.mxu0 %v1960_v62 }
 0x296   :  { %2912 = vmatpush.msrb.mxu1 %v2008_v42  ;;  %2932 = vmatpush.msrb.mxu2 %v2065_v38 }
 0x297   :  { %2951 = vmatpush.msrb.mxu3 %v2125_v60  ;;  %2890 = vmatpush.msrb.mxu0 %v1957_v40 }
 0x298   :  { %2875 = vmatmul.f32.gmra.mxu3 %v3528_v33  ;;  %2913 = vmatpush.msrb.mxu1 %v2005_v57  ;;  %v2113_v33 = vld [vmem:[#allocation10 + $0x1150] sm:$0xff] }
 0x299   :  { %2933 = vmatpush.msrb.mxu2 %v2062_v1  ;;  %2952 = vmatpush.msrb.mxu3 %v2122_v58 }
 0x29a   :  { %2891 = vmatpush.msrb.mxu0 %v1954_v13  ;;  %2914 = vmatpush.msrb.mxu1 %v2002_v6  ;;  %v2554_v47 = vpop.f32.mrf.mxu1 }
 0x29b   :  { %2934 = vmatpush.msrb.mxu2 %v2059_v5  ;;  %2953 = vmatpush.msrb.mxu3 %v2119_v61 }
 0x29c   :  { %2892 = vmatpush.msrb.mxu0 %v1951_v35  ;;  %2915 = vmatpush.msrb.mxu1 %v1999_v14 }
 0x29d   :  { %2935 = vmatpush.msrb.mxu2 %v2056_v43  ;;  %2954 = vmatpush.msrb.mxu3 %v2116_v12  ;;  %v2508_v17 = vpop.f32.mrf.mxu3  ;;  %v2574_v23 = vpop.f32.mrf.mxu2 }
 0x29e   :  { %2893 = vmatpush.msrb.mxu0 %v1948_v27  ;;  %2916 = vmatpush.msrb.mxu1 %v1996_v32 }
 0x29f   :  { %2936 = vmatpush.msrb.mxu2 %v2053_v16  ;;  %2955 = vmatpush.msrb.mxu3 %v2113_v33 }
 0x2a0   :  { %2894 = vmatpush.msrb.mxu0 %v1945_v49  ;;  %2917 = vmatpush.msrb.mxu1 %v1993_v53 }
 0x2a1   :  { %2937 = vmatpush.msrb.mxu2 %v2050_v55  ;;  %2956 = vmatpush.msrb.mxu3 %v2110_v63 }
 0x2a2   :  { %2895 = vmatmul.f32.vlgmr.msrb.gmra.mxu0 %v3540_v20  ;;  %2918 = vmatmul.f32.vlgmr.msrb.gmra.mxu1 %v3545_v31  ;;  %v2138_v20 = vperm.slane %v3604_v45, 1  ;;  %v2092_v31 = vld [vmem:[#allocation10 + $0x10a8] sm:$0xff] }
 0x2a3   :  { %2938 = vmatpush.msrb.mxu2 %v2047_v51  ;;  %2957 = vmatpush.msrb.mxu3 %v2107_v8  ;;  %v2139_v8 = vperm.slane %v3604_v45, 2 }
 0x2a4   :  { %v2437_v22 = vadd.f32 %v2436_v36, %v2138_v20  ;;  %v2440_v9 = vadd.f32 %v2439_v54, %v2138_v20 }
 0x2a5   :  { %2939 = vmatpush.msrb.mxu2 %v2044_v59  ;;  %2958 = vmatpush.msrb.mxu3 %v2104_v46 }
 0x2a6   :  { %v2463_v3 = vadd.f32 %v2462_v52, %v2440_v9 }
 0x2a7   :  { %2940 = vmatpush.msrb.mxu2 %v2041_v30  ;;  %2959 = vmatpush.msrb.mxu3 %v2101_v41  ;;  %v2577_v18 = vpop.f32.mrf.mxu2 }
 0x2a8   :  { %2941 = vmatmul.f32.vlgmr.msrb.gmra.mxu2 %v3560_v15  ;;  %v2460_v15 = vadd.f32 %v2459_v10, %v2437_v22  ;;  %v2597_v11 = vpop.f32.mrf.mxu3  ;;  %v2486_v48 = vadd.f32 %v2485_v39, %v2463_v3 }
 0x2a9   :  { %2960 = vmatpush.msrb.mxu3 %v2098_v25 }
 0x2aa   :  { %2898 = vmatmul.f32.gmra.mxu0 %v3547_v7  ;;  %2921 = vmatmul.f32.gmra.mxu1 %v3551_v2  ;;  %v2483_v37 = vadd.f32 %v2482_v50, %v2460_v15  ;;  %v2531_v2 = vpop.f32.mrf.mxu0  ;;  %v2509_v44 = vadd.f32 %v2508_v17, %v2486_v48 }
 0x2ab   :  { %2961 = vmatpush.msrb.mxu3 %v2095_v28 }
 0x2ac   :  { %v2506_v7 = vadd.f32 %v2505_v24, %v2483_v37  ;;  %v2532_v42 = vadd.f32 %v2531_v2, %v2509_v44 }
 0x2ad   :  { %2962 = vmatpush.msrb.mxu3 %v2092_v31 }
 0x2ae   :  { %v2529_v4 = vadd.f32 %v2528_v21, %v2506_v7  ;;  %v2555_v1 = vadd.f32 %v2554_v47, %v2532_v42 }
 0x2af   :  { %2963 = vmatpush.msrb.mxu3 %v2089_v0 }
 0x2b0   :  { %2944 = vmatmul.f32.gmra.mxu2 %v3567_v26  ;;  %2964 = vmatmul.f32.vlgmr.msrb.gmra.mxu3 %v3569_v34  ;;  %v2552_v19 = vadd.f32 %v2551_v56, %v2529_v4  ;;  %v2578_v13 = vadd.f32 %v2577_v18, %v2555_v1 }
 0x2b1   :  { %v2600_v38 = vpop.f32.mrf.mxu3 }
 0x2b2   :  { %v2575_v26 = vadd.f32 %v2574_v23, %v2552_v19  ;;  %v2601_v5 = vadd.f32 %v2600_v38, %v2578_v13 }
 0x2b3   :  { %v2620_v62 = vpop.f32.mrf.mxu0  ;;  %v2643_v40 = vpop.f32.mrf.mxu1 }
 0x2b4   :  { %v2598_v34 = vadd.f32 %v2597_v11, %v2575_v26 }
 0x2b6   :  { %v2621_v60 = vadd.f32 %v2620_v62, %v2598_v34 }
 0x2b8   :  { %2967 = vmatmul.f32.gmra.mxu3 %v3573_v29  ;;  %v2644_v58 = vadd.f32 %v2643_v40, %v2621_v60 }
 0x2bc   :  { %v2623_v6 = vpop.f32.mrf.mxu0 }
 0x2bd   :  { %v2624_v14 = vadd.f32 %v2623_v6, %v2601_v5  ;;  %v2646_v43 = vpop.f32.mrf.mxu1 }
 0x2bf   :  { %v2647_v36 = vadd.f32 %v2646_v43, %v2624_v14 }
 0x2c0   :  { %v2666_v57 = vpop.f32.mrf.mxu2 }
 0x2c1   :  { %v2667_v29 = vadd.f32 %v2666_v57, %v2644_v58 }
 0x2c9   :  { %v2669_v12 = vpop.f32.mrf.mxu2 }
 0x2ca   :  { %v2689_v61 = vpop.f32.mrf.mxu3  ;;  %v2670_v27 = vadd.f32 %v2669_v12, %v2647_v36 }
 0x2cb   :  { %v2690_v35 = vadd.f32 %v2689_v61, %v2667_v29 }
 0x2cd   :  { %2972 = vst [vmem:[#allocation13 + $0x8] sm:$0xff] %v2690_v35 }
 0x2d3   :  { %v2692_v32 = vpop.f32.mrf.mxu3 }
 0x2d4   :  { %v2693_v16 = vadd.f32 %v2692_v32, %v2670_v27 }
 0x2d6   :  { %2975 = vst [vmem:[#allocation13 + $0x20] sm:$0xff] %v2693_v16 }
 0x2d7   :  { %v2712_v33 = vpop.f32.mrf.mxu0  ;;  %v2735_v49 = vpop.f32.mrf.mxu1 }
 0x2d8   :  { %v2713_v59 = vadd.f32 %v2712_v33, %v2139_v8 }
 0x2da   :  { %v2736_v24 = vadd.f32 %v2735_v49, %v2713_v59 }
 0x2e0   :  { %v2715_v55 = vpop.f32.mrf.mxu0 }
 0x2e1   :  { %v2738_v50 = vpop.f32.mrf.mxu1  ;;  %v2716_v28 = vadd.f32 %v2715_v55, %v2139_v8 }
 0x2e3   :  { %v2739_v52 = vadd.f32 %v2738_v50, %v2716_v28 }
 0x2e4   :  { %v2758_v53 = vpop.f32.mrf.mxu2 }
 0x2e5   :  { %v2759_v54 = vadd.f32 %v2758_v53, %v2736_v24 }
 0x2ed   :  { %v2761_v51 = vpop.f32.mrf.mxu2 }
 0x2ee   :  { %v2781_v63 = vpop.f32.mrf.mxu3  ;;  %v2762_v21 = vadd.f32 %v2761_v51, %v2739_v52 }
 0x2ef   :  { %v2782_v20 = vadd.f32 %v2781_v63, %v2759_v54 }
 0x2f7   :  { %v2784_v46 = vpop.f32.mrf.mxu3 }
 0x2f8   :  { %v2785_v37 = vadd.f32 %v2784_v46, %v2762_v21 }
 0x2fb   :  { %v2804_v10 = vpop.f32.mrf.mxu0  ;;  %v2827_v30 = vpop.f32.mrf.mxu1 }
 0x2fc   :  { %v2805_v31 = vadd.f32 %v2804_v10, %v2782_v20 }
 0x2fe   :  { %v2828_v17 = vadd.f32 %v2827_v30, %v2805_v31 }
 0x304   :  { %v2807_v25 = vpop.f32.mrf.mxu0 }
 0x305   :  { %v2830_v0 = vpop.f32.mrf.mxu1  ;;  %v2808_v56 = vadd.f32 %v2807_v25, %v2785_v37 }
 0x307   :  { %v2831_v4 = vadd.f32 %v2830_v0, %v2808_v56 }
 0x308   :  { %v2850_v41 = vpop.f32.mrf.mxu2 }
 0x309   :  { %v2851_v45 = vadd.f32 %v2850_v41, %v2828_v17 }
 0x311   :  { %v2853_v22 = vpop.f32.mrf.mxu2 }
 0x312   :  { %v2873_v39 = vpop.f32.mrf.mxu3  ;;  %v2854_v3 = vadd.f32 %v2853_v22, %v2831_v4 }
 0x313   :  { %v2874_v23 = vadd.f32 %v2873_v39, %v2851_v45 }
 0x31b   :  { %v2876_v7 = vpop.f32.mrf.mxu3 }
 0x31c   :  { %v2877_v19 = vadd.f32 %v2876_v7, %v2854_v3 }
 0x31f   :  { %v2896_v15 = vpop.f32.mrf.mxu0  ;;  %v2919_v2 = vpop.f32.mrf.mxu1 }
 0x320   :  { %v2897_v9 = vadd.f32 %v2896_v15, %v2874_v23 }
 0x322   :  { %v2920_v48 = vadd.f32 %v2919_v2, %v2897_v9 }
 0x327   :  { %v2899_v47 = vpop.f32.mrf.mxu0  ;;  %v2922_v34 = vpop.f32.mrf.mxu1 }
 0x328   :  { %v2900_v26 = vadd.f32 %v2899_v47, %v2877_v19 }
 0x32a   :  { %v2923_v38 = vadd.f32 %v2922_v34, %v2900_v26 }
 0x32b   :  { %v2942_v11 = vpop.f32.mrf.mxu2 }
 0x32c   :  { %v2943_v18 = vadd.f32 %v2942_v11, %v2920_v48 }
 0x333   :  { %v2965_v44 = vpop.f32.mrf.mxu3  ;;  %v2945_v42 = vpop.f32.mrf.mxu2 }
 0x334   :  { %v2966_v62 = vadd.f32 %v2965_v44, %v2943_v18  ;;  %v2946_v60 = vadd.f32 %v2945_v42, %v2923_v38 }
 0x336   :  { %2973 = vst [vmem:[#allocation13 + $0x10] sm:$0xff] %v2966_v62 }
 0x33b   :  { %v2968_v40 = vpop.f32.mrf.mxu3 }
 0x33c   :  { %v2969_v57 = vadd.f32 %v2968_v40, %v2946_v60 }
 0x33e   :  { %2976 = vst [vmem:[#allocation13 + $0x28] sm:$0xff] %v2969_v57 }
 0x33f   :  { %2989 = dma.vmem_to_hbm [thread:$0]  %s2982_s5, 768, %s2984_s23, [#allocation6], %s3171_s2, %s3171_s2, %s3172_s11  }
 0x340   :  { %3165 = dma.done.wait [#allocation6], 768  }
 0x341   :  { %3166 = vsyncadd [#allocation6], 4294966528 }
 0x342   :  { %2994 = vsyncpa [#allocation5], 1 }
 0x343   :  { %2995 = vsyncpa [#allocation8], 1 }
 0x344   :  { %2996 = vsyncpa [#allocation11], 1 }
 0x345   :  { %2997 = vsyncpa [#allocation6], 1 }

</bundles_post_ra>
